<compile_context>
chip_gen: v7x
topology: tpu7x:2x2x1
jax: 0.10.0
libtpu: 0.0.40
codegen_flags: <defaults>
</compile_context>

<pallas_src>
import functools

import jax
import jax.numpy as jnp
from jax.experimental import pallas as pl
from jax.experimental.pallas import tpu as pltpu


# ----------------------------- Pallas kernel ------------------------------ #
def _matmul_bias_lrelu_kernel(w_ref, x_ref, b_ref, o_ref, *, act):
    # w_ref: (Cout, K) bf16, x_ref: (K, tm) bf16, b_ref: (Cout, 1) f32,
    # o_ref: (Cout, tm) f32 -- lane axis is tm (lane-dense stores).
    y = jnp.dot(w_ref[...], x_ref[...], preferred_element_type=jnp.float32)
    y = y + b_ref[...]
    if act:
        y = jnp.where(y > 0, y, 0.2 * y)   # LeakyReLU(0.2)
    o_ref[...] = y


def _pick_tm(M):
    # Biggest lane tile that still gives >= 2 grid steps on the larger layers.
    if M >= 4096:
        return 1024
    if M >= 1024:
        return 512
    if M >= 256:
        return 256
    return M          # tiny layers: single full-extent block


def _fused_matmul_t(colT, wmat_t, bias, *, act):
    # colT: (K, M) bf16, wmat_t: (Cout, K) bf16 (BN scale pre-folded),
    # bias: (Cout,) f32.  Returns (Cout, M) f32.
    K, M = colT.shape
    Cout = wmat_t.shape[0]
    tm = _pick_tm(M)
    Mp = pl.cdiv(M, tm) * tm
    if Mp != M:
        colT = jnp.pad(colT, ((0, 0), (0, Mp - M)))
    grid = (Mp // tm,)

    # double-buffered inputs + output working set, with generous slack.
    ws = 2 * (Cout * K * 2 + K * tm * 2 + Cout * 4 + Cout * tm * 4)
    vmem_limit = int(min(64 * 2**20, max(16 * 2**20, 4 * ws)))

    cost = pl.CostEstimate(
        flops=2 * Mp * K * Cout,
        transcendentals=0,
        bytes_accessed=int(K * Mp * 2 + Cout * K * 2 + Cout * 4 + Cout * Mp * 4),
    )

    out = pl.pallas_call(
        functools.partial(_matmul_bias_lrelu_kernel, act=act),
        out_shape=jax.ShapeDtypeStruct((Cout, Mp), jnp.float32),
        grid_spec=pltpu.PrefetchScalarGridSpec(
            num_scalar_prefetch=0,
            grid=grid,
            in_specs=[
                pl.BlockSpec((Cout, K), lambda i: (0, 0)),
                pl.BlockSpec((K, tm), lambda i: (0, i)),
                pl.BlockSpec((Cout, 1), lambda i: (0, 0)),
            ],
            out_specs=pl.BlockSpec((Cout, tm), lambda i: (0, i)),
        ),
        compiler_params=pltpu.CompilerParams(
            dimension_semantics=("parallel",),
            vmem_limit_bytes=vmem_limit,
        ),
        cost_estimate=cost,
    )(wmat_t, colT, bias.reshape(Cout, 1).astype(jnp.float32))
    return out[:, :M]


# ------------------------------ conv wrapper ------------------------------ #
def _im2col_T(x, kh, kw, stride, pad):
    # x: (N, C, H, W) -> colT: (C*kh*kw, N*Ho*Wo), feature order (C, kh, kw).
    N, C, H, W = x.shape
    xp = jnp.pad(x, ((0, 0), (0, 0), (pad, pad), (pad, pad)))
    Ho = (H + 2 * pad - kh) // stride + 1
    Wo = (W + 2 * pad - kw) // stride + 1
    cols = []
    for i in range(kh):
        for j in range(kw):
            cols.append(xp[:, :, i:i + stride * Ho:stride, j:j + stride * Wo:stride])
    col = jnp.stack(cols, axis=0).reshape(kh, kw, N, C, Ho, Wo)
    colT = col.transpose(3, 0, 1, 2, 4, 5).reshape(C * kh * kw, N * Ho * Wo)
    return colT, Ho, Wo


def conv_layer(x, w, scale, bias, *, stride, pad, act):
    # w: (Cout, Cin, Kh, Kw) (PyTorch layout). BN scale folded into the weights,
    # im2col matrix materialized in bf16 (halved HBM traffic).
    Cout, Cin, kh, kw = w.shape
    colT, Ho, Wo = _im2col_T(x.astype(jnp.bfloat16), kh, kw, stride, pad)
    wmat_t = (w.reshape(Cout, Cin * kh * kw) * scale[:, None]).astype(jnp.bfloat16)
    out = _fused_matmul_t(colT, wmat_t, bias, act=act)      # (Cout, N*Ho*Wo)
    N = x.shape[0]
    return out.reshape(Cout, N, Ho, Wo).transpose(1, 0, 2, 3)


# --------------------------- parameter creation ---------------------------- #
def _conv_w(key, cout, cin, k):
    return 0.05 * jax.random.normal(key, (cout, cin, k, k), jnp.float32)


def _bn_fold(key, c, eps=1e-5):
    k1, k2, k3, k4 = jax.random.split(key, 4)
    gamma = 1.0 + 0.1 * jax.random.normal(k1, (c,), jnp.float32)
    beta = 0.1 * jax.random.normal(k2, (c,), jnp.float32)
    mean = 0.1 * jax.random.normal(k3, (c,), jnp.float32)
    var = 1.0 + 0.1 * jnp.abs(jax.random.normal(k4, (c,), jnp.float32))
    scale = gamma / jnp.sqrt(var + eps)
    bias = beta - mean * scale
    return scale, bias


def make_params(key, ndf, efg):
    ks = jax.random.split(key, 20)
    p = {}
    # encode_image_by_16times
    p["c1_w"] = _conv_w(ks[0], ndf, 3, 4)                       # no BN
    p["c2_w"] = _conv_w(ks[1], ndf * 2, ndf, 4)
    p["c2_s"], p["c2_b"] = _bn_fold(ks[2], ndf * 2)
    p["c3_w"] = _conv_w(ks[3], ndf * 4, ndf * 2, 4)
    p["c3_s"], p["c3_b"] = _bn_fold(ks[4], ndf * 4)
    p["c4_w"] = _conv_w(ks[5], ndf * 8, ndf * 4, 4)
    p["c4_s"], p["c4_b"] = _bn_fold(ks[6], ndf * 8)
    # img_code_s32 (downBlock)
    p["c5_w"] = _conv_w(ks[7], ndf * 16, ndf * 8, 4)
    p["c5_s"], p["c5_b"] = _bn_fold(ks[8], ndf * 16)
    # img_code_s32_1 (Block3x3_leakRelu)
    p["c6_w"] = _conv_w(ks[9], ndf * 8, ndf * 16, 3)
    p["c6_s"], p["c6_b"] = _bn_fold(ks[10], ndf * 8)
    # jointConv (Block3x3_leakRelu)
    p["c7_w"] = _conv_w(ks[11], ndf * 8, ndf * 8 + efg, 3)
    p["c7_s"], p["c7_b"] = _bn_fold(ks[12], ndf * 8)
    # logits / uncond_logits (Conv2d k=4, s=4, bias=True)
    p["c8_w"] = _conv_w(ks[13], 8, ndf * 8, 4)
    p["c8_b"] = 0.05 * jax.random.normal(ks[14], (8,), jnp.float32)
    p["c9_w"] = _conv_w(ks[15], 8, ndf * 8, 4)
    p["c9_b"] = 0.05 * jax.random.normal(ks[16], (8,), jnp.float32)
    return p


# ------------------------------ forward pass ------------------------------- #
def d_net128_la_forward(params, x_var, c_code, *, ndf, efg):
    ones = lambda c: jnp.ones((c,), jnp.float32)
    zeros = lambda c: jnp.zeros((c,), jnp.float32)

    # img_code_s16: conv4x4 s2 + LReLU, then 3x (conv4x4 s2 + BN + LReLU)
    h = conv_layer(x_var, params["c1_w"], ones(ndf), zeros(ndf),
                   stride=2, pad=1, act=True)
    h = conv_layer(h, params["c2_w"], params["c2_s"], params["c2_b"],
                   stride=2, pad=1, act=True)
    h = conv_layer(h, params["c3_w"], params["c3_s"], params["c3_b"],
                   stride=2, pad=1, act=True)
    h = conv_layer(h, params["c4_w"], params["c4_s"], params["c4_b"],
                   stride=2, pad=1, act=True)
    # img_code_s32: downBlock
    h = conv_layer(h, params["c5_w"], params["c5_s"], params["c5_b"],
                   stride=2, pad=1, act=True)
    # img_code_s32_1: Block3x3_leakRelu
    x_code = conv_layer(h, params["c6_w"], params["c6_s"], params["c6_b"],
                        stride=1, pad=1, act=True)

    # c_code: (B, efg) -> (B, efg, 4, 4), concat on channels
    c = c_code.reshape(-1, efg, 1, 1)
    c = jnp.tile(c, (1, 1, 4, 4))
    h_c_code = jnp.concatenate([c, x_code], axis=1)

    # jointConv + logits
    h_c_code = conv_layer(h_c_code, params["c7_w"], params["c7_s"], params["c7_b"],
                          stride=1, pad=1, act=True)
    output = conv_layer(h_c_code, params["c8_w"], ones(8), params["c8_b"],
                        stride=4, pad=0, act=False)
    out_uncond = conv_layer(x_code, params["c9_w"], ones(8), params["c9_b"],
                            stride=4, pad=0, act=False)

    return x_code, output.reshape(-1, 8), out_uncond.reshape(-1, 8)


# ---------------------------------- main ----------------------------------- #
if __name__ == "__main__":
    B, NDF, EFG = 2, 8, 32          # small df_dim / ef_dim; spatial must be 128
    key = jax.random.PRNGKey(0)
    k_param, k_x, k_c = jax.random.split(key, 3)

    params = make_params(k_param, NDF, EFG)
    x_var = jax.random.normal(k_x, (B, 3, 128, 128), jnp.float32)
    c_code = jax.random.normal(k_c, (B, EFG), jnp.float32)

    fwd = jax.jit(functools.partial(d_net128_la_forward, ndf=NDF, efg=EFG))
    x_code, logits, uncond = fwd(params, x_var, c_code)
    jax.block_until_ready((x_code, logits, uncond))

    assert x_code.shape == (B, NDF * 8, 4, 4)
    assert logits.shape == (B, 8)
    assert uncond.shape == (B, 8)
    print("KERNEL_OK")
</pallas_src>

<mosaic_0001>
module attributes {stable_mosaic.version = 11 : i64} {
  func.func @_matmul_bias_lrelu_kernel(%arg0: i32, %arg1: memref<8x48xbf16, #tpu.memory_space<vmem>>, %arg2: memref<48x1024xbf16, #tpu.memory_space<vmem>>, %arg3: memref<8x1xf32, #tpu.memory_space<vmem>>, %arg4: memref<8x1024xf32, #tpu.memory_space<vmem>>) attributes {dimension_semantics = [#tpu.dimension_semantics<parallel>], iteration_bounds = array<i64: 8>, scalar_prefetch = 0 : i64, scratch_operands = 0 : i64, tpu.core_type = #tpu.core_type<tc>, window_params = [{pipeline_mode = #tpu.pipeline_mode<synchronous>, transform_indices = @transform_0, window_bounds = array<i64: 8, 48>}, {transform_indices = @transform_1, window_bounds = array<i64: 48, 1024>}, {pipeline_mode = #tpu.pipeline_mode<synchronous>, transform_indices = @transform_2, window_bounds = array<i64: 8, 1>}, {transform_indices = @transform_3, window_bounds = array<i64: 8, 1024>}]} {
    %c0 = arith.constant 0 : index
    %c0_0 = arith.constant 0 : index
    %0 = vector.load %arg1[%c0, %c0_0] : memref<8x48xbf16, #tpu.memory_space<vmem>>, vector<8x48xbf16>
    %c0_1 = arith.constant 0 : index
    %c0_2 = arith.constant 0 : index
    %1 = vector.load %arg2[%c0_1, %c0_2] : memref<48x1024xbf16, #tpu.memory_space<vmem>>, vector<48x1024xbf16>
    %cst = arith.constant dense<0.000000e+00> : vector<8x1024xf32>
    %2 = tpu.matmul %0, %1, %cst {dimension_numbers = #tpu.dot_dimension_numbers<[1], [0], [0], [1], [0, 0, 1, 1], [], []>} : vector<8x48xbf16>, vector<48x1024xbf16>, vector<8x1024xf32> -> vector<8x1024xf32>
    %c0_3 = arith.constant 0 : index
    %c0_4 = arith.constant 0 : index
    %3 = vector.load %arg3[%c0_3, %c0_4] : memref<8x1xf32, #tpu.memory_space<vmem>>, vector<8x1xf32>
    %4 = vector.broadcast %3 : vector<8x1xf32> to vector<8x1024xf32>
    %5 = arith.addf %2, %4 : vector<8x1024xf32>
    %cst_5 = arith.constant 0.000000e+00 : f32
    %6 = vector.broadcast %cst_5 : f32 to vector<8x1024xf32>
    %7 = arith.cmpf ogt, %5, %6 : vector<8x1024xf32>
    %cst_6 = arith.constant 2.000000e-01 : f32
    %8 = vector.broadcast %cst_6 : f32 to vector<8x1024xf32>
    %9 = arith.mulf %8, %5 : vector<8x1024xf32>
    %10 = arith.select %7, %5, %9 : vector<8x1024xi1>, vector<8x1024xf32>
    %c0_7 = arith.constant 0 : index
    %c0_8 = arith.constant 0 : index
    %11 = vector.load %arg4[%c0_7, %c0_8] : memref<8x1024xf32, #tpu.memory_space<vmem>>, vector<8x1024xf32>
    tpu.vector_store %arg4[%c0_7, %c0_8], %10 {strides = array<i32>} : memref<8x1024xf32, #tpu.memory_space<vmem>>, vector<8x1024xf32>,
    return
  }
  func.func @transform_0(%arg0: i32) -> (i32, i32) {
    %c0_i32 = arith.constant 0 : i32
    %c0_i32_0 = arith.constant 0 : i32
    %c0_i32_1 = arith.constant 0 : i32
    return %c0_i32, %c0_i32_0 : i32, i32
  }
  func.func @transform_1(%arg0: i32) -> (i32, i32) {
    %c0_i32 = arith.constant 0 : i32
    %c0_i32_0 = arith.constant 0 : i32
    return %c0_i32, %arg0 : i32, i32
  }
  func.func @transform_2(%arg0: i32) -> (i32, i32) {
    %c0_i32 = arith.constant 0 : i32
    %c0_i32_0 = arith.constant 0 : i32
    %c0_i32_1 = arith.constant 0 : i32
    return %c0_i32, %c0_i32_0 : i32, i32
  }
  func.func @transform_3(%arg0: i32) -> (i32, i32) {
    %c0_i32 = arith.constant 0 : i32
    %c0_i32_0 = arith.constant 0 : i32
    return %c0_i32, %arg0 : i32, i32
  }
}

module attributes {stable_mosaic.version = 11 : i64} {
  func.func @_matmul_bias_lrelu_kernel(%arg0: i32, %arg1: memref<16x128xbf16, #tpu.memory_space<vmem>>, %arg2: memref<128x512xbf16, #tpu.memory_space<vmem>>, %arg3: memref<16x1xf32, #tpu.memory_space<vmem>>, %arg4: memref<16x512xf32, #tpu.memory_space<vmem>>) attributes {dimension_semantics = [#tpu.dimension_semantics<parallel>], iteration_bounds = array<i64: 4>, scalar_prefetch = 0 : i64, scratch_operands = 0 : i64, tpu.core_type = #tpu.core_type<tc>, window_params = [{pipeline_mode = #tpu.pipeline_mode<synchronous>, transform_indices = @transform_0, window_bounds = array<i64: 16, 128>}, {transform_indices = @transform_1, window_bounds = array<i64: 128, 512>}, {pipeline_mode = #tpu.pipeline_mode<synchronous>, transform_indices = @transform_2, window_bounds = array<i64: 16, 1>}, {transform_indices = @transform_3, window_bounds = array<i64: 16, 512>}]} {
    %c0 = arith.constant 0 : index
    %c0_0 = arith.constant 0 : index
    %0 = vector.load %arg1[%c0, %c0_0] : memref<16x128xbf16, #tpu.memory_space<vmem>>, vector<16x128xbf16>
    %c0_1 = arith.constant 0 : index
    %c0_2 = arith.constant 0 : index
    %1 = vector.load %arg2[%c0_1, %c0_2] : memref<128x512xbf16, #tpu.memory_space<vmem>>, vector<128x512xbf16>
    %cst = arith.constant dense<0.000000e+00> : vector<16x512xf32>
    %2 = tpu.matmul %0, %1, %cst {dimension_numbers = #tpu.dot_dimension_numbers<[1], [0], [0], [1], [0, 0, 1, 1], [], []>} : vector<16x128xbf16>, vector<128x512xbf16>, vector<16x512xf32> -> vector<16x512xf32>
    %c0_3 = arith.constant 0 : index
    %c0_4 = arith.constant 0 : index
    %3 = vector.load %arg3[%c0_3, %c0_4] : memref<16x1xf32, #tpu.memory_space<vmem>>, vector<16x1xf32>
    %4 = vector.broadcast %3 : vector<16x1xf32> to vector<16x512xf32>
    %5 = arith.addf %2, %4 : vector<16x512xf32>
    %cst_5 = arith.constant 0.000000e+00 : f32
    %6 = vector.broadcast %cst_5 : f32 to vector<16x512xf32>
    %7 = arith.cmpf ogt, %5, %6 : vector<16x512xf32>
    %cst_6 = arith.constant 2.000000e-01 : f32
    %8 = vector.broadcast %cst_6 : f32 to vector<16x512xf32>
    %9 = arith.mulf %8, %5 : vector<16x512xf32>
    %10 = arith.select %7, %5, %9 : vector<16x512xi1>, vector<16x512xf32>
    %c0_7 = arith.constant 0 : index
    %c0_8 = arith.constant 0 : index
    %11 = vector.load %arg4[%c0_7, %c0_8] : memref<16x512xf32, #tpu.memory_space<vmem>>, vector<16x512xf32>
    tpu.vector_store %arg4[%c0_7, %c0_8], %10 {strides = array<i32>} : memref<16x512xf32, #tpu.memory_space<vmem>>, vector<16x512xf32>,
    return
  }
  func.func @transform_0(%arg0: i32) -> (i32, i32) {
    %c0_i32 = arith.constant 0 : i32
    %c0_i32_0 = arith.constant 0 : i32
    %c0_i32_1 = arith.constant 0 : i32
    return %c0_i32, %c0_i32_0 : i32, i32
  }
  func.func @transform_1(%arg0: i32) -> (i32, i32) {
    %c0_i32 = arith.constant 0 : i32
    %c0_i32_0 = arith.constant 0 : i32
    return %c0_i32, %arg0 : i32, i32
  }
  func.func @transform_2(%arg0: i32) -> (i32, i32) {
    %c0_i32 = arith.constant 0 : i32
    %c0_i32_0 = arith.constant 0 : i32
    %c0_i32_1 = arith.constant 0 : i32
    return %c0_i32, %c0_i32_0 : i32, i32
  }
  func.func @transform_3(%arg0: i32) -> (i32, i32) {
    %c0_i32 = arith.constant 0 : i32
    %c0_i32_0 = arith.constant 0 : i32
    return %c0_i32, %arg0 : i32, i32
  }
}

module attributes {stable_mosaic.version = 11 : i64} {
  func.func @_matmul_bias_lrelu_kernel(%arg0: i32, %arg1: memref<32x256xbf16, #tpu.memory_space<vmem>>, %arg2: memref<256x256xbf16, #tpu.memory_space<vmem>>, %arg3: memref<32x1xf32, #tpu.memory_space<vmem>>, %arg4: memref<32x256xf32, #tpu.memory_space<vmem>>) attributes {dimension_semantics = [#tpu.dimension_semantics<parallel>], iteration_bounds = array<i64: 2>, scalar_prefetch = 0 : i64, scratch_operands = 0 : i64, tpu.core_type = #tpu.core_type<tc>, window_params = [{pipeline_mode = #tpu.pipeline_mode<synchronous>, transform_indices = @transform_0, window_bounds = array<i64: 32, 256>}, {transform_indices = @transform_1, window_bounds = array<i64: 256, 256>}, {pipeline_mode = #tpu.pipeline_mode<synchronous>, transform_indices = @transform_2, window_bounds = array<i64: 32, 1>}, {transform_indices = @transform_3, window_bounds = array<i64: 32, 256>}]} {
    %c0 = arith.constant 0 : index
    %c0_0 = arith.constant 0 : index
    %0 = vector.load %arg1[%c0, %c0_0] : memref<32x256xbf16, #tpu.memory_space<vmem>>, vector<32x256xbf16>
    %c0_1 = arith.constant 0 : index
    %c0_2 = arith.constant 0 : index
    %1 = vector.load %arg2[%c0_1, %c0_2] : memref<256x256xbf16, #tpu.memory_space<vmem>>, vector<256x256xbf16>
    %cst = arith.constant dense<0.000000e+00> : vector<32x256xf32>
    %2 = tpu.matmul %0, %1, %cst {dimension_numbers = #tpu.dot_dimension_numbers<[1], [0], [0], [1], [0, 0, 1, 1], [], []>} : vector<32x256xbf16>, vector<256x256xbf16>, vector<32x256xf32> -> vector<32x256xf32>
    %c0_3 = arith.constant 0 : index
    %c0_4 = arith.constant 0 : index
    %3 = vector.load %arg3[%c0_3, %c0_4] : memref<32x1xf32, #tpu.memory_space<vmem>>, vector<32x1xf32>
    %4 = vector.broadcast %3 : vector<32x1xf32> to vector<32x256xf32>
    %5 = arith.addf %2, %4 : vector<32x256xf32>
    %cst_5 = arith.constant 0.000000e+00 : f32
    %6 = vector.broadcast %cst_5 : f32 to vector<32x256xf32>
    %7 = arith.cmpf ogt, %5, %6 : vector<32x256xf32>
    %cst_6 = arith.constant 2.000000e-01 : f32
    %8 = vector.broadcast %cst_6 : f32 to vector<32x256xf32>
    %9 = arith.mulf %8, %5 : vector<32x256xf32>
    %10 = arith.select %7, %5, %9 : vector<32x256xi1>, vector<32x256xf32>
    %c0_7 = arith.constant 0 : index
    %c0_8 = arith.constant 0 : index
    %11 = vector.load %arg4[%c0_7, %c0_8] : memref<32x256xf32, #tpu.memory_space<vmem>>, vector<32x256xf32>
    tpu.vector_store %arg4[%c0_7, %c0_8], %10 {strides = array<i32>} : memref<32x256xf32, #tpu.memory_space<vmem>>, vector<32x256xf32>,
    return
  }
  func.func @transform_0(%arg0: i32) -> (i32, i32) {
    %c0_i32 = arith.constant 0 : i32
    %c0_i32_0 = arith.constant 0 : i32
    %c0_i32_1 = arith.constant 0 : i32
    return %c0_i32, %c0_i32_0 : i32, i32
  }
  func.func @transform_1(%arg0: i32) -> (i32, i32) {
    %c0_i32 = arith.constant 0 : i32
    %c0_i32_0 = arith.constant 0 : i32
    return %c0_i32, %arg0 : i32, i32
  }
  func.func @transform_2(%arg0: i32) -> (i32, i32) {
    %c0_i32 = arith.constant 0 : i32
    %c0_i32_0 = arith.constant 0 : i32
    %c0_i32_1 = arith.constant 0 : i32
    return %c0_i32, %c0_i32_0 : i32, i32
  }
  func.func @transform_3(%arg0: i32) -> (i32, i32) {
    %c0_i32 = arith.constant 0 : i32
    %c0_i32_0 = arith.constant 0 : i32
    return %c0_i32, %arg0 : i32, i32
  }
}

module attributes {stable_mosaic.version = 11 : i64} {
  func.func @_matmul_bias_lrelu_kernel(%arg0: i32, %arg1: memref<64x512xbf16, #tpu.memory_space<vmem>>, %arg2: memref<512x128xbf16, #tpu.memory_space<vmem>>, %arg3: memref<64x1xf32, #tpu.memory_space<vmem>>, %arg4: memref<64x128xf32, #tpu.memory_space<vmem>>) attributes {dimension_semantics = [#tpu.dimension_semantics<parallel>], iteration_bounds = array<i64: 1>, scalar_prefetch = 0 : i64, scratch_operands = 0 : i64, tpu.core_type = #tpu.core_type<tc>, window_params = [{pipeline_mode = #tpu.pipeline_mode<synchronous>, transform_indices = @transform_0, window_bounds = array<i64: 64, 512>}, {transform_indices = @transform_1, window_bounds = array<i64: 512, 128>}, {pipeline_mode = #tpu.pipeline_mode<synchronous>, transform_indices = @transform_2, window_bounds = array<i64: 64, 1>}, {transform_indices = @transform_3, window_bounds = array<i64: 64, 128>}]} {
    %c0 = arith.constant 0 : index
    %c0_0 = arith.constant 0 : index
    %0 = vector.load %arg1[%c0, %c0_0] : memref<64x512xbf16, #tpu.memory_space<vmem>>, vector<64x512xbf16>
    %c0_1 = arith.constant 0 : index
    %c0_2 = arith.constant 0 : index
    %1 = vector.load %arg2[%c0_1, %c0_2] : memref<512x128xbf16, #tpu.memory_space<vmem>>, vector<512x128xbf16>
    %cst = arith.constant dense<0.000000e+00> : vector<64x128xf32>
    %2 = tpu.matmul %0, %1, %cst {dimension_numbers = #tpu.dot_dimension_numbers<[1], [0], [0], [1], [0, 0, 1, 1], [], []>} : vector<64x512xbf16>, vector<512x128xbf16>, vector<64x128xf32> -> vector<64x128xf32>
    %c0_3 = arith.constant 0 : index
    %c0_4 = arith.constant 0 : index
    %3 = vector.load %arg3[%c0_3, %c0_4] : memref<64x1xf32, #tpu.memory_space<vmem>>, vector<64x1xf32>
    %4 = vector.broadcast %3 : vector<64x1xf32> to vector<64x128xf32>
    %5 = arith.addf %2, %4 : vector<64x128xf32>
    %cst_5 = arith.constant 0.000000e+00 : f32
    %6 = vector.broadcast %cst_5 : f32 to vector<64x128xf32>
    %7 = arith.cmpf ogt, %5, %6 : vector<64x128xf32>
    %cst_6 = arith.constant 2.000000e-01 : f32
    %8 = vector.broadcast %cst_6 : f32 to vector<64x128xf32>
    %9 = arith.mulf %8, %5 : vector<64x128xf32>
    %10 = arith.select %7, %5, %9 : vector<64x128xi1>, vector<64x128xf32>
    %c0_7 = arith.constant 0 : index
    %c0_8 = arith.constant 0 : index
    %11 = vector.load %arg4[%c0_7, %c0_8] : memref<64x128xf32, #tpu.memory_space<vmem>>, vector<64x128xf32>
    tpu.vector_store %arg4[%c0_7, %c0_8], %10 {strides = array<i32>} : memref<64x128xf32, #tpu.memory_space<vmem>>, vector<64x128xf32>,
    return
  }
  func.func @transform_0(%arg0: i32) -> (i32, i32) {
    %c0_i32 = arith.constant 0 : i32
    %c0_i32_0 = arith.constant 0 : i32
    %c0_i32_1 = arith.constant 0 : i32
    return %c0_i32, %c0_i32_0 : i32, i32
  }
  func.func @transform_1(%arg0: i32) -> (i32, i32) {
    %c0_i32 = arith.constant 0 : i32
    %c0_i32_0 = arith.constant 0 : i32
    return %c0_i32, %arg0 : i32, i32
  }
  func.func @transform_2(%arg0: i32) -> (i32, i32) {
    %c0_i32 = arith.constant 0 : i32
    %c0_i32_0 = arith.constant 0 : i32
    %c0_i32_1 = arith.constant 0 : i32
    return %c0_i32, %c0_i32_0 : i32, i32
  }
  func.func @transform_3(%arg0: i32) -> (i32, i32) {
    %c0_i32 = arith.constant 0 : i32
    %c0_i32_0 = arith.constant 0 : i32
    return %c0_i32, %arg0 : i32, i32
  }
}

module attributes {stable_mosaic.version = 11 : i64} {
  func.func @_matmul_bias_lrelu_kernel(%arg0: i32, %arg1: memref<128x1024xbf16, #tpu.memory_space<vmem>>, %arg2: memref<1024x32xbf16, #tpu.memory_space<vmem>>, %arg3: memref<128x1xf32, #tpu.memory_space<vmem>>, %arg4: memref<128x32xf32, #tpu.memory_space<vmem>>) attributes {dimension_semantics = [#tpu.dimension_semantics<parallel>], iteration_bounds = array<i64: 1>, scalar_prefetch = 0 : i64, scratch_operands = 0 : i64, tpu.core_type = #tpu.core_type<tc>, window_params = [{pipeline_mode = #tpu.pipeline_mode<synchronous>, transform_indices = @transform_0, window_bounds = array<i64: 128, 1024>}, {transform_indices = @transform_1, window_bounds = array<i64: 1024, 32>}, {pipeline_mode = #tpu.pipeline_mode<synchronous>, transform_indices = @transform_2, window_bounds = array<i64: 128, 1>}, {transform_indices = @transform_3, window_bounds = array<i64: 128, 32>}]} {
    %c0 = arith.constant 0 : index
    %c0_0 = arith.constant 0 : index
    %0 = vector.load %arg1[%c0, %c0_0] : memref<128x1024xbf16, #tpu.memory_space<vmem>>, vector<128x1024xbf16>
    %c0_1 = arith.constant 0 : index
    %c0_2 = arith.constant 0 : index
    %1 = vector.load %arg2[%c0_1, %c0_2] : memref<1024x32xbf16, #tpu.memory_space<vmem>>, vector<1024x32xbf16>
    %cst = arith.constant dense<0.000000e+00> : vector<128x32xf32>
    %2 = tpu.matmul %0, %1, %cst {dimension_numbers = #tpu.dot_dimension_numbers<[1], [0], [0], [1], [0, 0, 1, 1], [], []>} : vector<128x1024xbf16>, vector<1024x32xbf16>, vector<128x32xf32> -> vector<128x32xf32>
    %c0_3 = arith.constant 0 : index
    %c0_4 = arith.constant 0 : index
    %3 = vector.load %arg3[%c0_3, %c0_4] : memref<128x1xf32, #tpu.memory_space<vmem>>, vector<128x1xf32>
    %4 = vector.broadcast %3 : vector<128x1xf32> to vector<128x32xf32>
    %5 = arith.addf %2, %4 : vector<128x32xf32>
    %cst_5 = arith.constant 0.000000e+00 : f32
    %6 = vector.broadcast %cst_5 : f32 to vector<128x32xf32>
    %7 = arith.cmpf ogt, %5, %6 : vector<128x32xf32>
    %cst_6 = arith.constant 2.000000e-01 : f32
    %8 = vector.broadcast %cst_6 : f32 to vector<128x32xf32>
    %9 = arith.mulf %8, %5 : vector<128x32xf32>
    %10 = arith.select %7, %5, %9 : vector<128x32xi1>, vector<128x32xf32>
    %c0_7 = arith.constant 0 : index
    %c0_8 = arith.constant 0 : index
    %11 = vector.load %arg4[%c0_7, %c0_8] : memref<128x32xf32, #tpu.memory_space<vmem>>, vector<128x32xf32>
    tpu.vector_store %arg4[%c0_7, %c0_8], %10 {strides = array<i32>} : memref<128x32xf32, #tpu.memory_space<vmem>>, vector<128x32xf32>,
    return
  }
  func.func @transform_0(%arg0: i32) -> (i32, i32) {
    %c0_i32 = arith.constant 0 : i32
    %c0_i32_0 = arith.constant 0 : i32
    %c0_i32_1 = arith.constant 0 : i32
    return %c0_i32, %c0_i32_0 : i32, i32
  }
  func.func @transform_1(%arg0: i32) -> (i32, i32) {
    %c0_i32 = arith.constant 0 : i32
    %c0_i32_0 = arith.constant 0 : i32
    return %c0_i32, %arg0 : i32, i32
  }
  func.func @transform_2(%arg0: i32) -> (i32, i32) {
    %c0_i32 = arith.constant 0 : i32
    %c0_i32_0 = arith.constant 0 : i32
    %c0_i32_1 = arith.constant 0 : i32
    return %c0_i32, %c0_i32_0 : i32, i32
  }
  func.func @transform_3(%arg0: i32) -> (i32, i32) {
    %c0_i32 = arith.constant 0 : i32
    %c0_i32_0 = arith.constant 0 : i32
    return %c0_i32, %arg0 : i32, i32
  }
}

module attributes {stable_mosaic.version = 11 : i64} {
  func.func @_matmul_bias_lrelu_kernel(%arg0: i32, %arg1: memref<64x1152xbf16, #tpu.memory_space<vmem>>, %arg2: memref<1152x32xbf16, #tpu.memory_space<vmem>>, %arg3: memref<64x1xf32, #tpu.memory_space<vmem>>, %arg4: memref<64x32xf32, #tpu.memory_space<vmem>>) attributes {dimension_semantics = [#tpu.dimension_semantics<parallel>], iteration_bounds = array<i64: 1>, scalar_prefetch = 0 : i64, scratch_operands = 0 : i64, tpu.core_type = #tpu.core_type<tc>, window_params = [{pipeline_mode = #tpu.pipeline_mode<synchronous>, transform_indices = @transform_0, window_bounds = array<i64: 64, 1152>}, {transform_indices = @transform_1, window_bounds = array<i64: 1152, 32>}, {pipeline_mode = #tpu.pipeline_mode<synchronous>, transform_indices = @transform_2, window_bounds = array<i64: 64, 1>}, {transform_indices = @transform_3, window_bounds = array<i64: 64, 32>}]} {
    %c0 = arith.constant 0 : index
    %c0_0 = arith.constant 0 : index
    %0 = vector.load %arg1[%c0, %c0_0] : memref<64x1152xbf16, #tpu.memory_space<vmem>>, vector<64x1152xbf16>
    %c0_1 = arith.constant 0 : index
    %c0_2 = arith.constant 0 : index
    %1 = vector.load %arg2[%c0_1, %c0_2] : memref<1152x32xbf16, #tpu.memory_space<vmem>>, vector<1152x32xbf16>
    %cst = arith.constant dense<0.000000e+00> : vector<64x32xf32>
    %2 = tpu.matmul %0, %1, %cst {dimension_numbers = #tpu.dot_dimension_numbers<[1], [0], [0], [1], [0, 0, 1, 1], [], []>} : vector<64x1152xbf16>, vector<1152x32xbf16>, vector<64x32xf32> -> vector<64x32xf32>
    %c0_3 = arith.constant 0 : index
    %c0_4 = arith.constant 0 : index
    %3 = vector.load %arg3[%c0_3, %c0_4] : memref<64x1xf32, #tpu.memory_space<vmem>>, vector<64x1xf32>
    %4 = vector.broadcast %3 : vector<64x1xf32> to vector<64x32xf32>
    %5 = arith.addf %2, %4 : vector<64x32xf32>
    %cst_5 = arith.constant 0.000000e+00 : f32
    %6 = vector.broadcast %cst_5 : f32 to vector<64x32xf32>
    %7 = arith.cmpf ogt, %5, %6 : vector<64x32xf32>
    %cst_6 = arith.constant 2.000000e-01 : f32
    %8 = vector.broadcast %cst_6 : f32 to vector<64x32xf32>
    %9 = arith.mulf %8, %5 : vector<64x32xf32>
    %10 = arith.select %7, %5, %9 : vector<64x32xi1>, vector<64x32xf32>
    %c0_7 = arith.constant 0 : index
    %c0_8 = arith.constant 0 : index
    %11 = vector.load %arg4[%c0_7, %c0_8] : memref<64x32xf32, #tpu.memory_space<vmem>>, vector<64x32xf32>
    tpu.vector_store %arg4[%c0_7, %c0_8], %10 {strides = array<i32>} : memref<64x32xf32, #tpu.memory_space<vmem>>, vector<64x32xf32>,
    return
  }
  func.func @transform_0(%arg0: i32) -> (i32, i32) {
    %c0_i32 = arith.constant 0 : i32
    %c0_i32_0 = arith.constant 0 : i32
    %c0_i32_1 = arith.constant 0 : i32
    return %c0_i32, %c0_i32_0 : i32, i32
  }
  func.func @transform_1(%arg0: i32) -> (i32, i32) {
    %c0_i32 = arith.constant 0 : i32
    %c0_i32_0 = arith.constant 0 : i32
    return %c0_i32, %arg0 : i32, i32
  }
  func.func @transform_2(%arg0: i32) -> (i32, i32) {
    %c0_i32 = arith.constant 0 : i32
    %c0_i32_0 = arith.constant 0 : i32
    %c0_i32_1 = arith.constant 0 : i32
    return %c0_i32, %c0_i32_0 : i32, i32
  }
  func.func @transform_3(%arg0: i32) -> (i32, i32) {
    %c0_i32 = arith.constant 0 : i32
    %c0_i32_0 = arith.constant 0 : i32
    return %c0_i32, %arg0 : i32, i32
  }
}

module attributes {stable_mosaic.version = 11 : i64} {
  func.func @_matmul_bias_lrelu_kernel(%arg0: i32, %arg1: memref<8x1024xbf16, #tpu.memory_space<vmem>>, %arg2: memref<1024x2xbf16, #tpu.memory_space<vmem>>, %arg3: memref<8x1xf32, #tpu.memory_space<vmem>>, %arg4: memref<8x2xf32, #tpu.memory_space<vmem>>) attributes {dimension_semantics = [#tpu.dimension_semantics<parallel>], iteration_bounds = array<i64: 1>, scalar_prefetch = 0 : i64, scratch_operands = 0 : i64, tpu.core_type = #tpu.core_type<tc>, window_params = [{pipeline_mode = #tpu.pipeline_mode<synchronous>, transform_indices = @transform_0, window_bounds = array<i64: 8, 1024>}, {transform_indices = @transform_1, window_bounds = array<i64: 1024, 2>}, {pipeline_mode = #tpu.pipeline_mode<synchronous>, transform_indices = @transform_2, window_bounds = array<i64: 8, 1>}, {transform_indices = @transform_3, window_bounds = array<i64: 8, 2>}]} {
    %c0 = arith.constant 0 : index
    %c0_0 = arith.constant 0 : index
    %0 = vector.load %arg1[%c0, %c0_0] : memref<8x1024xbf16, #tpu.memory_space<vmem>>, vector<8x1024xbf16>
    %c0_1 = arith.constant 0 : index
    %c0_2 = arith.constant 0 : index
    %1 = vector.load %arg2[%c0_1, %c0_2] : memref<1024x2xbf16, #tpu.memory_space<vmem>>, vector<1024x2xbf16>
    %cst = arith.constant dense<0.000000e+00> : vector<8x2xf32>
    %2 = tpu.matmul %0, %1, %cst {dimension_numbers = #tpu.dot_dimension_numbers<[1], [0], [0], [1], [0, 0, 1, 1], [], []>} : vector<8x1024xbf16>, vector<1024x2xbf16>, vector<8x2xf32> -> vector<8x2xf32>
    %c0_3 = arith.constant 0 : index
    %c0_4 = arith.constant 0 : index
    %3 = vector.load %arg3[%c0_3, %c0_4] : memref<8x1xf32, #tpu.memory_space<vmem>>, vector<8x1xf32>
    %4 = vector.broadcast %3 : vector<8x1xf32> to vector<8x2xf32>
    %5 = arith.addf %2, %4 : vector<8x2xf32>
    %c0_5 = arith.constant 0 : index
    %c0_6 = arith.constant 0 : index
    %6 = vector.load %arg4[%c0_5, %c0_6] : memref<8x2xf32, #tpu.memory_space<vmem>>, vector<8x2xf32>
    tpu.vector_store %arg4[%c0_5, %c0_6], %5 {strides = array<i32>} : memref<8x2xf32, #tpu.memory_space<vmem>>, vector<8x2xf32>,
    return
  }
  func.func @transform_0(%arg0: i32) -> (i32, i32) {
    %c0_i32 = arith.constant 0 : i32
    %c0_i32_0 = arith.constant 0 : i32
    %c0_i32_1 = arith.constant 0 : i32
    return %c0_i32, %c0_i32_0 : i32, i32
  }
  func.func @transform_1(%arg0: i32) -> (i32, i32) {
    %c0_i32 = arith.constant 0 : i32
    %c0_i32_0 = arith.constant 0 : i32
    return %c0_i32, %arg0 : i32, i32
  }
  func.func @transform_2(%arg0: i32) -> (i32, i32) {
    %c0_i32 = arith.constant 0 : i32
    %c0_i32_0 = arith.constant 0 : i32
    %c0_i32_1 = arith.constant 0 : i32
    return %c0_i32, %c0_i32_0 : i32, i32
  }
  func.func @transform_3(%arg0: i32) -> (i32, i32) {
    %c0_i32 = arith.constant 0 : i32
    %c0_i32_0 = arith.constant 0 : i32
    return %c0_i32, %arg0 : i32, i32
  }
}

module attributes {stable_mosaic.version = 11 : i64} {
  func.func @_matmul_bias_lrelu_kernel(%arg0: i32, %arg1: memref<64x864xbf16, #tpu.memory_space<vmem>>, %arg2: memref<864x32xbf16, #tpu.memory_space<vmem>>, %arg3: memref<64x1xf32, #tpu.memory_space<vmem>>, %arg4: memref<64x32xf32, #tpu.memory_space<vmem>>) attributes {dimension_semantics = [#tpu.dimension_semantics<parallel>], iteration_bounds = array<i64: 1>, scalar_prefetch = 0 : i64, scratch_operands = 0 : i64, tpu.core_type = #tpu.core_type<tc>, window_params = [{pipeline_mode = #tpu.pipeline_mode<synchronous>, transform_indices = @transform_0, window_bounds = array<i64: 64, 864>}, {transform_indices = @transform_1, window_bounds = array<i64: 864, 32>}, {pipeline_mode = #tpu.pipeline_mode<synchronous>, transform_indices = @transform_2, window_bounds = array<i64: 64, 1>}, {transform_indices = @transform_3, window_bounds = array<i64: 64, 32>}]} {
    %c0 = arith.constant 0 : index
    %c0_0 = arith.constant 0 : index
    %0 = vector.load %arg1[%c0, %c0_0] : memref<64x864xbf16, #tpu.memory_space<vmem>>, vector<64x864xbf16>
    %c0_1 = arith.constant 0 : index
    %c0_2 = arith.constant 0 : index
    %1 = vector.load %arg2[%c0_1, %c0_2] : memref<864x32xbf16, #tpu.memory_space<vmem>>, vector<864x32xbf16>
    %cst = arith.constant dense<0.000000e+00> : vector<64x32xf32>
    %2 = tpu.matmul %0, %1, %cst {dimension_numbers = #tpu.dot_dimension_numbers<[1], [0], [0], [1], [0, 0, 1, 1], [], []>} : vector<64x864xbf16>, vector<864x32xbf16>, vector<64x32xf32> -> vector<64x32xf32>
    %c0_3 = arith.constant 0 : index
    %c0_4 = arith.constant 0 : index
    %3 = vector.load %arg3[%c0_3, %c0_4] : memref<64x1xf32, #tpu.memory_space<vmem>>, vector<64x1xf32>
    %4 = vector.broadcast %3 : vector<64x1xf32> to vector<64x32xf32>
    %5 = arith.addf %2, %4 : vector<64x32xf32>
    %cst_5 = arith.constant 0.000000e+00 : f32
    %6 = vector.broadcast %cst_5 : f32 to vector<64x32xf32>
    %7 = arith.cmpf ogt, %5, %6 : vector<64x32xf32>
    %cst_6 = arith.constant 2.000000e-01 : f32
    %8 = vector.broadcast %cst_6 : f32 to vector<64x32xf32>
    %9 = arith.mulf %8, %5 : vector<64x32xf32>
    %10 = arith.select %7, %5, %9 : vector<64x32xi1>, vector<64x32xf32>
    %c0_7 = arith.constant 0 : index
    %c0_8 = arith.constant 0 : index
    %11 = vector.load %arg4[%c0_7, %c0_8] : memref<64x32xf32, #tpu.memory_space<vmem>>, vector<64x32xf32>
    tpu.vector_store %arg4[%c0_7, %c0_8], %10 {strides = array<i32>} : memref<64x32xf32, #tpu.memory_space<vmem>>, vector<64x32xf32>,
    return
  }
  func.func @transform_0(%arg0: i32) -> (i32, i32) {
    %c0_i32 = arith.constant 0 : i32
    %c0_i32_0 = arith.constant 0 : i32
    %c0_i32_1 = arith.constant 0 : i32
    return %c0_i32, %c0_i32_0 : i32, i32
  }
  func.func @transform_1(%arg0: i32) -> (i32, i32) {
    %c0_i32 = arith.constant 0 : i32
    %c0_i32_0 = arith.constant 0 : i32
    return %c0_i32, %arg0 : i32, i32
  }
  func.func @transform_2(%arg0: i32) -> (i32, i32) {
    %c0_i32 = arith.constant 0 : i32
    %c0_i32_0 = arith.constant 0 : i32
    %c0_i32_1 = arith.constant 0 : i32
    return %c0_i32, %c0_i32_0 : i32, i32
  }
  func.func @transform_3(%arg0: i32) -> (i32, i32) {
    %c0_i32 = arith.constant 0 : i32
    %c0_i32_0 = arith.constant 0 : i32
    return %c0_i32, %arg0 : i32, i32
  }
}

</mosaic_0001>

<bundles_post_ra>
// kernel: d_net128_la_forward.9
= control target key start
LH: loop header
LB: loop body
LE: loop exit
PB: predicated region body
PF: predicated region fallthrough
CT: control target
= control target key end

     0   :  { %s766_s12 = smov 0   ;;  %s768_s13 = smov 0   ;;  %s921_s0 = inlined_call_operand.vmem [shape: bf16[8,48], index: 0, kind: input, shape index: {}]   ;;  %s922_s1 = inlined_call_operand.vmem [shape: bf16[48,8192], index: 1, kind: input, shape index: {}]   ;;  %s923_s2 = inlined_call_operand.vmem [shape: f32[8,1], index: 2, kind: input, shape index: {}]   ;;  %s924_s3 = inlined_call_operand.vmem [shape: f32[8,8192], index: 3, kind: output, shape index: {}]  }
   0x1   :  { %s770_s14 = smov 0  }
   0x2 LB: > { %s653_s15 = sadd.s32 4294967295, %s743_s14   ;;  %s783_s16 = sadd.s32 1, %s743_s14   ;;  %s743_s14 = sphi %s770_s14, %s927_s14   ;;  %s739_s13 = sphi %s768_s13, %s926_s13   ;;  %s735_s12 = sphi %s766_s12, %s925_s12  }
   0x3   : > { %s38_s17 = ssub.s32 %s743_s14, %s783_s16  ;;  %s41_s18 = sadd.s32 1, %s739_s13 }
   0x4   : > { %p39_p0 = scmp.eq.s32.totalorder %s38_s17, 0  ;;  %p48_p1 = scmp.ne.s32.totalorder %s739_s13, %s735_s12 }
   0x5   : > { %p49_p2 = scmp.eq.s32.totalorder %s743_s14, 0  ;;  %p656_p4 = scmp.ge.s32.totalorder %s743_s14, 8 }
   0x6   : > { %s792_s19 = scalar_select %p39_p0, %s739_s13, %s41_s18  }
   0x7   : > { %p50_p3 = por %p49_p2, %p48_p1  ;;  %127 = sbr.rel (%p656_p4) target bundleno = 31 (0x1f), region = 24 }
   0xe   : > { %130 = sbr.rel (!%p50_p3) target bundleno = 31 (0x1f), region = 28  ;;  %s132_s20 = sand.u32 (%p50_p3), 1, %s739_s13  }
   0xf   : > { %s692_s21 = sshll.u32 (%p50_p3), %s743_s14, 5  ;;  %s693_s22 = smul.u32 (%p50_p3), 192, %s132_s20 }
  0x10   : > { %s800_s25 = scalar_lea.vmem (%p50_p3), %s922_s1, %s692_s21 }
  0x11   : > { %v150_v0 = vld [vmem:[%s800_s25] sm:$0xff] (%p50_p3)  ;;  %v152_v1 = vld [vmem:[%s800_s25 + $0x8] sm:$0xff] (%p50_p3)  ;;  %v154_v2 = vld [vmem:[%s800_s25 + $0x10] sm:$0xff] (%p50_p3)  ;;  %s808_s26 = scalar_lea.vmem (%p50_p3), [#allocation2], %s693_s22 }
  0x12   : > { %v156_v3 = vld [vmem:[%s800_s25 + $0x18] sm:$0xff] (%p50_p3)  ;;  %v158_v4 = vld [vmem:[%s800_s25 + $0x100] sm:$0xff] (%p50_p3)  ;;  %v160_v5 = vld [vmem:[%s800_s25 + $0x108] sm:$0xff] (%p50_p3)  ;;  %151 = vst [vmem:[%s808_s26] sm:$0xff] (%p50_p3), %v150_v0 }
  0x13   : > { %153 = vst [vmem:[%s808_s26 + $0x8] sm:$0xff] (%p50_p3), %v152_v1  ;;  %155 = vst [vmem:[%s808_s26 + $0x10] sm:$0xff] (%p50_p3), %v154_v2  ;;  %v162_v6 = vld [vmem:[%s800_s25 + $0x110] sm:$0xff] (%p50_p3)  ;;  %v164_v7 = vld [vmem:[%s800_s25 + $0x118] sm:$0xff] (%p50_p3) }
  0x14   : > { %157 = vst [vmem:[%s808_s26 + $0x18] sm:$0xff] (%p50_p3), %v156_v3  ;;  %159 = vst [vmem:[%s808_s26 + $0x20] sm:$0xff] (%p50_p3), %v158_v4  ;;  %v166_v8 = vld [vmem:[%s800_s25 + $0x200] sm:$0xff] (%p50_p3)  ;;  %v168_v9 = vld [vmem:[%s800_s25 + $0x208] sm:$0xff] (%p50_p3) }
  0x15   : > { %161 = vst [vmem:[%s808_s26 + $0x28] sm:$0xff] %v160_v5  ;;  %163 = vst [vmem:[%s808_s26 + $0x30] sm:$0xff] %v162_v6  ;;  %v170_v10 = vld [vmem:[%s800_s25 + $0x210] sm:$0xff]  ;;  %v172_v11 = vld [vmem:[%s800_s25 + $0x218] sm:$0xff] }
  0x16   : > { %165 = vst [vmem:[%s808_s26 + $0x38] sm:$0xff] %v164_v7  ;;  %167 = vst [vmem:[%s808_s26 + $0x40] sm:$0xff] %v166_v8  ;;  %v174_v12 = vld [vmem:[%s800_s25 + $0x300] sm:$0xff]  ;;  %v176_v13 = vld [vmem:[%s800_s25 + $0x308] sm:$0xff] }
  0x17   : > { %169 = vst [vmem:[%s808_s26 + $0x48] sm:$0xff] %v168_v9  ;;  %171 = vst [vmem:[%s808_s26 + $0x50] sm:$0xff] %v170_v10  ;;  %v178_v14 = vld [vmem:[%s800_s25 + $0x310] sm:$0xff]  ;;  %v180_v15 = vld [vmem:[%s800_s25 + $0x318] sm:$0xff] }
  0x18   : > { %173 = vst [vmem:[%s808_s26 + $0x58] sm:$0xff] %v172_v11  ;;  %175 = vst [vmem:[%s808_s26 + $0x60] sm:$0xff] %v174_v12  ;;  %v182_v16 = vld [vmem:[%s800_s25 + $0x400] sm:$0xff]  ;;  %v184_v17 = vld [vmem:[%s800_s25 + $0x408] sm:$0xff] }
  0x19   : > { %177 = vst [vmem:[%s808_s26 + $0x68] sm:$0xff] %v176_v13  ;;  %179 = vst [vmem:[%s808_s26 + $0x70] sm:$0xff] %v178_v14  ;;  %v186_v18 = vld [vmem:[%s800_s25 + $0x410] sm:$0xff]  ;;  %v188_v19 = vld [vmem:[%s800_s25 + $0x418] sm:$0xff] }
  0x1a   : > { %181 = vst [vmem:[%s808_s26 + $0x78] sm:$0xff] %v180_v15  ;;  %183 = vst [vmem:[%s808_s26 + $0x80] sm:$0xff] %v182_v16  ;;  %v190_v20 = vld [vmem:[%s800_s25 + $0x500] sm:$0xff]  ;;  %v192_v21 = vld [vmem:[%s800_s25 + $0x508] sm:$0xff] }
  0x1b   : > { %185 = vst [vmem:[%s808_s26 + $0x88] sm:$0xff] %v184_v17  ;;  %187 = vst [vmem:[%s808_s26 + $0x90] sm:$0xff] %v186_v18  ;;  %v194_v22 = vld [vmem:[%s800_s25 + $0x510] sm:$0xff]  ;;  %v196_v23 = vld [vmem:[%s800_s25 + $0x518] sm:$0xff] }
  0x1c   : > { %189 = vst [vmem:[%s808_s26 + $0x98] sm:$0xff] %v188_v19  ;;  %191 = vst [vmem:[%s808_s26 + $0xa0] sm:$0xff] %v190_v20 }
  0x1d   : > { %193 = vst [vmem:[%s808_s26 + $0xa8] sm:$0xff] %v192_v21  ;;  %195 = vst [vmem:[%s808_s26 + $0xb0] sm:$0xff] %v194_v22 }
  0x1e   : > { %197 = vst [vmem:[%s808_s26 + $0xb8] sm:$0xff] %v196_v23 }
  0x1f PF: > { %p659_p5 = scmp.ge.s32.totalorder %s743_s14, 1  ;;  %p202_p6 = scmp.lt.s32.totalorder %s743_s14, 9 }
  0x21   : > { %p203_p7 = pnand %p659_p5, %p202_p6 }
  0x22   : > { %s209_s27 = sand.u32 (!%p203_p7), 1, %s735_s12   ;;  %v265_v24 = vld [vmem:[%s923_s2] sm:$0xff] (!%p203_p7)  ;;  %v745_v25 = vmov (!%p203_p7), 0   ;;  %vm391_vm0 = vcmask (!%p203_p7), 392192   ;;  %s660_s7 = sshll.u32 (!%p203_p7), %s653_s15, 3 }
  0x23   : > { %206 = sbr.rel (%p203_p7) target bundleno = 287 (0x11f), region = 51  ;;  %427 = vmatprep.mubr.bf16.mxu0 (!%p203_p7), %v745_v25  ;;  %468 = vmatprep.mubr.bf16.mxu1 (!%p203_p7), %v745_v25  ;;  %v240_v60 = vld [vmem:[%s921_s0] sm:$0xf] (!%p203_p7)  ;;  %p234_p8 = scmp.lt.s32.totalorder (!%p203_p7), %s660_s7, 63 }
  0x24   : > { %s694_s30 = smul.u32 (!%p203_p7), 192, %s209_s27  ;;  %720 = vset.pattern.permute.xlu0 (!%p203_p7), %v745_v25 }
  0x25   : > { %268 = vperm.xlu0 (!%p203_p7), %720, %v265_v24  }
  0x26   : > { %s861_s4 = scalar_lea.vmem (!%p203_p7), [#allocation2], %s694_s30 }
  0x27   : > { %v241_v26 = vld [vmem:[%s861_s4] sm:$0xff] (!%p203_p7)  ;;  %v242_v28 = vld [vmem:[%s861_s4 + $0x8] sm:$0xff] (!%p203_p7)  ;;  %v243_v48 = vld [vmem:[%s861_s4 + $0x10] sm:$0xff] (!%p203_p7) }
  0x28   : > { %v245_v27 = vld [vmem:[%s861_s4 + $0x20] sm:$0xff] (!%p203_p7)  ;;  %v246_v30 = vld [vmem:[%s861_s4 + $0x28] sm:$0xff] (!%p203_p7)  ;;  %v247_v49 = vld [vmem:[%s861_s4 + $0x30] sm:$0xff] (!%p203_p7) }
  0x29   : > { %v663_v29 = vcombine.high (!%p203_p7), %v241_v26, %v245_v27  ;;  %v662_v31 = vcombine.low (!%p203_p7), %v241_v26, %v245_v27  ;;  %v249_v32 = vld [vmem:[%s861_s4 + $0x40] sm:$0xff] (!%p203_p7)  ;;  %v665_v34 = vcombine.high (!%p203_p7), %v242_v28, %v246_v30  ;;  %v664_v35 = vcombine.low (!%p203_p7), %v242_v28, %v246_v30  ;;  %v250_v37 = vld [vmem:[%s861_s4 + $0x48] sm:$0xff] (!%p203_p7)  ;;  %v244_v50 = vld [vmem:[%s861_s4 + $0x18] sm:$0xff] (!%p203_p7) }
  0x2a   : > { %v253_v33 = vld [vmem:[%s861_s4 + $0x60] sm:$0xff]  ;;  %v254_v38 = vld [vmem:[%s861_s4 + $0x68] sm:$0xff]  ;;  %v248_v51 = vld [vmem:[%s861_s4 + $0x38] sm:$0xff]  ;;  %v667_v54 = vcombine.high %v243_v48, %v247_v49  ;;  %v666_v61 = vcombine.low %v243_v48, %v247_v49  ;;  %s929_s7 = smov (!%p234_p8, %s660_s7), 63 }
  0x2b   : > { %v671_v36 = vcombine.high %v249_v32, %v253_v33  ;;  %v257_v39 = vld [vmem:[%s861_s4 + $0x80] sm:$0xff]  ;;  %395 = vmatprep.subr.bf16.mxu0 %v663_v29  ;;  %v673_v40 = vcombine.high %v250_v37, %v254_v38  ;;  %v258_v42 = vld [vmem:[%s861_s4 + $0x88] sm:$0xff]  ;;  %436 = vmatprep.subr.bf16.mxu1 %v665_v34  ;;  %v670_v44 = vcombine.low %v249_v32, %v253_v33  ;;  %v251_v56 = vld [vmem:[%s861_s4 + $0x50] sm:$0xff]  ;;  %s661_s8 = sshll.u32 %s929_s7, 3 }
  0x2c   : > { %v261_v41 = vld [vmem:[%s861_s4 + $0xa0] sm:$0xff]  ;;  %v262_v43 = vld [vmem:[%s861_s4 + $0xa8] sm:$0xff]  ;;  %396 = vmatpush1.bf16.msra.mxu0 %v662_v31  ;;  %437 = vmatpush1.bf16.msra.mxu1 %v664_v35  ;;  %v672_v45 = vcombine.low %v250_v37, %v254_v38  ;;  %v669_v55 = vcombine.high %v244_v50, %v248_v51  ;;  %v255_v57 = vld [vmem:[%s861_s4 + $0x70] sm:$0xff]  ;;  %v668_v62 = vcombine.low %v244_v50, %v248_v51  ;;  %s901_s11 = scalar_lea.vmem %s924_s3, %s661_s8 }
  0x2d   : > { %397 = vmatprep.subr.bf16.mxu0 %v671_v36  ;;  %v679_v46 = vcombine.high %v257_v39, %v261_v41  ;;  %438 = vmatprep.subr.bf16.mxu1 %v673_v40  ;;  %v681_v47 = vcombine.high %v258_v42, %v262_v43  ;;  %v678_v52 = vcombine.low %v257_v39, %v261_v41  ;;  %v252_v58 = vld [vmem:[%s861_s4 + $0x58] sm:$0xff]  ;;  %v259_v1 = vld [vmem:[%s861_s4 + $0x90] sm:$0xff] }
  0x2e   : > { %v680_v53 = vcombine.low %v258_v42, %v262_v43  ;;  %v256_v59 = vld [vmem:[%s861_s4 + $0x78] sm:$0xff]  ;;  %v675_v63 = vcombine.high %v251_v56, %v255_v57  ;;  %v263_v2 = vld [vmem:[%s861_s4 + $0xb0] sm:$0xff]  ;;  %v674_v5 = vcombine.low %v251_v56, %v255_v57 }
  0x2f   : > { %v677_v0 = vcombine.high %v252_v58, %v256_v59  ;;  %v260_v3 = vld [vmem:[%s861_s4 + $0x98] sm:$0xff]  ;;  %v676_v6 = vcombine.low %v252_v58, %v256_v59  ;;  %v683_v7 = vcombine.high %v259_v1, %v263_v2  ;;  %v682_v9 = vcombine.low %v259_v1, %v263_v2 }
  0x30   : > { %398 = vmatpush1.bf16.msra.mxu0 %v670_v44  ;;  %439 = vmatpush1.bf16.msra.mxu1 %v672_v45  ;;  %v264_v4 = vld [vmem:[%s861_s4 + $0xb8] sm:$0xff] }
  0x31   : > { %399 = vmatprep.subr.bf16.mxu0 %v679_v46  ;;  %440 = vmatprep.subr.bf16.mxu1 %v681_v47  ;;  %v685_v8 = vcombine.high %v260_v3, %v264_v4  ;;  %v684_v10 = vcombine.low %v260_v3, %v264_v4 }
  0x34   : > { %400 = vmatpush1.bf16.msra.mxu0 %v678_v52  ;;  %441 = vmatpush1.bf16.msra.mxu1 %v680_v53 }
  0x35   : > { %477 = vmatprep.subr.bf16.mxu0 %v667_v54  ;;  %518 = vmatprep.subr.bf16.mxu1 %v669_v55 }
  0x37   : > { %686 = vmatmul.mubr.msk.bf16.vlgmr.msra.gmra.mrb[0].mxu0 %vm391_vm0, %v240_v60  ;;  %687 = vmatmul.mubr.msk.bf16.vlgmr.msra.gmra.mrb[0].mxu1 %vm391_vm0, %v240_v60 }
  0x38   : > { %478 = vmatpush1.bf16.msra.mxu0 %v666_v61  ;;  %519 = vmatpush1.bf16.msra.mxu1 %v668_v62 }
  0x39   : > { %479 = vmatprep.subr.bf16.mxu0 %v675_v63  ;;  %520 = vmatprep.subr.bf16.mxu1 %v677_v0 }
  0x3a   : > { %509 = vmatprep.mubr.bf16.mxu0 %v745_v25  ;;  %550 = vmatprep.mubr.bf16.mxu1 %v745_v25 }
  0x3c   : > { %480 = vmatpush1.bf16.msra.mxu0 %v674_v5  ;;  %521 = vmatpush1.bf16.msra.mxu1 %v676_v6 }
  0x3d   : > { %481 = vmatprep.subr.bf16.mxu0 %v683_v7  ;;  %522 = vmatprep.subr.bf16.mxu1 %v685_v8 }
  0x40   : > { %482 = vmatpush1.bf16.msra.mxu0 %v682_v9  ;;  %523 = vmatpush1.bf16.msra.mxu1 %v684_v10 }
  0x43   : > { %688 = vmatmul.mubr.msk.bf16.vlgmr.msra.gmra.mrb[4].mxu0 %vm391_vm0, %v240_v60  ;;  %689 = vmatmul.mubr.msk.bf16.vlgmr.msra.gmra.mrb[4].mxu1 %vm391_vm0, %v240_v60 }
  0xa4   : > { %v269_v11 = vpop.permute.xlu0 %268 }
 0x10a   : > { %v429_v12 = vpop.f32.mrb[0].mxu0  ;;  %v470_v14 = vpop.f32.mrb[0].mxu1 }
 0x10b   : > { %v430_v13 = vadd.f32 %v429_v12, %v269_v11  ;;  %v431_v15 = vpop.f32.mrb[1].mxu0  ;;  %v471_v16 = vadd.f32 %v470_v14, %v269_v11  ;;  %v472_v18 = vpop.f32.mrb[1].mxu1 }
 0x10c   : > { %v432_v17 = vadd.f32 %v431_v15, %v269_v11  ;;  %v433_v19 = vpop.f32.mrb[2].mxu0  ;;  %v473_v21 = vadd.f32 %v472_v18, %v269_v11  ;;  %v474_v22 = vpop.f32.mrb[2].mxu1 }
 0x10d   : > { %vm559_vm1 = vcmp.gt.f32.partialorder %v430_v13, 0.0  ;;  %v567_v20 = vmul.f32 0.2, %v430_v13  ;;  %v434_v23 = vpop.f32.mrb[3].mxu0  ;;  %vm561_vm2 = vcmp.gt.f32.partialorder %v471_v16, 0.0  ;;  %v475_v28 = vpop.f32.mrb[3].mxu1 }
 0x10e   : > { %v569_v24 = vmul.f32 0.2, %v471_v16  ;;  %vm560_vm3 = vcmp.gt.f32.partialorder %v432_v17, 0.0  ;;  %v568_v25 = vmul.f32 0.2, %v432_v17  ;;  %vm562_vm4 = vcmp.gt.f32.partialorder %v473_v21, 0.0 }
 0x10f   : > { %v575_v26 = vsel %vm559_vm1, %v430_v13, %v567_v20  ;;  %v570_v27 = vmul.f32 0.2, %v473_v21 }
 0x110   : > { %583 = vst [vmem:[%s901_s11] sm:$0xff] %v575_v26  ;;  %v577_v29 = vsel %vm561_vm2, %v471_v16, %v569_v24  ;;  %v576_v30 = vsel %vm560_vm3, %v432_v17, %v568_v25 }
 0x111   : > { %585 = vst [vmem:[%s901_s11 + $0x10] sm:$0xff] %v577_v29  ;;  %584 = vst [vmem:[%s901_s11 + $0x8] sm:$0xff] %v576_v30  ;;  %v578_v31 = vsel %vm562_vm4, %v473_v21, %v570_v27 }
 0x112   : > { %586 = vst [vmem:[%s901_s11 + $0x18] sm:$0xff] %v578_v31 }
 0x116   : > { %v511_v32 = vpop.f32.mrb[4].mxu0  ;;  %v552_v34 = vpop.f32.mrb[4].mxu1 }
 0x117   : > { %v512_v33 = vadd.f32 %v511_v32, %v269_v11  ;;  %v513_v35 = vpop.f32.mrb[5].mxu0  ;;  %v553_v36 = vadd.f32 %v552_v34, %v269_v11  ;;  %v554_v38 = vpop.f32.mrb[5].mxu1 }
 0x118   : > { %v514_v37 = vadd.f32 %v513_v35, %v269_v11  ;;  %v515_v39 = vpop.f32.mrb[6].mxu0  ;;  %v555_v41 = vadd.f32 %v554_v38, %v269_v11  ;;  %v556_v42 = vpop.f32.mrb[6].mxu1 }
 0x119   : > { %vm563_vm5 = vcmp.gt.f32.partialorder %v512_v33, 0.0  ;;  %v571_v40 = vmul.f32 0.2, %v512_v33  ;;  %v516_v43 = vpop.f32.mrb[7].mxu0  ;;  %vm565_vm6 = vcmp.gt.f32.partialorder %v553_v36, 0.0  ;;  %v557_v48 = vpop.f32.mrb[7].mxu1 }
 0x11a   : > { %v573_v44 = vmul.f32 0.2, %v553_v36  ;;  %vm564_vm7 = vcmp.gt.f32.partialorder %v514_v37, 0.0  ;;  %v572_v45 = vmul.f32 0.2, %v514_v37  ;;  %vm566_vm8 = vcmp.gt.f32.partialorder %v555_v41, 0.0 }
 0x11b   : > { %v579_v46 = vsel %vm563_vm5, %v512_v33, %v571_v40  ;;  %v574_v47 = vmul.f32 0.2, %v555_v41 }
 0x11c   : > { %587 = vst [vmem:[%s901_s11 + $0x20] sm:$0xff] %v579_v46  ;;  %v581_v49 = vsel %vm565_vm6, %v553_v36, %v573_v44  ;;  %v580_v50 = vsel %vm564_vm7, %v514_v37, %v572_v45 }
 0x11d   : > { %589 = vst [vmem:[%s901_s11 + $0x30] sm:$0xff] %v581_v49  ;;  %588 = vst [vmem:[%s901_s11 + $0x28] sm:$0xff] %v580_v50  ;;  %v582_v51 = vsel %vm566_vm8, %v555_v41, %v574_v47 }
 0x11e   : > { %590 = vst [vmem:[%s901_s11 + $0x38] sm:$0xff] %v582_v51 }
 0x11f PF: > { %p10_p9 = scmp.ge.s32.totalorder %s783_s16, 10   ;;  %s925_s12 = smov %s739_s13 }
 0x120   : > { %s926_s13 = smov %s792_s19  ;;  %s927_s14 = smov %s783_s16 }
 0x121   :  { %12 = sbr.rel (!%p10_p9) target bundleno = 2 (0x2), region = 90 }

// kernel: d_net128_la_forward.10
= control target key start
LH: loop header
LB: loop body
LE: loop exit
PB: predicated region body
PF: predicated region fallthrough
CT: control target
= control target key end

     0   :  { %s847_s12 = smov 0   ;;  %s849_s13 = smov 0   ;;  %s1040_s0 = inlined_call_operand.vmem [shape: bf16[16,128], index: 0, kind: input, shape index: {}]   ;;  %s1041_s1 = inlined_call_operand.vmem [shape: bf16[128,2048], index: 1, kind: input, shape index: {}]   ;;  %s1042_s2 = inlined_call_operand.vmem [shape: f32[16,1], index: 2, kind: input, shape index: {}]   ;;  %s1043_s3 = inlined_call_operand.vmem [shape: f32[16,2048], index: 3, kind: output, shape index: {}]  }
   0x1   :  { %s851_s14 = smov 0  }
   0x2 LB: > { %s677_s15 = sadd.s32 4294967295, %s824_s14   ;;  %s864_s16 = sadd.s32 1, %s824_s14   ;;  %s824_s14 = sphi %s851_s14, %s1047_s14   ;;  %s820_s13 = sphi %s849_s13, %s1046_s13   ;;  %s816_s12 = sphi %s847_s12, %s1045_s12  }
   0x3   : > { %s38_s17 = ssub.s32 %s824_s14, %s864_s16  ;;  %s41_s18 = sadd.s32 1, %s820_s13 }
   0x4   : > { %p39_p0 = scmp.eq.s32.totalorder %s38_s17, 0  ;;  %p48_p1 = scmp.ne.s32.totalorder %s820_s13, %s816_s12 }
   0x5   : > { %p49_p2 = scmp.eq.s32.totalorder %s824_s14, 0  ;;  %p99_p3 = scmp.eq.s32.totalorder %s677_s15, 3 }
   0x6   : > { %s875_s19 = scalar_select %p39_p0, %s820_s13, %s41_s18  }
   0x7   : > { %p50_p4 = por %p49_p2, %p48_p1  ;;  %p877_p5 = por %p99_p3, %p48_p1 }
   0x8   : > { %p680_p6 = scmp.ge.s32.totalorder %s824_s14, 4 }
   0xa   : > { %127 = sbr.rel (%p680_p6) target bundleno = 37 (0x25), region = 24 }
  0x11   : > { %130 = sbr.rel (!%p50_p4) target bundleno = 37 (0x25), region = 28  ;;  %s132_s21 = sand.u32 (%p50_p4), 1, %s820_s13  }
  0x12   : > { %s725_s22 = sshll.u32 (%p50_p4), %s824_s14, 4  ;;  %s681_s23 = sshll.u32 (%p50_p4), %s132_s21, 8 }
  0x13   : > { %s887_s26 = scalar_lea.vmem (%p50_p4), %s1041_s1, %s725_s22  ;;  %s892_s27 = scalar_lea.vmem (%p50_p4), [#allocation2], %s681_s23 }
  0x14   : > { %v150_v0 = vld [vmem:[%s887_s26] sm:$0xff] (%p50_p4)  ;;  %v152_v1 = vld [vmem:[%s887_s26 + $0x8] sm:$0xff] (%p50_p4) }
  0x15   : > { %v154_v2 = vld [vmem:[%s887_s26 + $0x40] sm:$0xff] (%p50_p4)  ;;  %151 = vst [vmem:[%s892_s27] sm:$0xff] (%p50_p4), %v150_v0  ;;  %153 = vst [vmem:[%s892_s27 + $0x8] sm:$0xff] (%p50_p4), %v152_v1  ;;  %v156_v3 = vld [vmem:[%s887_s26 + $0x48] sm:$0xff] (%p50_p4) }
  0x16   : > { %155 = vst [vmem:[%s892_s27 + $0x10] sm:$0xff] (%p50_p4), %v154_v2  ;;  %v158_v4 = vld [vmem:[%s887_s26 + $0x80] sm:$0xff] (%p50_p4)  ;;  %v160_v5 = vld [vmem:[%s887_s26 + $0x88] sm:$0xff] (%p50_p4)  ;;  %157 = vst [vmem:[%s892_s27 + $0x18] sm:$0xff] (%p50_p4), %v156_v3 }
  0x17   : > { %159 = vst [vmem:[%s892_s27 + $0x20] sm:$0xff] (%p50_p4), %v158_v4  ;;  %161 = vst [vmem:[%s892_s27 + $0x28] sm:$0xff] (%p50_p4), %v160_v5  ;;  %v162_v6 = vld [vmem:[%s887_s26 + $0xc0] sm:$0xff] (%p50_p4)  ;;  %v164_v7 = vld [vmem:[%s887_s26 + $0xc8] sm:$0xff] (%p50_p4) }
  0x18   : > { %v166_v8 = vld [vmem:[%s887_s26 + $0x100] sm:$0xff]  ;;  %163 = vst [vmem:[%s892_s27 + $0x30] sm:$0xff] %v162_v6  ;;  %165 = vst [vmem:[%s892_s27 + $0x38] sm:$0xff] %v164_v7  ;;  %v168_v9 = vld [vmem:[%s887_s26 + $0x108] sm:$0xff] }
  0x19   : > { %167 = vst [vmem:[%s892_s27 + $0x40] sm:$0xff] %v166_v8  ;;  %v170_v10 = vld [vmem:[%s887_s26 + $0x140] sm:$0xff]  ;;  %v172_v11 = vld [vmem:[%s887_s26 + $0x148] sm:$0xff]  ;;  %169 = vst [vmem:[%s892_s27 + $0x48] sm:$0xff] %v168_v9 }
  0x1a   : > { %171 = vst [vmem:[%s892_s27 + $0x50] sm:$0xff] %v170_v10  ;;  %173 = vst [vmem:[%s892_s27 + $0x58] sm:$0xff] %v172_v11  ;;  %v174_v12 = vld [vmem:[%s887_s26 + $0x180] sm:$0xff]  ;;  %v176_v13 = vld [vmem:[%s887_s26 + $0x188] sm:$0xff] }
  0x1b   : > { %v178_v14 = vld [vmem:[%s887_s26 + $0x1c0] sm:$0xff]  ;;  %175 = vst [vmem:[%s892_s27 + $0x60] sm:$0xff] %v174_v12  ;;  %177 = vst [vmem:[%s892_s27 + $0x68] sm:$0xff] %v176_v13  ;;  %v180_v15 = vld [vmem:[%s887_s26 + $0x1c8] sm:$0xff] }
  0x1c   : > { %179 = vst [vmem:[%s892_s27 + $0x70] sm:$0xff] %v178_v14  ;;  %v182_v16 = vld [vmem:[%s887_s26 + $0x200] sm:$0xff]  ;;  %v184_v17 = vld [vmem:[%s887_s26 + $0x208] sm:$0xff]  ;;  %181 = vst [vmem:[%s892_s27 + $0x78] sm:$0xff] %v180_v15 }
  0x1d   : > { %183 = vst [vmem:[%s892_s27 + $0x80] sm:$0xff] %v182_v16  ;;  %185 = vst [vmem:[%s892_s27 + $0x88] sm:$0xff] %v184_v17  ;;  %v186_v18 = vld [vmem:[%s887_s26 + $0x240] sm:$0xff]  ;;  %v188_v19 = vld [vmem:[%s887_s26 + $0x248] sm:$0xff] }
  0x1e   : > { %v190_v20 = vld [vmem:[%s887_s26 + $0x280] sm:$0xff]  ;;  %187 = vst [vmem:[%s892_s27 + $0x90] sm:$0xff] %v186_v18  ;;  %189 = vst [vmem:[%s892_s27 + $0x98] sm:$0xff] %v188_v19  ;;  %v192_v21 = vld [vmem:[%s887_s26 + $0x288] sm:$0xff] }
  0x1f   : > { %191 = vst [vmem:[%s892_s27 + $0xa0] sm:$0xff] %v190_v20  ;;  %v194_v22 = vld [vmem:[%s887_s26 + $0x2c0] sm:$0xff]  ;;  %v196_v23 = vld [vmem:[%s887_s26 + $0x2c8] sm:$0xff]  ;;  %193 = vst [vmem:[%s892_s27 + $0xa8] sm:$0xff] %v192_v21 }
  0x20   : > { %195 = vst [vmem:[%s892_s27 + $0xb0] sm:$0xff] %v194_v22  ;;  %197 = vst [vmem:[%s892_s27 + $0xb8] sm:$0xff] %v196_v23  ;;  %v198_v24 = vld [vmem:[%s887_s26 + $0x300] sm:$0xff]  ;;  %v200_v25 = vld [vmem:[%s887_s26 + $0x308] sm:$0xff] }
  0x21   : > { %v202_v26 = vld [vmem:[%s887_s26 + $0x340] sm:$0xff]  ;;  %199 = vst [vmem:[%s892_s27 + $0xc0] sm:$0xff] %v198_v24  ;;  %201 = vst [vmem:[%s892_s27 + $0xc8] sm:$0xff] %v200_v25  ;;  %v204_v27 = vld [vmem:[%s887_s26 + $0x348] sm:$0xff] }
  0x22   : > { %203 = vst [vmem:[%s892_s27 + $0xd0] sm:$0xff] %v202_v26  ;;  %v206_v28 = vld [vmem:[%s887_s26 + $0x380] sm:$0xff]  ;;  %v208_v29 = vld [vmem:[%s887_s26 + $0x388] sm:$0xff]  ;;  %205 = vst [vmem:[%s892_s27 + $0xd8] sm:$0xff] %v204_v27 }
  0x23   : > { %207 = vst [vmem:[%s892_s27 + $0xe0] sm:$0xff] %v206_v28  ;;  %209 = vst [vmem:[%s892_s27 + $0xe8] sm:$0xff] %v208_v29  ;;  %v210_v30 = vld [vmem:[%s887_s26 + $0x3c0] sm:$0xff]  ;;  %v212_v31 = vld [vmem:[%s887_s26 + $0x3c8] sm:$0xff] }
  0x24   : > { %211 = vst [vmem:[%s892_s27 + $0xf0] sm:$0xff] %v210_v30  ;;  %213 = vst [vmem:[%s892_s27 + $0xf8] sm:$0xff] %v212_v31 }
  0x25 PF: > { %p684_p7 = scmp.ge.s32.totalorder %s824_s14, 1  ;;  %p218_p8 = scmp.lt.s32.totalorder %s824_s14, 5 }
  0x27   : > { %p219_p9 = pnand %p684_p7, %p218_p8 }
  0x28   : > { %s225_s28 = sand.u32 (!%p219_p9), 1, %s816_s12   ;;  %v826_v32 = vmov (!%p219_p9), 0   ;;  %v284_v33 = vld [vmem:[%s1042_s2] sm:$0xff] (!%p219_p9)  ;;  %v285_v35 = vld [vmem:[%s1042_s2 + $0x8] sm:$0xff] (!%p219_p9) }
  0x29   : > { %222 = sbr.rel (%p219_p9) target bundleno = 308 (0x134), region = 51  ;;  %s685_s29 = sshll.u32 (!%p219_p9), %s225_s28, 8  ;;  %494 = vmatprep.mubr.bf16.mxu0 (!%p219_p9), %v826_v32  ;;  %537 = vmatprep.mubr.bf16.mxu1 (!%p219_p9), %v826_v32  ;;  %v801_v3 = vld [vmem:[%s1040_s0] sm:$0xff] (!%p219_p9)  }
  0x2a   : > { %752 = vset.pattern.permute.xlu0 (!%p219_p9), %v826_v32  ;;  %s963_s5 = scalar_lea.vmem (!%p219_p9), [#allocation2], %s685_s29  ;;  %s686_s10 = sshll.u32 (!%p219_p9), %s225_s28, 6 }
  0x2b   : > { %v753_v34 = vld [vmem:[%s963_s5 + $0x4] ss:$16 sps:$4 sm:$0xff] (!%p219_p9)   ;;  %288 = vperm.xlu0 (!%p219_p9), %752, %v284_v33   ;;  %v755_v36 = vld [vmem:[%s963_s5 + $0xc] ss:$16 sps:$4 sm:$0xff] (!%p219_p9)   ;;  %v757_v37 = vld [vmem:[%s963_s5] ss:$16 sps:$4 sm:$0xff] (!%p219_p9)  }
  0x2c   : > { %462 = vmatprep.subr.bf16.mxu0 (!%p219_p9), %v753_v34  ;;  %v758_v38 = vld [vmem:[%s963_s5 + $0x8] ss:$16 sps:$4 sm:$0xff] (!%p219_p9)   ;;  %505 = vmatprep.subr.bf16.mxu1 (!%p219_p9), %v755_v36  ;;  %v759_v39 = vld [vmem:[%s963_s5 + $0x24] ss:$16 sps:$4 sm:$0xff] (!%p219_p9)   ;;  %v761_v40 = vld [vmem:[%s963_s5 + $0x2c] ss:$16 sps:$4 sm:$0xff] (!%p219_p9)  }
  0x2d   : > { %463 = vmatpush1.bf16.msra.mxu0 (!%p219_p9), %v757_v37  ;;  %506 = vmatpush1.bf16.msra.mxu1 (!%p219_p9), %v758_v38  ;;  %v763_v41 = vld [vmem:[%s963_s5 + $0x20] ss:$16 sps:$4 sm:$0xff] (!%p219_p9)   ;;  %v764_v42 = vld [vmem:[%s963_s5 + $0x28] ss:$16 sps:$4 sm:$0xff] (!%p219_p9)   ;;  %v765_v43 = vld [vmem:[%s963_s5 + $0x44] ss:$16 sps:$4 sm:$0xff] (!%p219_p9)  }
  0x2e   : > { %464 = vmatprep.subr.bf16.mxu0 (!%p219_p9), %v759_v39  ;;  %507 = vmatprep.subr.bf16.mxu1 (!%p219_p9), %v761_v40  ;;  %v767_v44 = vld [vmem:[%s963_s5 + $0x4c] ss:$16 sps:$4 sm:$0xff] (!%p219_p9)   ;;  %v769_v45 = vld [vmem:[%s963_s5 + $0x40] ss:$16 sps:$4 sm:$0xff] (!%p219_p9)   ;;  %v770_v46 = vld [vmem:[%s963_s5 + $0x48] ss:$16 sps:$4 sm:$0xff] (!%p219_p9)  }
  0x2f   : > { %293 = vperm.xlu0 (!%p219_p9), %752, %v285_v35   ;;  %v771_v47 = vld [vmem:[%s963_s5 + $0x64] ss:$16 sps:$4 sm:$0xff] (!%p219_p9)   ;;  %v773_v48 = vld [vmem:[%s963_s5 + $0x6c] ss:$16 sps:$4 sm:$0xff] (!%p219_p9)   ;;  %v775_v49 = vld [vmem:[%s963_s5 + $0x60] ss:$16 sps:$4 sm:$0xff] (!%p219_p9)  }
  0x30   : > { %v776_v50 = vld [vmem:[%s963_s5 + $0x68] ss:$16 sps:$4 sm:$0xff]   ;;  %v777_v51 = vld [vmem:[%s963_s5 + $0x84] ss:$16 sps:$4 sm:$0xff]   ;;  %v779_v52 = vld [vmem:[%s963_s5 + $0x8c] ss:$16 sps:$4 sm:$0xff]  }
  0x31   : > { %465 = vmatpush1.bf16.msra.mxu0 %v763_v41  ;;  %508 = vmatpush1.bf16.msra.mxu1 %v764_v42  ;;  %v781_v53 = vld [vmem:[%s963_s5 + $0x80] ss:$16 sps:$4 sm:$0xff]   ;;  %v782_v54 = vld [vmem:[%s963_s5 + $0x88] ss:$16 sps:$4 sm:$0xff]   ;;  %v783_v55 = vld [vmem:[%s963_s5 + $0xa4] ss:$16 sps:$4 sm:$0xff]  }
  0x32   : > { %466 = vmatprep.subr.bf16.mxu0 %v765_v43  ;;  %509 = vmatprep.subr.bf16.mxu1 %v767_v44  ;;  %v785_v56 = vld [vmem:[%s963_s5 + $0xac] ss:$16 sps:$4 sm:$0xff]   ;;  %v787_v57 = vld [vmem:[%s963_s5 + $0xa0] ss:$16 sps:$4 sm:$0xff]   ;;  %v788_v58 = vld [vmem:[%s963_s5 + $0xa8] ss:$16 sps:$4 sm:$0xff]  }
  0x33   : > { %v789_v59 = vld [vmem:[%s963_s5 + $0xc4] ss:$16 sps:$4 sm:$0xff]   ;;  %v791_v60 = vld [vmem:[%s963_s5 + $0xcc] ss:$16 sps:$4 sm:$0xff]   ;;  %v793_v61 = vld [vmem:[%s963_s5 + $0xc0] ss:$16 sps:$4 sm:$0xff]  }
  0x34   : > { %v794_v62 = vld [vmem:[%s963_s5 + $0xc8] ss:$16 sps:$4 sm:$0xff]   ;;  %v795_v63 = vld [vmem:[%s963_s5 + $0xe4] ss:$16 sps:$4 sm:$0xff]   ;;  %v797_v0 = vld [vmem:[%s963_s5 + $0xec] ss:$16 sps:$4 sm:$0xff]  }
  0x35   : > { %467 = vmatpush1.bf16.msra.mxu0 %v769_v45  ;;  %510 = vmatpush1.bf16.msra.mxu1 %v770_v46  ;;  %v799_v1 = vld [vmem:[%s963_s5 + $0xe0] ss:$16 sps:$4 sm:$0xff]   ;;  %v800_v2 = vld [vmem:[%s963_s5 + $0xe8] ss:$16 sps:$4 sm:$0xff]   ;;  %s1005_s11 = scalar_lea.vmem [#allocation3], %s686_s10  ;;  %s726_s12 = sshll.u32 (%p877_p5), %s677_s15, 5 }
  0x36   : > { %468 = vmatprep.subr.bf16.mxu0 %v771_v47  ;;  %511 = vmatprep.subr.bf16.mxu1 %v773_v48  ;;  %s589_s21 = scalar_lea.vmem (%p877_p5), %s1043_s3, %s726_s12 }
  0x39   : > { %469 = vmatpush1.bf16.msra.mxu0 %v775_v49  ;;  %512 = vmatpush1.bf16.msra.mxu1 %v776_v50 }
  0x3a   : > { %470 = vmatprep.subr.bf16.mxu0 %v777_v51  ;;  %513 = vmatprep.subr.bf16.mxu1 %v779_v52 }
  0x3d   : > { %471 = vmatpush1.bf16.msra.mxu0 %v781_v53  ;;  %514 = vmatpush1.bf16.msra.mxu1 %v782_v54 }
  0x3e   : > { %472 = vmatprep.subr.bf16.mxu0 %v783_v55  ;;  %515 = vmatprep.subr.bf16.mxu1 %v785_v56 }
  0x41   : > { %473 = vmatpush1.bf16.msra.mxu0 %v787_v57  ;;  %516 = vmatpush1.bf16.msra.mxu1 %v788_v58 }
  0x42   : > { %474 = vmatprep.subr.bf16.mxu0 %v789_v59  ;;  %517 = vmatprep.subr.bf16.mxu1 %v791_v60 }
  0x45   : > { %475 = vmatpush1.bf16.msra.mxu0 %v793_v61  ;;  %518 = vmatpush1.bf16.msra.mxu1 %v794_v62 }
  0x46   : > { %476 = vmatprep.subr.bf16.mxu0 %v795_v63  ;;  %519 = vmatprep.subr.bf16.mxu1 %v797_v0 }
  0x49   : > { %477 = vmatpush1.bf16.msra.mxu0 %v799_v1  ;;  %520 = vmatpush1.bf16.msra.mxu1 %v800_v2 }
  0x4c   : > { %495 = vmatmul.mubr.bf16.vlgmr.msra.gmra.mrb[0].mxu0 %v801_v3  ;;  %538 = vmatmul.mubr.bf16.vlgmr.msra.gmra.mrb[0].mxu1 %v801_v3 }
  0xaa   : > { %v289_v4 = vpop.permute.xlu0 %288 }
  0xae   : > { %v294_v17 = vpop.permute.xlu0 %293 }
 0x11f   : > { %v496_v5 = vpop.f32.mrb[0].mxu0  ;;  %v539_v6 = vpop.f32.mrb[0].mxu1 }
 0x120   : > { %v497_v7 = vadd.f32 %v496_v5, %v289_v4  ;;  %v540_v8 = vadd.f32 %v539_v6, %v289_v4  ;;  %v498_v9 = vpop.f32.mrb[1].mxu0  ;;  %v541_v10 = vpop.f32.mrb[1].mxu1 }
 0x121   : > { %v499_v11 = vadd.f32 %v498_v9, %v289_v4  ;;  %v542_v12 = vadd.f32 %v541_v10, %v289_v4  ;;  %v500_v13 = vpop.f32.mrb[2].mxu0  ;;  %v543_v14 = vpop.f32.mrb[2].mxu1 }
 0x122   : > { %vm548_vm0 = vcmp.gt.f32.partialorder %v497_v7, 0.0  ;;  %v556_v15 = vmul.f32 0.2, %v497_v7  ;;  %vm550_vm1 = vcmp.gt.f32.partialorder %v540_v8, 0.0  ;;  %v558_v16 = vmul.f32 0.2, %v540_v8 }
 0x123   : > { %vm549_vm2 = vcmp.gt.f32.partialorder %v499_v11, 0.0  ;;  %v557_v18 = vmul.f32 0.2, %v499_v11  ;;  %vm551_vm3 = vcmp.gt.f32.partialorder %v542_v12, 0.0  ;;  %v559_v19 = vmul.f32 0.2, %v542_v12 }
 0x124   : > { %v564_v20 = vsel %vm548_vm0, %v497_v7, %v556_v15  ;;  %v566_v21 = vsel %vm550_vm1, %v540_v8, %v558_v16  ;;  %v501_v22 = vadd.f32 %v500_v13, %v294_v17  ;;  %v544_v23 = vadd.f32 %v543_v14, %v294_v17  ;;  %v502_v24 = vpop.f32.mrb[3].mxu0  ;;  %v545_v25 = vpop.f32.mrb[3].mxu1 }
 0x125   : > { %572 = vst [vmem:[%s1005_s11] sm:$0xff] %v564_v20  ;;  %574 = vst [vmem:[%s1005_s11 + $0x10] sm:$0xff] %v566_v21  ;;  %v565_v26 = vsel %vm549_vm2, %v499_v11, %v557_v18  ;;  %v567_v27 = vsel %vm551_vm3, %v542_v12, %v559_v19  ;;  %v503_v28 = vadd.f32 %v502_v24, %v294_v17  ;;  %586 = sbr.rel (!%p877_p5) target bundleno = 308 (0x134), region = 59 }
 0x126   : > { %v546_v29 = vadd.f32 %v545_v25, %v294_v17  ;;  %573 = vst [vmem:[%s1005_s11 + $0x8] sm:$0xff] %v565_v26  ;;  %575 = vst [vmem:[%s1005_s11 + $0x18] sm:$0xff] %v567_v27  ;;  %vm552_vm4 = vcmp.gt.f32.partialorder %v501_v22, 0.0  ;;  %v560_v30 = vmul.f32 0.2, %v501_v22  ;;  %vm554_vm5 = vcmp.gt.f32.partialorder %v544_v23, 0.0 }
 0x127   : > { %v562_v31 = vmul.f32 0.2, %v544_v23  ;;  %vm553_vm6 = vcmp.gt.f32.partialorder %v503_v28, 0.0  ;;  %v561_v32 = vmul.f32 0.2, %v503_v28 }
 0x128   : > { %vm555_vm7 = vcmp.gt.f32.partialorder %v546_v29, 0.0  ;;  %v563_v33 = vmul.f32 0.2, %v546_v29  ;;  %v568_v34 = vsel %vm552_vm4, %v501_v22, %v560_v30 }
 0x129   : > { %v570_v35 = vsel %vm554_vm5, %v544_v23, %v562_v31  ;;  %576 = vst [vmem:[%s1005_s11 + $0x20] sm:$0xff] %v568_v34  ;;  %v569_v36 = vsel %vm553_vm6, %v503_v28, %v561_v32 }
 0x12a   : > { %578 = vst [vmem:[%s1005_s11 + $0x30] sm:$0xff] %v570_v35  ;;  %v571_v37 = vsel %vm555_vm7, %v546_v29, %v563_v33  ;;  %577 = vst [vmem:[%s1005_s11 + $0x28] sm:$0xff] %v569_v36 }
 0x12b   : > { %579 = vst [vmem:[%s1005_s11 + $0x38] sm:$0xff] %v571_v37 }
 0x12c   : > { %v602_v38 = vld [vmem:[%s1005_s11] sm:$0xff]  ;;  %v606_v40 = vld [vmem:[%s1005_s11 + $0x10] sm:$0xff] }
 0x12d   : > { %v604_v39 = vld [vmem:[%s1005_s11 + $0x8] sm:$0xff]  ;;  %v608_v41 = vld [vmem:[%s1005_s11 + $0x18] sm:$0xff]  ;;  %603 = vst [vmem:[%s589_s21] sm:$0xff] %v602_v38  ;;  %607 = vst [vmem:[%s589_s21 + $0x10] sm:$0xff] %v606_v40 }
 0x12e   : > { %605 = vst [vmem:[%s589_s21 + $0x8] sm:$0xff] %v604_v39  ;;  %609 = vst [vmem:[%s589_s21 + $0x18] sm:$0xff] %v608_v41 }
 0x130   : > { %v610_v42 = vld [vmem:[%s1005_s11 + $0x20] sm:$0xff] }
 0x131   : > { %v612_v43 = vld [vmem:[%s1005_s11 + $0x28] sm:$0xff]  ;;  %611 = vst [vmem:[%s589_s21 + $0x80] sm:$0xff] %v610_v42  ;;  %v614_v44 = vld [vmem:[%s1005_s11 + $0x30] sm:$0xff] }
 0x132   : > { %613 = vst [vmem:[%s589_s21 + $0x88] sm:$0xff] %v612_v43  ;;  %v616_v45 = vld [vmem:[%s1005_s11 + $0x38] sm:$0xff]  ;;  %615 = vst [vmem:[%s589_s21 + $0x90] sm:$0xff] %v614_v44 }
 0x133   : > { %617 = vst [vmem:[%s589_s21 + $0x98] sm:$0xff] %v616_v45 }
 0x134 PF: > { %p10_p10 = scmp.ge.s32.totalorder %s864_s16, 6   ;;  %s1045_s12 = smov %s820_s13 }
 0x135   : > { %s1046_s13 = smov %s875_s19  ;;  %s1047_s14 = smov %s864_s16 }
 0x136   :  { %12 = sbr.rel (!%p10_p10) target bundleno = 2 (0x2), region = 113 }

// kernel: d_net128_la_forward.11
= control target key start
LH: loop header
LB: loop body
LE: loop exit
PB: predicated region body
PF: predicated region fallthrough
CT: control target
= control target key end

     0   :  { %s959_s12 = smov 0   ;;  %s961_s13 = smov 0   ;;  %s1167_s0 = inlined_call_operand.vmem [shape: bf16[32,256], index: 0, kind: input, shape index: {}]   ;;  %s1168_s1 = inlined_call_operand.vmem [shape: bf16[256,512], index: 1, kind: input, shape index: {}]   ;;  %s1169_s2 = inlined_call_operand.vmem [shape: f32[32,1], index: 2, kind: input, shape index: {}]   ;;  %s1170_s3 = inlined_call_operand.vmem [shape: f32[32,512], index: 3, kind: output, shape index: {}]  }
   0x1   :  { %s963_s14 = smov 0  }
   0x2 LB: > { %s748_s15 = sadd.s32 4294967295, %s936_s14   ;;  %s976_s16 = sadd.s32 1, %s936_s14   ;;  %s936_s14 = sphi %s963_s14, %s1174_s14   ;;  %s932_s13 = sphi %s961_s13, %s1173_s13   ;;  %s928_s12 = sphi %s959_s12, %s1172_s12  }
   0x3   : > { %s38_s17 = ssub.s32 %s936_s14, %s976_s16  ;;  %s41_s18 = sadd.s32 1, %s932_s13 }
   0x4   : > { %p39_p0 = scmp.eq.s32.totalorder %s38_s17, 0  ;;  %p48_p1 = scmp.ne.s32.totalorder %s932_s13, %s928_s12 }
   0x5   : > { %p49_p2 = scmp.eq.s32.totalorder %s936_s14, 0  ;;  %p99_p3 = scmp.eq.s32.totalorder %s748_s15, 1 }
   0x6   : > { %s987_s19 = scalar_select %p39_p0, %s932_s13, %s41_s18  }
   0x7   : > { %p50_p4 = por %p49_p2, %p48_p1  ;;  %p989_p5 = por %p99_p3, %p48_p1 }
   0x8   : > { %p751_p6 = scmp.ge.s32.totalorder %s936_s14, 2 }
   0xa   : > { %127 = sbr.rel (%p751_p6) target bundleno = 37 (0x25), region = 24 }
  0x11   : > { %130 = sbr.rel (!%p50_p4) target bundleno = 37 (0x25), region = 28  ;;  %s132_s21 = sand.u32 (%p50_p4), 1, %s932_s13  }
  0x12   : > { %s799_s22 = sshll.u32 (%p50_p4), %s936_s14, 3  ;;  %s752_s23 = sshll.u32 (%p50_p4), %s132_s21, 8 }
  0x13   : > { %s999_s26 = scalar_lea.vmem (%p50_p4), %s1168_s1, %s799_s22  ;;  %s1004_s27 = scalar_lea.vmem (%p50_p4), [#allocation2], %s752_s23 }
  0x14   : > { %v227_v0 = vld [vmem:[%s999_s26] sm:$0xff] (%p50_p4)  ;;  %v229_v1 = vld [vmem:[%s999_s26 + $0x10] sm:$0xff] (%p50_p4) }
  0x15   : > { %v231_v2 = vld [vmem:[%s999_s26 + $0x20] sm:$0xff] (%p50_p4)  ;;  %228 = vst [vmem:[%s1004_s27] sm:$0xff] (%p50_p4), %v227_v0  ;;  %230 = vst [vmem:[%s1004_s27 + $0x8] sm:$0xff] (%p50_p4), %v229_v1  ;;  %v233_v3 = vld [vmem:[%s999_s26 + $0x30] sm:$0xff] (%p50_p4) }
  0x16   : > { %232 = vst [vmem:[%s1004_s27 + $0x10] sm:$0xff] (%p50_p4), %v231_v2  ;;  %v235_v4 = vld [vmem:[%s999_s26 + $0x40] sm:$0xff] (%p50_p4)  ;;  %v237_v5 = vld [vmem:[%s999_s26 + $0x50] sm:$0xff] (%p50_p4)  ;;  %234 = vst [vmem:[%s1004_s27 + $0x18] sm:$0xff] (%p50_p4), %v233_v3 }
  0x17   : > { %236 = vst [vmem:[%s1004_s27 + $0x20] sm:$0xff] (%p50_p4), %v235_v4  ;;  %238 = vst [vmem:[%s1004_s27 + $0x28] sm:$0xff] (%p50_p4), %v237_v5  ;;  %v239_v6 = vld [vmem:[%s999_s26 + $0x60] sm:$0xff] (%p50_p4)  ;;  %v241_v7 = vld [vmem:[%s999_s26 + $0x70] sm:$0xff] (%p50_p4) }
  0x18   : > { %v243_v8 = vld [vmem:[%s999_s26 + $0x80] sm:$0xff]  ;;  %240 = vst [vmem:[%s1004_s27 + $0x30] sm:$0xff] %v239_v6  ;;  %242 = vst [vmem:[%s1004_s27 + $0x38] sm:$0xff] %v241_v7  ;;  %v245_v9 = vld [vmem:[%s999_s26 + $0x90] sm:$0xff] }
  0x19   : > { %244 = vst [vmem:[%s1004_s27 + $0x40] sm:$0xff] %v243_v8  ;;  %v247_v10 = vld [vmem:[%s999_s26 + $0xa0] sm:$0xff]  ;;  %v249_v11 = vld [vmem:[%s999_s26 + $0xb0] sm:$0xff]  ;;  %246 = vst [vmem:[%s1004_s27 + $0x48] sm:$0xff] %v245_v9 }
  0x1a   : > { %248 = vst [vmem:[%s1004_s27 + $0x50] sm:$0xff] %v247_v10  ;;  %250 = vst [vmem:[%s1004_s27 + $0x58] sm:$0xff] %v249_v11  ;;  %v251_v12 = vld [vmem:[%s999_s26 + $0xc0] sm:$0xff]  ;;  %v253_v13 = vld [vmem:[%s999_s26 + $0xd0] sm:$0xff] }
  0x1b   : > { %v255_v14 = vld [vmem:[%s999_s26 + $0xe0] sm:$0xff]  ;;  %252 = vst [vmem:[%s1004_s27 + $0x60] sm:$0xff] %v251_v12  ;;  %254 = vst [vmem:[%s1004_s27 + $0x68] sm:$0xff] %v253_v13  ;;  %v257_v15 = vld [vmem:[%s999_s26 + $0xf0] sm:$0xff] }
  0x1c   : > { %256 = vst [vmem:[%s1004_s27 + $0x70] sm:$0xff] %v255_v14  ;;  %v259_v16 = vld [vmem:[%s999_s26 + $0x100] sm:$0xff]  ;;  %v261_v17 = vld [vmem:[%s999_s26 + $0x110] sm:$0xff]  ;;  %258 = vst [vmem:[%s1004_s27 + $0x78] sm:$0xff] %v257_v15 }
  0x1d   : > { %260 = vst [vmem:[%s1004_s27 + $0x80] sm:$0xff] %v259_v16  ;;  %262 = vst [vmem:[%s1004_s27 + $0x88] sm:$0xff] %v261_v17  ;;  %v263_v18 = vld [vmem:[%s999_s26 + $0x120] sm:$0xff]  ;;  %v265_v19 = vld [vmem:[%s999_s26 + $0x130] sm:$0xff] }
  0x1e   : > { %v267_v20 = vld [vmem:[%s999_s26 + $0x140] sm:$0xff]  ;;  %264 = vst [vmem:[%s1004_s27 + $0x90] sm:$0xff] %v263_v18  ;;  %266 = vst [vmem:[%s1004_s27 + $0x98] sm:$0xff] %v265_v19  ;;  %v269_v21 = vld [vmem:[%s999_s26 + $0x150] sm:$0xff] }
  0x1f   : > { %268 = vst [vmem:[%s1004_s27 + $0xa0] sm:$0xff] %v267_v20  ;;  %v271_v22 = vld [vmem:[%s999_s26 + $0x160] sm:$0xff]  ;;  %v273_v23 = vld [vmem:[%s999_s26 + $0x170] sm:$0xff]  ;;  %270 = vst [vmem:[%s1004_s27 + $0xa8] sm:$0xff] %v269_v21 }
  0x20   : > { %272 = vst [vmem:[%s1004_s27 + $0xb0] sm:$0xff] %v271_v22  ;;  %274 = vst [vmem:[%s1004_s27 + $0xb8] sm:$0xff] %v273_v23  ;;  %v275_v24 = vld [vmem:[%s999_s26 + $0x180] sm:$0xff]  ;;  %v277_v25 = vld [vmem:[%s999_s26 + $0x190] sm:$0xff] }
  0x21   : > { %v279_v26 = vld [vmem:[%s999_s26 + $0x1a0] sm:$0xff]  ;;  %276 = vst [vmem:[%s1004_s27 + $0xc0] sm:$0xff] %v275_v24  ;;  %278 = vst [vmem:[%s1004_s27 + $0xc8] sm:$0xff] %v277_v25  ;;  %v281_v27 = vld [vmem:[%s999_s26 + $0x1b0] sm:$0xff] }
  0x22   : > { %280 = vst [vmem:[%s1004_s27 + $0xd0] sm:$0xff] %v279_v26  ;;  %v283_v28 = vld [vmem:[%s999_s26 + $0x1c0] sm:$0xff]  ;;  %v285_v29 = vld [vmem:[%s999_s26 + $0x1d0] sm:$0xff]  ;;  %282 = vst [vmem:[%s1004_s27 + $0xd8] sm:$0xff] %v281_v27 }
  0x23   : > { %284 = vst [vmem:[%s1004_s27 + $0xe0] sm:$0xff] %v283_v28  ;;  %286 = vst [vmem:[%s1004_s27 + $0xe8] sm:$0xff] %v285_v29  ;;  %v287_v30 = vld [vmem:[%s999_s26 + $0x1e0] sm:$0xff]  ;;  %v289_v31 = vld [vmem:[%s999_s26 + $0x1f0] sm:$0xff] }
  0x24   : > { %288 = vst [vmem:[%s1004_s27 + $0xf0] sm:$0xff] %v287_v30  ;;  %290 = vst [vmem:[%s1004_s27 + $0xf8] sm:$0xff] %v289_v31 }
  0x25 PF: > { %p755_p7 = scmp.ge.s32.totalorder %s936_s14, 1  ;;  %p295_p8 = scmp.lt.s32.totalorder %s936_s14, 3 }
  0x27   : > { %p296_p9 = pnand %p755_p7, %p295_p8 }
  0x28   : > { %s302_s28 = sand.u32 (!%p296_p9), 1, %s928_s12   ;;  %v910_v32 = vld [vmem:[%s1167_s0 + $0x4] ss:$8 sps:$4 sm:$0xff] (!%p296_p9)   ;;  %v938_v33 = vmov (!%p296_p9), 0   ;;  %v913_v34 = vld [vmem:[%s1167_s0 + $0x14] ss:$8 sps:$4 sm:$0xff] (!%p296_p9)  }
  0x29   : > { %299 = sbr.rel (%p296_p9) target bundleno = 340 (0x154), region = 66  ;;  %s756_s29 = sshll.u32 (!%p296_p9), %s302_s28, 8  ;;  %859 = vset.pattern.permute.xlu1 (!%p296_p9), %v938_v33  ;;  %858 = vset.pattern.permute.xlu0 (!%p296_p9), %v938_v33  ;;  %v364_v35 = vld [vmem:[%s1169_s2 + $0x10] sm:$0xff] (!%p296_p9)  ;;  %v362_v49 = vld [vmem:[%s1169_s2] sm:$0xff] (!%p296_p9)  ;;  %v365_v50 = vld [vmem:[%s1169_s2 + $0x18] sm:$0xff] (!%p296_p9) }
  0x2a   : > { %s1081_s9 = scalar_lea.vmem (!%p296_p9), [#allocation2], %s756_s29  ;;  %598 = vmatprep.mubr.bf16.mxu0 (!%p296_p9), %v910_v32  ;;  %378 = vperm.xlu1 (!%p296_p9), %859, %v364_v35   ;;  %v363_v52 = vld [vmem:[%s1169_s2 + $0x8] sm:$0xff] (!%p296_p9)  ;;  %v911_v8 = vld [vmem:[%s1167_s0 + $0x10] ss:$8 sps:$4 sm:$0xff] (!%p296_p9)   ;;  %s757_s27 = sshll.u32 (!%p296_p9), %s302_s28, 6 }
  0x2b   : > { %v860_v36 = vld [vmem:[%s1081_s9 + $0x4] ss:$8 sps:$4 sm:$0xff] (!%p296_p9)   ;;  %v862_v37 = vld [vmem:[%s1081_s9] ss:$8 sps:$4 sm:$0xff] (!%p296_p9)   ;;  %608 = vmatprep.mubr.bf16.mxu1 (!%p296_p9), %v913_v34  ;;  %v863_v38 = vld [vmem:[%s1081_s9 + $0x14] ss:$8 sps:$4 sm:$0xff] (!%p296_p9)   ;;  %368 = vperm.xlu0 (!%p296_p9), %858, %v362_v49  }
  0x2c   : > { %566 = vmatprep.subr.bf16.mxu0 (!%p296_p9), %v860_v36  ;;  %801 = vmatprep.subr.bf16.mxu1 (!%p296_p9), %v860_v36  ;;  %v865_v39 = vld [vmem:[%s1081_s9 + $0x10] ss:$8 sps:$4 sm:$0xff] (!%p296_p9)   ;;  %v866_v40 = vld [vmem:[%s1081_s9 + $0x24] ss:$8 sps:$4 sm:$0xff] (!%p296_p9)   ;;  %v868_v41 = vld [vmem:[%s1081_s9 + $0x20] ss:$8 sps:$4 sm:$0xff] (!%p296_p9)  }
  0x2d   : > { %567 = vmatpush1.bf16.msra.mxu0 (!%p296_p9), %v862_v37  ;;  %817 = vmatpush1.bf16.msra.mxu1 (!%p296_p9), %v862_v37  ;;  %v869_v42 = vld [vmem:[%s1081_s9 + $0x34] ss:$8 sps:$4 sm:$0xff] (!%p296_p9)   ;;  %v871_v43 = vld [vmem:[%s1081_s9 + $0x30] ss:$8 sps:$4 sm:$0xff] (!%p296_p9)   ;;  %v872_v44 = vld [vmem:[%s1081_s9 + $0x44] ss:$8 sps:$4 sm:$0xff] (!%p296_p9)  }
  0x2e   : > { %568 = vmatprep.subr.bf16.mxu0 (!%p296_p9), %v863_v38  ;;  %802 = vmatprep.subr.bf16.mxu1 (!%p296_p9), %v863_v38  ;;  %v874_v45 = vld [vmem:[%s1081_s9 + $0x40] ss:$8 sps:$4 sm:$0xff] (!%p296_p9)   ;;  %v875_v46 = vld [vmem:[%s1081_s9 + $0x54] ss:$8 sps:$4 sm:$0xff] (!%p296_p9)   ;;  %v877_v47 = vld [vmem:[%s1081_s9 + $0x50] ss:$8 sps:$4 sm:$0xff] (!%p296_p9)  }
  0x2f   : > { %v878_v48 = vld [vmem:[%s1081_s9 + $0x64] ss:$8 sps:$4 sm:$0xff] (!%p296_p9)   ;;  %383 = vperm.xlu1 (!%p296_p9), %859, %v365_v50   ;;  %v880_v51 = vld [vmem:[%s1081_s9 + $0x60] ss:$8 sps:$4 sm:$0xff] (!%p296_p9)   ;;  %v881_v53 = vld [vmem:[%s1081_s9 + $0x74] ss:$8 sps:$4 sm:$0xff] (!%p296_p9)   ;;  %373 = vperm.xlu0 (!%p296_p9), %858, %v363_v52  }
  0x30   : > { %v883_v54 = vld [vmem:[%s1081_s9 + $0x70] ss:$8 sps:$4 sm:$0xff]   ;;  %v884_v55 = vld [vmem:[%s1081_s9 + $0x84] ss:$8 sps:$4 sm:$0xff]   ;;  %v886_v56 = vld [vmem:[%s1081_s9 + $0x80] ss:$8 sps:$4 sm:$0xff]  }
  0x31   : > { %569 = vmatpush1.bf16.msra.mxu0 %v865_v39  ;;  %818 = vmatpush1.bf16.msra.mxu1 %v865_v39  ;;  %v887_v57 = vld [vmem:[%s1081_s9 + $0x94] ss:$8 sps:$4 sm:$0xff]   ;;  %v889_v58 = vld [vmem:[%s1081_s9 + $0x90] ss:$8 sps:$4 sm:$0xff]   ;;  %v890_v59 = vld [vmem:[%s1081_s9 + $0xa4] ss:$8 sps:$4 sm:$0xff]  }
  0x32   : > { %570 = vmatprep.subr.bf16.mxu0 %v866_v40  ;;  %803 = vmatprep.subr.bf16.mxu1 %v866_v40  ;;  %v892_v60 = vld [vmem:[%s1081_s9 + $0xa0] ss:$8 sps:$4 sm:$0xff]   ;;  %v893_v61 = vld [vmem:[%s1081_s9 + $0xb4] ss:$8 sps:$4 sm:$0xff]   ;;  %v895_v62 = vld [vmem:[%s1081_s9 + $0xb0] ss:$8 sps:$4 sm:$0xff]  }
  0x33   : > { %v896_v63 = vld [vmem:[%s1081_s9 + $0xc4] ss:$8 sps:$4 sm:$0xff]   ;;  %v898_v0 = vld [vmem:[%s1081_s9 + $0xc0] ss:$8 sps:$4 sm:$0xff]   ;;  %v899_v1 = vld [vmem:[%s1081_s9 + $0xd4] ss:$8 sps:$4 sm:$0xff]  }
  0x34   : > { %v901_v2 = vld [vmem:[%s1081_s9 + $0xd0] ss:$8 sps:$4 sm:$0xff]   ;;  %v902_v3 = vld [vmem:[%s1081_s9 + $0xe4] ss:$8 sps:$4 sm:$0xff]   ;;  %v904_v4 = vld [vmem:[%s1081_s9 + $0xe0] ss:$8 sps:$4 sm:$0xff]  }
  0x35   : > { %571 = vmatpush1.bf16.msra.mxu0 %v868_v41  ;;  %819 = vmatpush1.bf16.msra.mxu1 %v868_v41  ;;  %v905_v5 = vld [vmem:[%s1081_s9 + $0xf4] ss:$8 sps:$4 sm:$0xff]   ;;  %v907_v6 = vld [vmem:[%s1081_s9 + $0xf0] ss:$8 sps:$4 sm:$0xff]   ;;  %v908_v7 = vld [vmem:[%s1167_s0] ss:$8 sps:$4 sm:$0xff]  }
  0x36   : > { %572 = vmatprep.subr.bf16.mxu0 %v869_v42  ;;  %804 = vmatprep.subr.bf16.mxu1 %v869_v42  ;;  %s1132_s12 = scalar_lea.vmem [#allocation3], %s757_s27  ;;  %s800_s28 = sshll.u32 (%p989_p5), %s748_s15, 4 }
  0x37   : > { %s660_s4 = scalar_lea.vmem (%p989_p5), %s1170_s3, %s800_s28 }
  0x39   : > { %573 = vmatpush1.bf16.msra.mxu0 %v871_v43  ;;  %820 = vmatpush1.bf16.msra.mxu1 %v871_v43 }
  0x3a   : > { %574 = vmatprep.subr.bf16.mxu0 %v872_v44  ;;  %805 = vmatprep.subr.bf16.mxu1 %v872_v44 }
  0x3d   : > { %575 = vmatpush1.bf16.msra.mxu0 %v874_v45  ;;  %821 = vmatpush1.bf16.msra.mxu1 %v874_v45 }
  0x3e   : > { %576 = vmatprep.subr.bf16.mxu0 %v875_v46  ;;  %806 = vmatprep.subr.bf16.mxu1 %v875_v46 }
  0x41   : > { %577 = vmatpush1.bf16.msra.mxu0 %v877_v47  ;;  %822 = vmatpush1.bf16.msra.mxu1 %v877_v47 }
  0x42   : > { %578 = vmatprep.subr.bf16.mxu0 %v878_v48  ;;  %807 = vmatprep.subr.bf16.mxu1 %v878_v48 }
  0x45   : > { %579 = vmatpush1.bf16.msra.mxu0 %v880_v51  ;;  %823 = vmatpush1.bf16.msra.mxu1 %v880_v51 }
  0x46   : > { %580 = vmatprep.subr.bf16.mxu0 %v881_v53  ;;  %808 = vmatprep.subr.bf16.mxu1 %v881_v53 }
  0x49   : > { %581 = vmatpush1.bf16.msra.mxu0 %v883_v54  ;;  %824 = vmatpush1.bf16.msra.mxu1 %v883_v54 }
  0x4a   : > { %582 = vmatprep.subr.bf16.mxu0 %v884_v55  ;;  %809 = vmatprep.subr.bf16.mxu1 %v884_v55 }
  0x4d   : > { %583 = vmatpush1.bf16.msra.mxu0 %v886_v56  ;;  %825 = vmatpush1.bf16.msra.mxu1 %v886_v56 }
  0x4e   : > { %584 = vmatprep.subr.bf16.mxu0 %v887_v57  ;;  %810 = vmatprep.subr.bf16.mxu1 %v887_v57 }
  0x51   : > { %585 = vmatpush1.bf16.msra.mxu0 %v889_v58  ;;  %826 = vmatpush1.bf16.msra.mxu1 %v889_v58 }
  0x52   : > { %586 = vmatprep.subr.bf16.mxu0 %v890_v59  ;;  %811 = vmatprep.subr.bf16.mxu1 %v890_v59 }
  0x55   : > { %587 = vmatpush1.bf16.msra.mxu0 %v892_v60  ;;  %827 = vmatpush1.bf16.msra.mxu1 %v892_v60 }
  0x56   : > { %588 = vmatprep.subr.bf16.mxu0 %v893_v61  ;;  %812 = vmatprep.subr.bf16.mxu1 %v893_v61 }
  0x59   : > { %589 = vmatpush1.bf16.msra.mxu0 %v895_v62  ;;  %828 = vmatpush1.bf16.msra.mxu1 %v895_v62 }
  0x5a   : > { %590 = vmatprep.subr.bf16.mxu0 %v896_v63  ;;  %813 = vmatprep.subr.bf16.mxu1 %v896_v63 }
  0x5d   : > { %591 = vmatpush1.bf16.msra.mxu0 %v898_v0  ;;  %829 = vmatpush1.bf16.msra.mxu1 %v898_v0 }
  0x5e   : > { %592 = vmatprep.subr.bf16.mxu0 %v899_v1  ;;  %814 = vmatprep.subr.bf16.mxu1 %v899_v1 }
  0x61   : > { %593 = vmatpush1.bf16.msra.mxu0 %v901_v2  ;;  %830 = vmatpush1.bf16.msra.mxu1 %v901_v2 }
  0x62   : > { %594 = vmatprep.subr.bf16.mxu0 %v902_v3  ;;  %815 = vmatprep.subr.bf16.mxu1 %v902_v3 }
  0x65   : > { %595 = vmatpush1.bf16.msra.mxu0 %v904_v4  ;;  %831 = vmatpush1.bf16.msra.mxu1 %v904_v4 }
  0x66   : > { %596 = vmatprep.subr.bf16.mxu0 %v905_v5  ;;  %816 = vmatprep.subr.bf16.mxu1 %v905_v5 }
  0x69   : > { %597 = vmatpush1.bf16.msra.mxu0 %v907_v6  ;;  %832 = vmatpush1.bf16.msra.mxu1 %v907_v6 }
  0x6c   : > { %599 = vmatmul.mubr.bf16.vlgmr.msra.gmra.mrb[0].mxu0 %v908_v7  ;;  %609 = vmatmul.mubr.bf16.vlgmr.msra.gmra.mrb[0].mxu1 %v911_v8 }
  0xa9   : > { %v379_v9 = vpop.permute.xlu1 %378 }
  0xaa   : > { %v369_v10 = vpop.permute.xlu0 %368 }
  0xae   : > { %v384_v23 = vpop.permute.xlu1 %383  ;;  %v374_v24 = vpop.permute.xlu0 %373 }
 0x13f   : > { %v600_v11 = vpop.f32.mrb[0].mxu0  ;;  %v610_v12 = vpop.f32.mrb[0].mxu1 }
 0x140   : > { %v601_v13 = vadd.f32 %v600_v11, %v369_v10  ;;  %v611_v14 = vadd.f32 %v610_v12, %v379_v9  ;;  %v602_v15 = vpop.f32.mrb[1].mxu0  ;;  %v612_v16 = vpop.f32.mrb[1].mxu1 }
 0x141   : > { %v603_v17 = vadd.f32 %v602_v15, %v369_v10  ;;  %v613_v18 = vadd.f32 %v612_v16, %v379_v9  ;;  %v604_v19 = vpop.f32.mrb[2].mxu0  ;;  %v614_v20 = vpop.f32.mrb[2].mxu1 }
 0x142   : > { %vm619_vm0 = vcmp.gt.f32.partialorder %v601_v13, 0.0  ;;  %v627_v21 = vmul.f32 0.2, %v601_v13  ;;  %vm623_vm1 = vcmp.gt.f32.partialorder %v611_v14, 0.0  ;;  %v631_v22 = vmul.f32 0.2, %v611_v14 }
 0x143   : > { %vm620_vm2 = vcmp.gt.f32.partialorder %v603_v17, 0.0  ;;  %v628_v25 = vmul.f32 0.2, %v603_v17  ;;  %vm624_vm3 = vcmp.gt.f32.partialorder %v613_v18, 0.0  ;;  %v632_v26 = vmul.f32 0.2, %v613_v18 }
 0x144   : > { %v635_v27 = vsel %vm619_vm0, %v601_v13, %v627_v21  ;;  %v639_v28 = vsel %vm623_vm1, %v611_v14, %v631_v22  ;;  %v605_v29 = vadd.f32 %v604_v19, %v374_v24  ;;  %v615_v30 = vadd.f32 %v614_v20, %v384_v23  ;;  %v606_v31 = vpop.f32.mrb[3].mxu0  ;;  %v616_v32 = vpop.f32.mrb[3].mxu1 }
 0x145   : > { %643 = vst [vmem:[%s1132_s12] sm:$0xff] %v635_v27  ;;  %647 = vst [vmem:[%s1132_s12 + $0x20] sm:$0xff] %v639_v28  ;;  %v636_v33 = vsel %vm620_vm2, %v603_v17, %v628_v25  ;;  %v640_v34 = vsel %vm624_vm3, %v613_v18, %v632_v26  ;;  %v607_v35 = vadd.f32 %v606_v31, %v374_v24  ;;  %657 = sbr.rel (!%p989_p5) target bundleno = 340 (0x154), region = 74 }
 0x146   : > { %v617_v36 = vadd.f32 %v616_v32, %v384_v23  ;;  %644 = vst [vmem:[%s1132_s12 + $0x8] sm:$0xff] %v636_v33  ;;  %648 = vst [vmem:[%s1132_s12 + $0x28] sm:$0xff] %v640_v34  ;;  %vm621_vm4 = vcmp.gt.f32.partialorder %v605_v29, 0.0  ;;  %v629_v37 = vmul.f32 0.2, %v605_v29  ;;  %vm625_vm5 = vcmp.gt.f32.partialorder %v615_v30, 0.0 }
 0x147   : > { %v633_v38 = vmul.f32 0.2, %v615_v30  ;;  %vm622_vm6 = vcmp.gt.f32.partialorder %v607_v35, 0.0  ;;  %v630_v39 = vmul.f32 0.2, %v607_v35 }
 0x148   : > { %vm626_vm7 = vcmp.gt.f32.partialorder %v617_v36, 0.0  ;;  %v634_v40 = vmul.f32 0.2, %v617_v36  ;;  %v637_v41 = vsel %vm621_vm4, %v605_v29, %v629_v37 }
 0x149   : > { %v641_v42 = vsel %vm625_vm5, %v615_v30, %v633_v38  ;;  %645 = vst [vmem:[%s1132_s12 + $0x10] sm:$0xff] %v637_v41  ;;  %v638_v43 = vsel %vm622_vm6, %v607_v35, %v630_v39 }
 0x14a   : > { %649 = vst [vmem:[%s1132_s12 + $0x30] sm:$0xff] %v641_v42  ;;  %v642_v44 = vsel %vm626_vm7, %v617_v36, %v634_v40  ;;  %646 = vst [vmem:[%s1132_s12 + $0x18] sm:$0xff] %v638_v43 }
 0x14b   : > { %650 = vst [vmem:[%s1132_s12 + $0x38] sm:$0xff] %v642_v44 }
 0x14c   : > { %v673_v45 = vld [vmem:[%s1132_s12] sm:$0xff] }
 0x14d   : > { %v675_v46 = vld [vmem:[%s1132_s12 + $0x8] sm:$0xff]  ;;  %v681_v49 = vld [vmem:[%s1132_s12 + $0x20] sm:$0xff]  ;;  %674 = vst [vmem:[%s660_s4] sm:$0xff] %v673_v45 }
 0x14e   : > { %v683_v50 = vld [vmem:[%s1132_s12 + $0x28] sm:$0xff]  ;;  %676 = vst [vmem:[%s660_s4 + $0x8] sm:$0xff] %v675_v46  ;;  %682 = vst [vmem:[%s660_s4 + $0x40] sm:$0xff] %v681_v49 }
 0x14f   : > { %684 = vst [vmem:[%s660_s4 + $0x48] sm:$0xff] %v683_v50 }
 0x150   : > { %v677_v47 = vld [vmem:[%s1132_s12 + $0x10] sm:$0xff] }
 0x151   : > { %v679_v48 = vld [vmem:[%s1132_s12 + $0x18] sm:$0xff]  ;;  %678 = vst [vmem:[%s660_s4 + $0x20] sm:$0xff] %v677_v47  ;;  %v685_v51 = vld [vmem:[%s1132_s12 + $0x30] sm:$0xff] }
 0x152   : > { %680 = vst [vmem:[%s660_s4 + $0x28] sm:$0xff] %v679_v48  ;;  %v687_v52 = vld [vmem:[%s1132_s12 + $0x38] sm:$0xff]  ;;  %686 = vst [vmem:[%s660_s4 + $0x60] sm:$0xff] %v685_v51 }
 0x153   : > { %688 = vst [vmem:[%s660_s4 + $0x68] sm:$0xff] %v687_v52 }
 0x154 PF: > { %p10_p10 = scmp.ge.s32.totalorder %s976_s16, 4   ;;  %s1172_s12 = smov %s932_s13 }
 0x155   : > { %s1173_s13 = smov %s987_s19  ;;  %s1174_s14 = smov %s976_s16 }
 0x156   :  { %12 = sbr.rel (!%p10_p10) target bundleno = 2 (0x2), region = 128 }

// kernel: d_net128_la_forward.12
= control target key start
LH: loop header
LB: loop body
LE: loop exit
PB: predicated region body
PF: predicated region fallthrough
CT: control target
= control target key end

     0   :  { %v768_v1 = vmov 0   ;;  %s981_s1 = inlined_call_operand.vmem [shape: bf16[512,128], index: 1, kind: input, shape index: {}]   ;;  %s982_s0 = inlined_call_operand.vmem [shape: bf16[64,512], index: 0, kind: input, shape index: {}]   ;;  %s983_s2 = inlined_call_operand.vmem [shape: f32[64,1], index: 2, kind: input, shape index: {}]   ;;  %s984_s3 = inlined_call_operand.vmem [shape: f32[64,128], index: 3, kind: output, shape index: {}]  }
   0x1   :  { %v712_v0 = vld [vmem:[%s981_s1 + $0x40] sm:$0xff]   ;;  %710 = vset.pattern.permute.xlu0 %v768_v1  ;;  %711 = vset.pattern.permute.xlu1 %v768_v1  ;;  %v716_v5 = vld [vmem:[%s981_s1 + $0x48] sm:$0xff]   ;;  %v720_v9 = vld [vmem:[%s981_s1 + $0x50] sm:$0xff]  }
   0x2   :  { %v713_v2 = vld [vmem:[%s981_s1 + $0xc0] sm:$0xff]   ;;  %629 = vmatprep.subr.bf16.mxu0 %v712_v0  ;;  %v717_v6 = vld [vmem:[%s981_s1 + $0xc8] sm:$0xff]   ;;  %v721_v10 = vld [vmem:[%s981_s1 + $0xd0] sm:$0xff]  }
   0x3   :  { %v714_v3 = vld [vmem:[%s981_s1] sm:$0xff]   ;;  %669 = vmatprep.subr.bf16.mxu1 %v713_v2  ;;  %v718_v7 = vld [vmem:[%s981_s1 + $0x8] sm:$0xff]   ;;  %v722_v11 = vld [vmem:[%s981_s1 + $0x10] sm:$0xff]  }
   0x4   :  { %v715_v4 = vld [vmem:[%s981_s1 + $0x80] sm:$0xff]   ;;  %630 = vmatpush3.bf16.msra.mxu0 %v714_v3  ;;  %v719_v8 = vld [vmem:[%s981_s1 + $0x88] sm:$0xff]   ;;  %v723_v12 = vld [vmem:[%s981_s1 + $0x90] sm:$0xff]  }
   0x5   :  { %670 = vmatpush3.bf16.msra.mxu1 %v715_v4  ;;  %631 = vmatprep.subr.bf16.mxu0 %v716_v5  ;;  %v724_v13 = vld [vmem:[%s981_s1 + $0x58] sm:$0xff]   ;;  %v728_v17 = vld [vmem:[%s981_s1 + $0x60] sm:$0xff]   ;;  %v732_v21 = vld [vmem:[%s981_s1 + $0x68] sm:$0xff]  }
   0x6   :  { %671 = vmatprep.subr.bf16.mxu1 %v717_v6  ;;  %v725_v14 = vld [vmem:[%s981_s1 + $0xd8] sm:$0xff]   ;;  %v729_v18 = vld [vmem:[%s981_s1 + $0xe0] sm:$0xff]   ;;  %v733_v22 = vld [vmem:[%s981_s1 + $0xe8] sm:$0xff]  }
   0x7   :  { %v726_v15 = vld [vmem:[%s981_s1 + $0x18] sm:$0xff]   ;;  %v730_v19 = vld [vmem:[%s981_s1 + $0x20] sm:$0xff]   ;;  %v734_v23 = vld [vmem:[%s981_s1 + $0x28] sm:$0xff]  }
   0x8   :  { %632 = vmatpush3.bf16.msra.mxu0 %v718_v7  ;;  %v727_v16 = vld [vmem:[%s981_s1 + $0x98] sm:$0xff]   ;;  %v731_v20 = vld [vmem:[%s981_s1 + $0xa0] sm:$0xff]   ;;  %v735_v24 = vld [vmem:[%s981_s1 + $0xa8] sm:$0xff]  }
   0x9   :  { %672 = vmatpush3.bf16.msra.mxu1 %v719_v8  ;;  %633 = vmatprep.subr.bf16.mxu0 %v720_v9  ;;  %v736_v25 = vld [vmem:[%s981_s1 + $0x70] sm:$0xff]   ;;  %v740_v29 = vld [vmem:[%s981_s1 + $0x78] sm:$0xff]   ;;  %v95_v43 = vld [vmem:[%s983_s2] sm:$0xff] }
   0xa   :  { %673 = vmatprep.subr.bf16.mxu1 %v721_v10  ;;  %v737_v26 = vld [vmem:[%s981_s1 + $0xf0] sm:$0xff]   ;;  %v741_v30 = vld [vmem:[%s981_s1 + $0xf8] sm:$0xff]   ;;  %105 = vperm.xlu0 %710, %v95_v43   ;;  %v96_v45 = vld [vmem:[%s983_s2 + $0x8] sm:$0xff] }
   0xb   :  { %v738_v27 = vld [vmem:[%s981_s1 + $0x30] sm:$0xff]   ;;  %v742_v31 = vld [vmem:[%s981_s1 + $0x38] sm:$0xff]   ;;  %v99_v48 = vld [vmem:[%s983_s2 + $0x20] sm:$0xff] }
   0xc   :  { %634 = vmatpush3.bf16.msra.mxu0 %v722_v11  ;;  %v739_v28 = vld [vmem:[%s981_s1 + $0xb0] sm:$0xff]   ;;  %v743_v32 = vld [vmem:[%s981_s1 + $0xb8] sm:$0xff]   ;;  %v100_v51 = vld [vmem:[%s983_s2 + $0x28] sm:$0xff] }
   0xd   :  { %674 = vmatpush3.bf16.msra.mxu1 %v723_v12  ;;  %635 = vmatprep.subr.bf16.mxu0 %v724_v13  ;;  %v744_v33 = vld [vmem:[%s982_s0] ss:$16 sps:$4 sm:$0xff]   ;;  %v746_v34 = vld [vmem:[%s982_s0 + $0x4] ss:$16 sps:$4 sm:$0xff]   ;;  %v747_v35 = vld [vmem:[%s982_s0 + $0x8] ss:$16 sps:$4 sm:$0xff]  }
   0xe   :  { %675 = vmatprep.subr.bf16.mxu1 %v725_v14  ;;  %v749_v36 = vld [vmem:[%s982_s0 + $0xc] ss:$16 sps:$4 sm:$0xff]   ;;  %447 = vmatprep.mubr.bf16.mxu0 %v746_v34  ;;  %v750_v37 = vld [vmem:[%s982_s0 + $0x24] ss:$16 sps:$4 sm:$0xff]   ;;  %v754_v39 = vld [vmem:[%s982_s0 + $0x20] ss:$16 sps:$4 sm:$0xff]  }
   0xf   :  { %512 = vmatprep.mubr.bf16.mxu1 %v749_v36  ;;  %v752_v38 = vld [vmem:[%s982_s0 + $0x2c] ss:$16 sps:$4 sm:$0xff]   ;;  %v755_v40 = vld [vmem:[%s982_s0 + $0x28] ss:$16 sps:$4 sm:$0xff]   ;;  %v756_v41 = vld [vmem:[%s982_s0 + $0x44] ss:$16 sps:$4 sm:$0xff]   ;;  %110 = vperm.xlu0 %710, %v96_v45  }
  0x10   :  { %636 = vmatpush3.bf16.msra.mxu0 %v726_v15  ;;  %v758_v42 = vld [vmem:[%s982_s0 + $0x4c] ss:$16 sps:$4 sm:$0xff]   ;;  %v97_v44 = vld [vmem:[%s983_s2 + $0x10] sm:$0xff]  ;;  %v761_v49 = vld [vmem:[%s982_s0 + $0x48] ss:$16 sps:$4 sm:$0xff]  }
  0x11   :  { %676 = vmatpush3.bf16.msra.mxu1 %v727_v16  ;;  %637 = vmatprep.subr.bf16.mxu0 %v728_v17  ;;  %v98_v46 = vld [vmem:[%s983_s2 + $0x18] sm:$0xff]  ;;  %v760_v47 = vld [vmem:[%s982_s0 + $0x40] ss:$16 sps:$4 sm:$0xff]   ;;  %v762_v50 = vld [vmem:[%s982_s0 + $0x64] ss:$16 sps:$4 sm:$0xff]  }
  0x12   :  { %677 = vmatprep.subr.bf16.mxu1 %v729_v18  ;;  %115 = vperm.xlu1 %711, %v97_v44   ;;  %v764_v52 = vld [vmem:[%s982_s0 + $0x6c] ss:$16 sps:$4 sm:$0xff]   ;;  %v101_v53 = vld [vmem:[%s983_s2 + $0x30] sm:$0xff]  ;;  %v767_v56 = vld [vmem:[%s982_s0 + $0x68] ss:$16 sps:$4 sm:$0xff]  }
  0x13   :  { %125 = vperm.xlu0 %710, %v99_v48   ;;  %v102_v54 = vld [vmem:[%s983_s2 + $0x38] sm:$0xff]  ;;  %v766_v55 = vld [vmem:[%s982_s0 + $0x60] ss:$16 sps:$4 sm:$0xff]  }
  0x14   :  { %638 = vmatpush3.bf16.msra.mxu0 %v730_v19 }
  0x15   :  { %678 = vmatpush3.bf16.msra.mxu1 %v731_v20  ;;  %639 = vmatprep.subr.bf16.mxu0 %v732_v21 }
  0x16   :  { %679 = vmatprep.subr.bf16.mxu1 %v733_v22  ;;  %120 = vperm.xlu1 %711, %v98_v46  }
  0x17   :  { %135 = vperm.xlu0 %710, %v101_v53  }
  0x18   :  { %640 = vmatpush3.bf16.msra.mxu0 %v734_v23 }
  0x19   :  { %680 = vmatpush3.bf16.msra.mxu1 %v735_v24  ;;  %641 = vmatprep.subr.bf16.mxu0 %v736_v25 }
  0x1a   :  { %681 = vmatprep.subr.bf16.mxu1 %v737_v26  ;;  %130 = vperm.xlu1 %711, %v100_v51  }
  0x1c   :  { %642 = vmatpush3.bf16.msra.mxu0 %v738_v27 }
  0x1d   :  { %682 = vmatpush3.bf16.msra.mxu1 %v739_v28  ;;  %643 = vmatprep.subr.bf16.mxu0 %v740_v29 }
  0x1e   :  { %683 = vmatprep.subr.bf16.mxu1 %v741_v30  ;;  %140 = vperm.xlu1 %711, %v102_v54  }
  0x20   :  { %644 = vmatpush3.bf16.msra.mxu0 %v742_v31 }
  0x21   :  { %684 = vmatpush3.bf16.msra.mxu1 %v743_v32 }
  0x23   :  { %448 = vmatmul.mubr.bf16.vlgmr.msra.gmra.mrb[0].mxu0 %v744_v33 }
  0x24   :  { %513 = vmatmul.mubr.bf16.vlgmr.msra.gmra.mrb[0].mxu1 %v747_v35  ;;  %455 = vmatprep.mubr.bf16.mxu0 %v750_v37 }
  0x25   :  { %520 = vmatprep.mubr.bf16.mxu1 %v752_v38 }
  0x2b   :  { %456 = vmatmul.mubr.bf16.gmra.mrb[4].mxu0 %v754_v39 }
  0x2c   :  { %521 = vmatmul.mubr.bf16.gmra.mrb[4].mxu1 %v755_v40  ;;  %463 = vmatprep.mubr.bf16.mxu0 %v756_v41 }
  0x2d   :  { %528 = vmatprep.mubr.bf16.mxu1 %v758_v42 }
  0x33   :  { %464 = vmatmul.mubr.bf16.gmra.mrb[8].mxu0 %v760_v47 }
  0x34   :  { %529 = vmatmul.mubr.bf16.gmra.mrb[8].mxu1 %v761_v49  ;;  %471 = vmatprep.mubr.bf16.mxu0 %v762_v50 }
  0x35   :  { %536 = vmatprep.mubr.bf16.mxu1 %v764_v52 }
  0x3b   :  { %472 = vmatmul.mubr.bf16.gmra.mrb[12].mxu0 %v766_v55 }
  0x3c   :  { %537 = vmatmul.mubr.bf16.gmra.mrb[12].mxu1 %v767_v56 }
  0x89   :  { %v106_v57 = vpop.permute.xlu0 %105 }
  0x8e   :  { %v111_v59 = vpop.permute.xlu0 %110 }
  0x91   :  { %v116_v10 = vpop.permute.xlu1 %115 }
  0x92   :  { %v126_v34 = vpop.permute.xlu0 %125 }
  0x95   :  { %v121_v28 = vpop.permute.xlu1 %120 }
  0x96   :  { %v136_v54 = vpop.permute.xlu0 %135 }
  0x99   :  { %v131_v50 = vpop.permute.xlu1 %130 }
  0xf6   :  { %v645_v58 = vpop.f32.mrb[0].mxu0 }
  0xf7   :  { %v685_v60 = vpop.f32.mrb[0].mxu1  ;;  %v646_v61 = vpop.f32.mrb[1].mxu0 }
  0xf8   :  { %v647_v62 = vadd.f32 %v646_v61, %v645_v58  ;;  %v686_v63 = vpop.f32.mrb[1].mxu1  ;;  %v648_v0 = vpop.f32.mrb[2].mxu0 }
  0xf9   :  { %v687_v1 = vadd.f32 %v686_v63, %v685_v60  ;;  %v688_v2 = vpop.f32.mrb[2].mxu1  ;;  %v649_v3 = vpop.f32.mrb[3].mxu0 }
  0xfa   :  { %v450_v4 = vadd.f32 %v647_v62, %v106_v57  ;;  %v650_v5 = vadd.f32 %v649_v3, %v648_v0  ;;  %v689_v6 = vpop.f32.mrb[3].mxu1 }
  0xfb   :  { %v690_v7 = vadd.f32 %v689_v6, %v688_v2 }
  0xfc   :  { %v515_v8 = vadd.f32 %v687_v1, %v450_v4  ;;  %v453_v9 = vadd.f32 %v650_v5, %v111_v59 }
  0xfe   :  { %vm545_vm0 = vcmp.gt.f32.partialorder %v515_v8, 0.0  ;;  %v553_v11 = vmul.f32 0.2, %v515_v8  ;;  %v518_v12 = vadd.f32 %v690_v7, %v453_v9  ;;  %v651_v13 = vpop.f32.mrb[4].mxu0 }
  0xff   :  { %v691_v14 = vpop.f32.mrb[4].mxu1  ;;  %v652_v15 = vpop.f32.mrb[5].mxu0 }
 0x100   :  { %v561_v16 = vsel %vm545_vm0, %v515_v8, %v553_v11  ;;  %vm546_vm1 = vcmp.gt.f32.partialorder %v518_v12, 0.0  ;;  %v554_v17 = vmul.f32 0.2, %v518_v12  ;;  %v653_v18 = vadd.f32 %v652_v15, %v651_v13  ;;  %v692_v19 = vpop.f32.mrb[5].mxu1  ;;  %v654_v20 = vpop.f32.mrb[6].mxu0 }
 0x101   :  { %569 = vst [vmem:[%s984_s3] sm:$0xff] %v561_v16  ;;  %v693_v21 = vadd.f32 %v692_v19, %v691_v14  ;;  %v694_v22 = vpop.f32.mrb[6].mxu1  ;;  %v655_v23 = vpop.f32.mrb[7].mxu0 }
 0x102   :  { %v562_v24 = vsel %vm546_vm1, %v518_v12, %v554_v17  ;;  %v458_v25 = vadd.f32 %v653_v18, %v116_v10  ;;  %v656_v26 = vadd.f32 %v655_v23, %v654_v20  ;;  %v695_v27 = vpop.f32.mrb[7].mxu1  ;;  %v141_v8 = vpop.permute.xlu1 %140 }
 0x103   :  { %570 = vst [vmem:[%s984_s3 + $0x8] sm:$0xff] %v562_v24  ;;  %v696_v29 = vadd.f32 %v695_v27, %v694_v22 }
 0x104   :  { %v523_v30 = vadd.f32 %v693_v21, %v458_v25  ;;  %v461_v31 = vadd.f32 %v656_v26, %v121_v28 }
 0x106   :  { %vm547_vm2 = vcmp.gt.f32.partialorder %v523_v30, 0.0  ;;  %v555_v32 = vmul.f32 0.2, %v523_v30  ;;  %v526_v33 = vadd.f32 %v696_v29, %v461_v31  ;;  %v657_v35 = vpop.f32.mrb[8].mxu0 }
 0x107   :  { %v697_v36 = vpop.f32.mrb[8].mxu1  ;;  %v658_v37 = vpop.f32.mrb[9].mxu0 }
 0x108   :  { %v563_v38 = vsel %vm547_vm2, %v523_v30, %v555_v32  ;;  %vm548_vm3 = vcmp.gt.f32.partialorder %v526_v33, 0.0  ;;  %v556_v39 = vmul.f32 0.2, %v526_v33  ;;  %v659_v40 = vadd.f32 %v658_v37, %v657_v35  ;;  %v698_v41 = vpop.f32.mrb[9].mxu1  ;;  %v660_v42 = vpop.f32.mrb[10].mxu0 }
 0x109   :  { %571 = vst [vmem:[%s984_s3 + $0x10] sm:$0xff] %v563_v38  ;;  %v699_v43 = vadd.f32 %v698_v41, %v697_v36  ;;  %v700_v44 = vpop.f32.mrb[10].mxu1  ;;  %v661_v45 = vpop.f32.mrb[11].mxu0 }
 0x10a   :  { %v564_v46 = vsel %vm548_vm3, %v526_v33, %v556_v39  ;;  %v466_v47 = vadd.f32 %v659_v40, %v126_v34  ;;  %v662_v48 = vadd.f32 %v661_v45, %v660_v42  ;;  %v701_v49 = vpop.f32.mrb[11].mxu1 }
 0x10b   :  { %572 = vst [vmem:[%s984_s3 + $0x18] sm:$0xff] %v564_v46  ;;  %v702_v51 = vadd.f32 %v701_v49, %v700_v44 }
 0x10c   :  { %v531_v52 = vadd.f32 %v699_v43, %v466_v47  ;;  %v469_v53 = vadd.f32 %v662_v48, %v131_v50 }
 0x10e   :  { %vm549_vm4 = vcmp.gt.f32.partialorder %v531_v52, 0.0  ;;  %v557_v55 = vmul.f32 0.2, %v531_v52  ;;  %v534_v56 = vadd.f32 %v702_v51, %v469_v53  ;;  %v663_v57 = vpop.f32.mrb[12].mxu0 }
 0x10f   :  { %v703_v58 = vpop.f32.mrb[12].mxu1  ;;  %v664_v59 = vpop.f32.mrb[13].mxu0 }
 0x110   :  { %v565_v60 = vsel %vm549_vm4, %v531_v52, %v557_v55  ;;  %vm550_vm5 = vcmp.gt.f32.partialorder %v534_v56, 0.0  ;;  %v558_v61 = vmul.f32 0.2, %v534_v56  ;;  %v665_v62 = vadd.f32 %v664_v59, %v663_v57  ;;  %v704_v63 = vpop.f32.mrb[13].mxu1  ;;  %v666_v0 = vpop.f32.mrb[14].mxu0 }
 0x111   :  { %573 = vst [vmem:[%s984_s3 + $0x20] sm:$0xff] %v565_v60  ;;  %v705_v1 = vadd.f32 %v704_v63, %v703_v58  ;;  %v706_v2 = vpop.f32.mrb[14].mxu1  ;;  %v667_v3 = vpop.f32.mrb[15].mxu0 }
 0x112   :  { %v566_v4 = vsel %vm550_vm5, %v534_v56, %v558_v61  ;;  %v474_v5 = vadd.f32 %v665_v62, %v136_v54  ;;  %v668_v6 = vadd.f32 %v667_v3, %v666_v0  ;;  %v707_v7 = vpop.f32.mrb[15].mxu1 }
 0x113   :  { %574 = vst [vmem:[%s984_s3 + $0x28] sm:$0xff] %v566_v4  ;;  %v708_v9 = vadd.f32 %v707_v7, %v706_v2 }
 0x114   :  { %v539_v10 = vadd.f32 %v705_v1, %v474_v5  ;;  %v477_v11 = vadd.f32 %v668_v6, %v141_v8 }
 0x116   :  { %vm551_vm6 = vcmp.gt.f32.partialorder %v539_v10, 0.0  ;;  %v559_v12 = vmul.f32 0.2, %v539_v10  ;;  %v542_v13 = vadd.f32 %v708_v9, %v477_v11 }
 0x118   :  { %v567_v14 = vsel %vm551_vm6, %v539_v10, %v559_v12  ;;  %vm552_vm7 = vcmp.gt.f32.partialorder %v542_v13, 0.0  ;;  %v560_v15 = vmul.f32 0.2, %v542_v13 }
 0x119   :  { %575 = vst [vmem:[%s984_s3 + $0x30] sm:$0xff] %v567_v14 }
 0x11a   :  { %v568_v16 = vsel %vm552_vm7, %v542_v13, %v560_v15 }
 0x11b   :  { %576 = vst [vmem:[%s984_s3 + $0x38] sm:$0xff] %v568_v16 }

// kernel: d_net128_la_forward.13
= control target key start
LH: loop header
LB: loop body
LE: loop exit
PB: predicated region body
PF: predicated region fallthrough
CT: control target
= control target key end

     0   :  { %v1915_v1 = vmov 0   ;;  %vm1443_vm1 = vcmask 261120   ;;  %s2480_s1 = inlined_call_operand.vmem [shape: bf16[1024,32], index: 1, kind: input, shape index: {}]   ;;  %s2481_s0 = inlined_call_operand.vmem [shape: bf16[128,1024], index: 0, kind: input, shape index: {}]   ;;  %s2482_s2 = inlined_call_operand.vmem [shape: f32[128,1], index: 2, kind: input, shape index: {}]   ;;  %s2483_s3 = inlined_call_operand.vmem [shape: f32[128,32], index: 3, kind: output, shape index: {}]  }
   0x1   :  { %v1851_v0 = vld [vmem:[%s2480_s1 + $0x40] sm:$0xff]   ;;  %1849 = vset.pattern.permute.xlu0 %v1915_v1  ;;  %1850 = vset.pattern.permute.xlu1 %v1915_v1  ;;  %v1855_v5 = vld [vmem:[%s2480_s1 + $0x48] sm:$0xff]   ;;  %v1859_v9 = vld [vmem:[%s2480_s1 + $0x50] sm:$0xff]  }
   0x2   :  { %v1852_v2 = vld [vmem:[%s2480_s1 + $0xc0] sm:$0xff]   ;;  %1592 = vmatprep.subr.bf16.mxu0 %v1851_v0  ;;  %v1856_v6 = vld [vmem:[%s2480_s1 + $0xc8] sm:$0xff]   ;;  %v1860_v10 = vld [vmem:[%s2480_s1 + $0xd0] sm:$0xff]  }
   0x3   :  { %v1853_v3 = vld [vmem:[%s2480_s1] sm:$0xff]   ;;  %1656 = vmatprep.subr.bf16.mxu1 %v1852_v2  ;;  %v1857_v7 = vld [vmem:[%s2480_s1 + $0x8] sm:$0xff]   ;;  %v1861_v11 = vld [vmem:[%s2480_s1 + $0x10] sm:$0xff]  }
   0x4   :  { %v1854_v4 = vld [vmem:[%s2480_s1 + $0x80] sm:$0xff]   ;;  %1593 = vmatpush3.bf16.msra.mxu0 %v1853_v3  ;;  %v1858_v8 = vld [vmem:[%s2480_s1 + $0x88] sm:$0xff]   ;;  %v1862_v12 = vld [vmem:[%s2480_s1 + $0x90] sm:$0xff]  }
   0x5   :  { %1657 = vmatpush3.bf16.msra.mxu1 %v1854_v4  ;;  %1594 = vmatprep.subr.bf16.mxu0 %v1855_v5  ;;  %v1863_v13 = vld [vmem:[%s2480_s1 + $0x58] sm:$0xff]   ;;  %v1867_v17 = vld [vmem:[%s2480_s1 + $0x60] sm:$0xff]   ;;  %v1871_v21 = vld [vmem:[%s2480_s1 + $0x68] sm:$0xff]  }
   0x6   :  { %1658 = vmatprep.subr.bf16.mxu1 %v1856_v6  ;;  %v1864_v14 = vld [vmem:[%s2480_s1 + $0xd8] sm:$0xff]   ;;  %v1868_v18 = vld [vmem:[%s2480_s1 + $0xe0] sm:$0xff]   ;;  %v1872_v22 = vld [vmem:[%s2480_s1 + $0xe8] sm:$0xff]  }
   0x7   :  { %v1865_v15 = vld [vmem:[%s2480_s1 + $0x18] sm:$0xff]   ;;  %v1869_v19 = vld [vmem:[%s2480_s1 + $0x20] sm:$0xff]   ;;  %v1873_v23 = vld [vmem:[%s2480_s1 + $0x28] sm:$0xff]  }
   0x8   :  { %1595 = vmatpush3.bf16.msra.mxu0 %v1857_v7  ;;  %v1866_v16 = vld [vmem:[%s2480_s1 + $0x98] sm:$0xff]   ;;  %v1870_v20 = vld [vmem:[%s2480_s1 + $0xa0] sm:$0xff]   ;;  %v1874_v24 = vld [vmem:[%s2480_s1 + $0xa8] sm:$0xff]  }
   0x9   :  { %1659 = vmatpush3.bf16.msra.mxu1 %v1858_v8  ;;  %1596 = vmatprep.subr.bf16.mxu0 %v1859_v9  ;;  %v1875_v25 = vld [vmem:[%s2480_s1 + $0x70] sm:$0xff]   ;;  %v1879_v29 = vld [vmem:[%s2480_s1 + $0x78] sm:$0xff]   ;;  %v15_v33 = vld [vmem:[%s2481_s0] sm:$0xff] }
   0xa   :  { %1660 = vmatprep.subr.bf16.mxu1 %v1860_v10  ;;  %v1876_v26 = vld [vmem:[%s2480_s1 + $0xf0] sm:$0xff]   ;;  %v1880_v30 = vld [vmem:[%s2480_s1 + $0xf8] sm:$0xff]   ;;  %v19_v34 = vld [vmem:[%s2481_s0 + $0x20] sm:$0xff] }
   0xb   :  { %v1877_v27 = vld [vmem:[%s2480_s1 + $0x30] sm:$0xff]   ;;  %v1881_v31 = vld [vmem:[%s2480_s1 + $0x38] sm:$0xff]   ;;  %v16_v35 = vld [vmem:[%s2481_s0 + $0x8] sm:$0xff]  ;;  %v1464_v36 = vcombine.low %v15_v33, %v19_v34  ;;  %v1465_v37 = vcombine.high %v15_v33, %v19_v34 }
   0xc   :  { %1597 = vmatpush3.bf16.msra.mxu0 %v1861_v11  ;;  %v1878_v28 = vld [vmem:[%s2480_s1 + $0xb0] sm:$0xff]   ;;  %v1882_v32 = vld [vmem:[%s2480_s1 + $0xb8] sm:$0xff]   ;;  %v20_v38 = vld [vmem:[%s2481_s0 + $0x28] sm:$0xff] }
   0xd   :  { %1661 = vmatpush3.bf16.msra.mxu1 %v1862_v12  ;;  %1598 = vmatprep.subr.bf16.mxu0 %v1863_v13  ;;  %v1466_v39 = vcombine.low %v16_v35, %v20_v38  ;;  %v1467_v40 = vcombine.high %v16_v35, %v20_v38  ;;  %v1883_v41 = vld [vmem:[%s2480_s1 + $0x140] sm:$0xff]   ;;  %v24_v48 = vld [vmem:[%s2481_s0 + $0x48] sm:$0xff]  ;;  %v1891_v63 = vld [vmem:[%s2480_s1 + $0x150] sm:$0xff]  }
   0xe   :  { %1662 = vmatprep.subr.bf16.mxu1 %v1864_v14  ;;  %1039 = vmatprep.mubr.bf16.mxu0 %v1465_v37  ;;  %v1884_v42 = vld [vmem:[%s2480_s1 + $0x100] sm:$0xff]   ;;  %v28_v49 = vld [vmem:[%s2481_s0 + $0x68] sm:$0xff]  ;;  %v1892_v0 = vld [vmem:[%s2480_s1 + $0x110] sm:$0xff]  }
   0xf   :  { %1136 = vmatprep.mubr.bf16.mxu1 %v1467_v40  ;;  %v1885_v43 = vld [vmem:[%s2480_s1 + $0x1c0] sm:$0xff]   ;;  %v1475_v50 = vcombine.high %v24_v48, %v28_v49  ;;  %v1887_v51 = vld [vmem:[%s2480_s1 + $0x148] sm:$0xff]   ;;  %v1474_v54 = vcombine.low %v24_v48, %v28_v49  ;;  %v1893_v1 = vld [vmem:[%s2480_s1 + $0x1d0] sm:$0xff]  }
  0x10   :  { %1599 = vmatpush3.bf16.msra.mxu0 %v1865_v15  ;;  %v1886_v44 = vld [vmem:[%s2480_s1 + $0x180] sm:$0xff]   ;;  %v1888_v53 = vld [vmem:[%s2480_s1 + $0x108] sm:$0xff]   ;;  %v1894_v2 = vld [vmem:[%s2480_s1 + $0x190] sm:$0xff]  }
  0x11   :  { %1663 = vmatpush3.bf16.msra.mxu1 %v1866_v16  ;;  %1600 = vmatprep.subr.bf16.mxu0 %v1867_v17  ;;  %v23_v45 = vld [vmem:[%s2481_s0 + $0x40] sm:$0xff]  ;;  %v1889_v55 = vld [vmem:[%s2480_s1 + $0x1c8] sm:$0xff]   ;;  %v1895_v11 = vld [vmem:[%s2480_s1 + $0x158] sm:$0xff]  }
  0x12   :  { %1664 = vmatprep.subr.bf16.mxu1 %v1868_v18  ;;  %v27_v46 = vld [vmem:[%s2481_s0 + $0x60] sm:$0xff]  ;;  %v1890_v56 = vld [vmem:[%s2480_s1 + $0x188] sm:$0xff]   ;;  %v1896_v12 = vld [vmem:[%s2480_s1 + $0x118] sm:$0xff]  }
  0x13   :  { %v1473_v47 = vcombine.high %v23_v45, %v27_v46  ;;  %v1472_v52 = vcombine.low %v23_v45, %v27_v46  ;;  %v31_v57 = vld [vmem:[%s2481_s0 + $0x80] sm:$0xff]  ;;  %v32_v59 = vld [vmem:[%s2481_s0 + $0x88] sm:$0xff]  ;;  %v1897_v13 = vld [vmem:[%s2480_s1 + $0x1d8] sm:$0xff]  }
  0x14   :  { %1601 = vmatpush3.bf16.msra.mxu0 %v1869_v19  ;;  %v35_v58 = vld [vmem:[%s2481_s0 + $0xa0] sm:$0xff]  ;;  %v36_v60 = vld [vmem:[%s2481_s0 + $0xa8] sm:$0xff]  ;;  %v1898_v14 = vld [vmem:[%s2480_s1 + $0x198] sm:$0xff]  }
  0x15   :  { %1665 = vmatpush3.bf16.msra.mxu1 %v1870_v20  ;;  %1602 = vmatprep.subr.bf16.mxu0 %v1871_v21  ;;  %v1481_v61 = vcombine.high %v31_v57, %v35_v58  ;;  %v1483_v62 = vcombine.high %v32_v59, %v36_v60  ;;  %v1480_v3 = vcombine.low %v31_v57, %v35_v58  ;;  %v39_v4 = vld [vmem:[%s2481_s0 + $0xc0] sm:$0xff]  ;;  %v40_v6 = vld [vmem:[%s2481_s0 + $0xc8] sm:$0xff]  ;;  %v1908_v40 = vld [vmem:[%s2480_s1 + $0x130] sm:$0xff]  }
  0x16   :  { %1666 = vmatprep.subr.bf16.mxu1 %v1872_v22  ;;  %v43_v5 = vld [vmem:[%s2481_s0 + $0xe0] sm:$0xff]  ;;  %v1482_v7 = vcombine.low %v32_v59, %v36_v60  ;;  %v44_v9 = vld [vmem:[%s2481_s0 + $0xe8] sm:$0xff]  ;;  %v1912_v49 = vld [vmem:[%s2480_s1 + $0x138] sm:$0xff]  }
  0x17   :  { %v1489_v8 = vcombine.high %v39_v4, %v43_v5  ;;  %v1491_v10 = vcombine.high %v40_v6, %v44_v9  ;;  %v47_v15 = vld [vmem:[%s2481_s0 + $0x100] sm:$0xff]  ;;  %v48_v17 = vld [vmem:[%s2481_s0 + $0x108] sm:$0xff]  ;;  %v1488_v20 = vcombine.low %v39_v4, %v43_v5  ;;  %v1490_v22 = vcombine.low %v40_v6, %v44_v9  ;;  %v17_v4 = vld [vmem:[%s2481_s0 + $0x10] sm:$0xff] }
  0x18   :  { %1603 = vmatpush3.bf16.msra.mxu0 %v1873_v23  ;;  %v51_v16 = vld [vmem:[%s2481_s0 + $0x120] sm:$0xff]  ;;  %v52_v18 = vld [vmem:[%s2481_s0 + $0x128] sm:$0xff]  ;;  %v21_v5 = vld [vmem:[%s2481_s0 + $0x30] sm:$0xff] }
  0x19   :  { %1667 = vmatpush3.bf16.msra.mxu1 %v1874_v24  ;;  %1604 = vmatprep.subr.bf16.mxu0 %v1875_v25  ;;  %v1899_v19 = vld [vmem:[%s2480_s1 + $0x160] sm:$0xff]   ;;  %v1497_v23 = vcombine.high %v47_v15, %v51_v16  ;;  %v1499_v25 = vcombine.high %v48_v17, %v52_v18  ;;  %v1905_v33 = vld [vmem:[%s2480_s1 + $0x1e8] sm:$0xff]   ;;  %v1496_v35 = vcombine.low %v47_v15, %v51_v16  ;;  %v18_v6 = vld [vmem:[%s2481_s0 + $0x18] sm:$0xff] }
  0x1a   :  { %1668 = vmatprep.subr.bf16.mxu1 %v1876_v26  ;;  %v1900_v21 = vld [vmem:[%s2480_s1 + $0x120] sm:$0xff]   ;;  %v1906_v34 = vld [vmem:[%s2480_s1 + $0x1a8] sm:$0xff]   ;;  %v25_v16 = vld [vmem:[%s2481_s0 + $0x50] sm:$0xff] }
  0x1b   :  { %v1901_v24 = vld [vmem:[%s2480_s1 + $0x1e0] sm:$0xff]   ;;  %v64_v45 = vld [vmem:[%s2481_s0 + $0x188] sm:$0xff] }
  0x1c   :  { %1605 = vmatpush3.bf16.msra.mxu0 %v1877_v27  ;;  %v1902_v26 = vld [vmem:[%s2480_s1 + $0x1a0] sm:$0xff]   ;;  %v68_v46 = vld [vmem:[%s2481_s0 + $0x1a8] sm:$0xff] }
  0x1d   :  { %1669 = vmatpush3.bf16.msra.mxu1 %v1878_v28  ;;  %1606 = vmatprep.subr.bf16.mxu0 %v1879_v29  ;;  %v55_v27 = vld [vmem:[%s2481_s0 + $0x140] sm:$0xff]  ;;  %v1903_v29 = vld [vmem:[%s2480_s1 + $0x168] sm:$0xff]  }
  0x1e   :  { %1670 = vmatprep.subr.bf16.mxu1 %v1880_v30  ;;  %v59_v28 = vld [vmem:[%s2481_s0 + $0x160] sm:$0xff]  ;;  %v56_v30 = vld [vmem:[%s2481_s0 + $0x148] sm:$0xff] }
  0x1f   :  { %v1505_v37 = vcombine.high %v55_v27, %v59_v28  ;;  %v1504_v48 = vcombine.low %v55_v27, %v59_v28  ;;  %v207_v57 = vld [vmem:[%s2482_s2] sm:$0xff]  ;;  %v72_v58 = vld [vmem:[%s2481_s0 + $0x1c8] sm:$0xff]  ;;  %v33_v28 = vld [vmem:[%s2481_s0 + $0x90] sm:$0xff] }
  0x20   :  { %1607 = vmatpush3.bf16.msra.mxu0 %v1881_v31  ;;  %v60_v31 = vld [vmem:[%s2481_s0 + $0x168] sm:$0xff]  ;;  %225 = vperm.xlu0 %1849, %v207_v57   ;;  %v215_v15 = vld [vmem:[%s2482_s2 + $0x40] sm:$0xff]  ;;  %v58_v57 = vld [vmem:[%s2481_s0 + $0x158] sm:$0xff] }
  0x21   :  { %1671 = vmatpush3.bf16.msra.mxu1 %v1882_v32  ;;  %1720 = vmatprep.subr.bf16.mxu0 %v1883_v41  ;;  %v1904_v32 = vld [vmem:[%s2480_s1 + $0x128] sm:$0xff]   ;;  %v1507_v38 = vcombine.high %v56_v30, %v60_v31  ;;  %v1909_v41 = vld [vmem:[%s2480_s1 + $0x1f0] sm:$0xff]   ;;  %v219_v27 = vld [vmem:[%s2482_s2 + $0x60] sm:$0xff] }
  0x22   :  { %1784 = vmatprep.subr.bf16.mxu1 %v1885_v43  ;;  %v67_v43 = vld [vmem:[%s2481_s0 + $0x1a0] sm:$0xff]  ;;  %v76_v59 = vld [vmem:[%s2481_s0 + $0x1e8] sm:$0xff] }
  0x23   :  { %1040 = vmatmul.mubr.bf16.vlgmr.msra.gmra.mrb[0].mxu0 %v1464_v36  ;;  %v1498_v36 = vcombine.low %v48_v17, %v52_v18  ;;  %v29_v17 = vld [vmem:[%s2481_s0 + $0x70] sm:$0xff]  ;;  %v26_v18 = vld [vmem:[%s2481_s0 + $0x58] sm:$0xff] }
  0x24   :  { %1137 = vmatmul.mubr.bf16.vlgmr.msra.gmra.mrb[0].mxu1 %v1466_v39  ;;  %1721 = vmatpush3.bf16.msra.mxu0 %v1884_v42  ;;  %v1907_v39 = vld [vmem:[%s2480_s1 + $0x170] sm:$0xff]   ;;  %v63_v42 = vld [vmem:[%s2481_s0 + $0x180] sm:$0xff] }
  0x25   :  { %1785 = vmatpush3.bf16.msra.mxu1 %v1886_v44  ;;  %1047 = vmatprep.mubr.bf16.mxu0 %v1473_v47  ;;  %v1910_v44 = vld [vmem:[%s2480_s1 + $0x1b0] sm:$0xff]   ;;  %v1911_v47 = vld [vmem:[%s2480_s1 + $0x178] sm:$0xff]   ;;  %v1512_v60 = vcombine.low %v63_v42, %v67_v43 }
  0x26   :  { %1144 = vmatprep.mubr.bf16.mxu1 %v1475_v50  ;;  %1722 = vmatprep.subr.bf16.mxu0 %v1887_v51  ;;  %v1506_v50 = vcombine.low %v56_v30, %v60_v31  ;;  %v1513_v51 = vcombine.high %v63_v42, %v67_v43  ;;  %v34_v30 = vld [vmem:[%s2481_s0 + $0x98] sm:$0xff] }
  0x27   :  { %1786 = vmatprep.subr.bf16.mxu1 %v1889_v55  ;;  %v71_v55 = vld [vmem:[%s2481_s0 + $0x1c0] sm:$0xff]  ;;  %v38_v31 = vld [vmem:[%s2481_s0 + $0xb8] sm:$0xff] }
  0x28   :  { %1723 = vmatpush3.bf16.msra.mxu0 %v1888_v53  ;;  %v1515_v53 = vcombine.high %v64_v45, %v68_v46  ;;  %v46_v42 = vld [vmem:[%s2481_s0 + $0xf8] sm:$0xff] }
  0x29   :  { %1787 = vmatpush3.bf16.msra.mxu1 %v1890_v56  ;;  %1724 = vmatprep.subr.bf16.mxu0 %v1891_v63  ;;  %v75_v56 = vld [vmem:[%s2481_s0 + $0x1e0] sm:$0xff]  ;;  %v1514_v63 = vcombine.low %v64_v45, %v68_v46 }
  0x2a   :  { %1788 = vmatprep.subr.bf16.mxu1 %v1893_v1  ;;  %v1523_v1 = vcombine.high %v72_v58, %v76_v59  ;;  %v1520_v9 = vcombine.low %v71_v55, %v75_v56 }
  0x2b   :  { %1048 = vmatmul.mubr.bf16.gmra.mrb[4].mxu0 %v1472_v52  ;;  %v1913_v52 = vld [vmem:[%s2480_s1 + $0x1f8] sm:$0xff]  }
  0x2c   :  { %1145 = vmatmul.mubr.bf16.gmra.mrb[4].mxu1 %v1474_v54  ;;  %1055 = vmatprep.mubr.bf16.mxu0 %v1481_v61  ;;  %v1914_v54 = vld [vmem:[%s2480_s1 + $0x1b8] sm:$0xff]   ;;  %v208_v61 = vld [vmem:[%s2482_s2 + $0x8] sm:$0xff] }
  0x2d   :  { %1152 = vmatprep.mubr.bf16.mxu1 %v1483_v62  ;;  %1725 = vmatpush3.bf16.msra.mxu0 %v1892_v0  ;;  %v209_v62 = vld [vmem:[%s2482_s2 + $0x10] sm:$0xff]  ;;  %v1521_v0 = vcombine.high %v71_v55, %v75_v56 }
  0x2e   :  { %1789 = vmatpush3.bf16.msra.mxu1 %v1894_v2  ;;  %1726 = vmatprep.subr.bf16.mxu0 %v1895_v11  ;;  %v210_v2 = vld [vmem:[%s2482_s2 + $0x18] sm:$0xff]  ;;  %v1522_v11 = vcombine.low %v72_v58, %v76_v59  ;;  %v57_v55 = vld [vmem:[%s2481_s0 + $0x150] sm:$0xff] }
  0x2f   :  { %1790 = vmatprep.subr.bf16.mxu1 %v1897_v13  ;;  %235 = vperm.xlu1 %1850, %v209_v62   ;;  %v61_v56 = vld [vmem:[%s2481_s0 + $0x170] sm:$0xff]  ;;  %v62_v58 = vld [vmem:[%s2481_s0 + $0x178] sm:$0xff] }
  0x30   :  { %230 = vperm.xlu0 %1849, %v208_v61   ;;  %v1509_v61 = vcombine.high %v57_v55, %v61_v56  ;;  %v1511_v62 = vcombine.high %v58_v57, %v62_v58 }
  0x31   :  { %1727 = vmatpush3.bf16.msra.mxu0 %v1896_v12  ;;  %v1469_v12 = vcombine.high %v17_v4, %v21_v5 }
  0x32   :  { %1791 = vmatpush3.bf16.msra.mxu1 %v1898_v14  ;;  %1728 = vmatprep.subr.bf16.mxu0 %v1899_v19  ;;  %v214_v14 = vld [vmem:[%s2482_s2 + $0x38] sm:$0xff] }
  0x33   :  { %1056 = vmatmul.mubr.bf16.gmra.mrb[8].mxu0 %v1480_v3  ;;  %1792 = vmatprep.subr.bf16.mxu1 %v1901_v24  ;;  %v211_v3 = vld [vmem:[%s2482_s2 + $0x20] sm:$0xff]  ;;  %v30_v19 = vld [vmem:[%s2481_s0 + $0x78] sm:$0xff]  ;;  %v1477_v24 = vcombine.high %v25_v16, %v29_v17 }
  0x34   :  { %1153 = vmatmul.mubr.bf16.gmra.mrb[8].mxu1 %v1482_v7  ;;  %1063 = vmatprep.mubr.bf16.mxu0 %v1489_v8  ;;  %v22_v7 = vld [vmem:[%s2481_s0 + $0x38] sm:$0xff]  ;;  %v212_v8 = vld [vmem:[%s2482_s2 + $0x28] sm:$0xff] }
  0x35   :  { %1160 = vmatprep.mubr.bf16.mxu1 %v1491_v10  ;;  %1729 = vmatpush3.bf16.msra.mxu0 %v1900_v21  ;;  %v213_v10 = vld [vmem:[%s2482_s2 + $0x30] sm:$0xff]  ;;  %v1471_v13 = vcombine.high %v18_v6, %v22_v7  ;;  %v1468_v21 = vcombine.low %v17_v4, %v21_v5  ;;  %v1510_v4 = vcombine.low %v58_v57, %v62_v58 }
  0x36   :  { %1793 = vmatpush3.bf16.msra.mxu1 %v1902_v26  ;;  %1730 = vmatprep.subr.bf16.mxu0 %v1903_v29  ;;  %v218_v26 = vld [vmem:[%s2482_s2 + $0x58] sm:$0xff]  ;;  %v37_v29 = vld [vmem:[%s2481_s0 + $0xb0] sm:$0xff] }
  0x37   :  { %1794 = vmatprep.subr.bf16.mxu1 %v1905_v33  ;;  %240 = vperm.xlu1 %1850, %v210_v2   ;;  %v1476_v33 = vcombine.low %v25_v16, %v29_v17  ;;  %v1484_v43 = vcombine.low %v33_v28, %v37_v29  ;;  %v70_v2 = vld [vmem:[%s2481_s0 + $0x1b8] sm:$0xff] }
  0x38   :  { %245 = vperm.xlu0 %1849, %v211_v3   ;;  %v1508_v3 = vcombine.low %v57_v55, %v61_v56 }
  0x39   :  { %1731 = vmatpush3.bf16.msra.mxu0 %v1904_v32  ;;  %v220_v32 = vld [vmem:[%s2482_s2 + $0x68] sm:$0xff] }
  0x3a   :  { %1795 = vmatpush3.bf16.msra.mxu1 %v1906_v34  ;;  %1732 = vmatprep.subr.bf16.mxu0 %v1907_v39  ;;  %v221_v34 = vld [vmem:[%s2482_s2 + $0x70] sm:$0xff] }
  0x3b   :  { %1064 = vmatmul.mubr.bf16.gmra.mrb[12].mxu0 %v1488_v20  ;;  %1796 = vmatprep.subr.bf16.mxu1 %v1909_v41  ;;  %v216_v20 = vld [vmem:[%s2482_s2 + $0x48] sm:$0xff]  ;;  %v41_v39 = vld [vmem:[%s2481_s0 + $0xd0] sm:$0xff]  ;;  %v42_v41 = vld [vmem:[%s2481_s0 + $0xd8] sm:$0xff] }
  0x3c   :  { %1161 = vmatmul.mubr.bf16.gmra.mrb[12].mxu1 %v1490_v22  ;;  %1071 = vmatprep.mubr.bf16.mxu0 %v1497_v23  ;;  %v217_v22 = vld [vmem:[%s2482_s2 + $0x50] sm:$0xff]  ;;  %v1470_v23 = vcombine.low %v18_v6, %v22_v7  ;;  %v1495_v46 = vcombine.high %v42_v41, %v46_v42 }
  0x3d   :  { %1168 = vmatprep.mubr.bf16.mxu1 %v1499_v25  ;;  %1733 = vmatpush3.bf16.msra.mxu0 %v1908_v40  ;;  %v1479_v25 = vcombine.high %v26_v18, %v30_v19  ;;  %v45_v40 = vld [vmem:[%s2481_s0 + $0xf0] sm:$0xff] }
  0x3e   :  { %1797 = vmatpush3.bf16.msra.mxu1 %v1910_v44  ;;  %1734 = vmatprep.subr.bf16.mxu0 %v1911_v47  ;;  %v1486_v44 = vcombine.low %v34_v30, %v38_v31  ;;  %v1493_v45 = vcombine.high %v41_v39, %v45_v40  ;;  %v49_v47 = vld [vmem:[%s2481_s0 + $0x110] sm:$0xff] }
  0x3f   :  { %1798 = vmatprep.subr.bf16.mxu1 %v1913_v52  ;;  %250 = vperm.xlu1 %1850, %v212_v8   ;;  %v1494_v52 = vcombine.low %v42_v41, %v46_v42  ;;  %v73_v7 = vld [vmem:[%s2481_s0 + $0x1d0] sm:$0xff] }
  0x40   :  { %255 = vperm.xlu0 %1849, %v213_v10   ;;  %v77_v8 = vld [vmem:[%s2481_s0 + $0x1f0] sm:$0xff]  ;;  %v78_v10 = vld [vmem:[%s2481_s0 + $0x1f8] sm:$0xff] }
  0x41   :  { %1735 = vmatpush3.bf16.msra.mxu0 %v1912_v49  ;;  %v50_v49 = vld [vmem:[%s2481_s0 + $0x118] sm:$0xff] }
  0x42   :  { %1799 = vmatpush3.bf16.msra.mxu1 %v1914_v54 }
  0x43   :  { %1072 = vmatmul.mubr.bf16.gmra.mrb[16].mxu0 %v1496_v35  ;;  %260 = vperm.xlu1 %1850, %v214_v14   ;;  %v1478_v35 = vcombine.low %v26_v18, %v30_v19 }
  0x44   :  { %1169 = vmatmul.mubr.bf16.gmra.mrb[16].mxu1 %v1498_v36  ;;  %1079 = vmatprep.mubr.bf16.mxu0 %v1505_v37  ;;  %v1485_v36 = vcombine.high %v33_v28, %v37_v29  ;;  %v1487_v37 = vcombine.high %v34_v30, %v38_v31 }
  0x45   :  { %1176 = vmatprep.mubr.bf16.mxu1 %v1507_v38  ;;  %265 = vperm.xlu0 %1849, %v215_v15   ;;  %v222_v38 = vld [vmem:[%s2482_s2 + $0x78] sm:$0xff]  ;;  %v1524_v15 = vcombine.low %v73_v7, %v77_v8 }
  0x47   :  { %270 = vperm.xlu1 %1850, %v216_v20  }
  0x49   :  { %275 = vperm.xlu0 %1849, %v217_v22  }
  0x4b   :  { %1080 = vmatmul.mubr.bf16.gmra.mrb[20].mxu0 %v1504_v48  ;;  %280 = vperm.xlu1 %1850, %v218_v26   ;;  %v53_v48 = vld [vmem:[%s2481_s0 + $0x130] sm:$0xff] }
  0x4c   :  { %1177 = vmatmul.mubr.bf16.gmra.mrb[20].mxu1 %v1506_v50  ;;  %1087 = vmatprep.mubr.bf16.mxu0 %v1513_v51  ;;  %v54_v50 = vld [vmem:[%s2481_s0 + $0x138] sm:$0xff]  ;;  %v1492_v51 = vcombine.low %v41_v39, %v45_v40  ;;  %v1500_v59 = vcombine.low %v49_v47, %v53_v48 }
  0x4d   :  { %1184 = vmatprep.mubr.bf16.mxu1 %v1515_v53  ;;  %285 = vperm.xlu0 %1849, %v219_v27   ;;  %v1501_v53 = vcombine.high %v49_v47, %v53_v48  ;;  %v1503_v54 = vcombine.high %v50_v49, %v54_v50 }
  0x4f   :  { %290 = vperm.xlu1 %1850, %v220_v32  }
  0x51   :  { %295 = vperm.xlu0 %1849, %v221_v34  }
  0x53   :  { %1088 = vmatmul.mubr.bf16.gmra.mrb[24].mxu0 %v1512_v60  ;;  %300 = vperm.xlu1 %1850, %v222_v38   ;;  %v1502_v60 = vcombine.low %v50_v49, %v54_v50 }
  0x54   :  { %1185 = vmatmul.mubr.bf16.gmra.mrb[24].mxu1 %v1514_v63  ;;  %1095 = vmatprep.mubr.bf16.mxu0 %v1521_v0  ;;  %v65_v63 = vld [vmem:[%s2481_s0 + $0x190] sm:$0xff] }
  0x55   :  { %1192 = vmatprep.mubr.bf16.mxu1 %v1523_v1  ;;  %v69_v0 = vld [vmem:[%s2481_s0 + $0x1b0] sm:$0xff]  ;;  %v66_v1 = vld [vmem:[%s2481_s0 + $0x198] sm:$0xff] }
  0x56   :  { %v1517_v5 = vcombine.high %v65_v63, %v69_v0  ;;  %v1519_v6 = vcombine.high %v66_v1, %v70_v2 }
  0x5b   :  { %1096 = vmatmul.mubr.bf16.gmra.mrb[28].mxu0 %v1520_v9  ;;  %v74_v9 = vld [vmem:[%s2481_s0 + $0x1d8] sm:$0xff] }
  0x5c   :  { %1193 = vmatmul.mubr.bf16.gmra.mrb[28].mxu1 %v1522_v11  ;;  %1233 = vmatprep.mubr.bf16.mxu0 %v1469_v12  ;;  %v1516_v11 = vcombine.low %v65_v63, %v69_v0  ;;  %v1518_v12 = vcombine.low %v66_v1, %v70_v2  ;;  %v1527_v14 = vcombine.high %v74_v9, %v78_v10 }
  0x5d   :  { %1330 = vmatprep.mubr.bf16.mxu1 %v1471_v13  ;;  %v1525_v13 = vcombine.high %v73_v7, %v77_v8  ;;  %v1526_v16 = vcombine.low %v74_v9, %v78_v10 }
  0x63   :  { %1234 = vmatmul.mubr.bf16.vlgmr.msra.gmra.mrb[32].mxu0 %v1468_v21 }
  0x64   :  { %1331 = vmatmul.mubr.bf16.vlgmr.msra.gmra.mrb[32].mxu1 %v1470_v23  ;;  %1241 = vmatprep.mubr.bf16.mxu0 %v1477_v24 }
  0x65   :  { %1338 = vmatprep.mubr.bf16.mxu1 %v1479_v25 }
  0x6b   :  { %1242 = vmatmul.mubr.bf16.gmra.mrb[36].mxu0 %v1476_v33 }
  0x6c   :  { %1339 = vmatmul.mubr.bf16.gmra.mrb[36].mxu1 %v1478_v35  ;;  %1249 = vmatprep.mubr.bf16.mxu0 %v1485_v36 }
  0x6d   :  { %1346 = vmatprep.mubr.bf16.mxu1 %v1487_v37 }
  0x73   :  { %1250 = vmatmul.mubr.bf16.gmra.mrb[40].mxu0 %v1484_v43 }
  0x74   :  { %1347 = vmatmul.mubr.bf16.gmra.mrb[40].mxu1 %v1486_v44  ;;  %1257 = vmatprep.mubr.bf16.mxu0 %v1493_v45 }
  0x75   :  { %1354 = vmatprep.mubr.bf16.mxu1 %v1495_v46 }
  0x7b   :  { %1258 = vmatmul.mubr.bf16.gmra.mrb[44].mxu0 %v1492_v51 }
  0x7c   :  { %1355 = vmatmul.mubr.bf16.gmra.mrb[44].mxu1 %v1494_v52  ;;  %1265 = vmatprep.mubr.bf16.mxu0 %v1501_v53 }
  0x7d   :  { %1362 = vmatprep.mubr.bf16.mxu1 %v1503_v54 }
  0x83   :  { %1266 = vmatmul.mubr.bf16.gmra.mrb[48].mxu0 %v1500_v59 }
  0x84   :  { %1363 = vmatmul.mubr.bf16.gmra.mrb[48].mxu1 %v1502_v60  ;;  %1273 = vmatprep.mubr.bf16.mxu0 %v1509_v61 }
  0x85   :  { %1370 = vmatprep.mubr.bf16.mxu1 %v1511_v62 }
  0x8b   :  { %1274 = vmatmul.mubr.bf16.gmra.mrb[52].mxu0 %v1508_v3 }
  0x8c   :  { %1371 = vmatmul.mubr.bf16.gmra.mrb[52].mxu1 %v1510_v4  ;;  %1281 = vmatprep.mubr.bf16.mxu0 %v1517_v5 }
  0x8d   :  { %1378 = vmatprep.mubr.bf16.mxu1 %v1519_v6 }
  0x93   :  { %1282 = vmatmul.mubr.bf16.gmra.mrb[56].mxu0 %v1516_v11 }
  0x94   :  { %1379 = vmatmul.mubr.bf16.gmra.mrb[56].mxu1 %v1518_v12  ;;  %1289 = vmatprep.mubr.bf16.mxu0 %v1525_v13 }
  0x95   :  { %1386 = vmatprep.mubr.bf16.mxu1 %v1527_v14 }
  0x9b   :  { %1290 = vmatmul.mubr.bf16.gmra.mrb[60].mxu0 %v1524_v15 }
  0x9c   :  { %1387 = vmatmul.mubr.bf16.gmra.mrb[60].mxu1 %v1526_v16 }
  0x9f   :  { %v226_v17 = vpop.permute.xlu0 %225 }
  0xae   :  { %v236_v18 = vpop.permute.xlu1 %235 }
  0xaf   :  { %v231_v20 = vpop.permute.xlu0 %230 }
  0xb6   :  { %v241_v37 = vpop.permute.xlu1 %240 }
  0xb7   :  { %v246_v52 = vpop.permute.xlu0 %245 }
  0xbe   :  { %v251_v55 = vpop.permute.xlu1 %250 }
  0xbf   :  { %v256_v6 = vpop.permute.xlu0 %255 }
  0xc2   :  { %v261_v9 = vpop.permute.xlu1 %260 }
  0xf6   :  { %v1608_v19 = vpop.f32.mrb[0].mxu0 }
  0xf7   :  { %v1672_v21 = vpop.f32.mrb[0].mxu1  ;;  %v1609_v22 = vpop.f32.mrb[1].mxu0 }
  0xf8   :  { %v1610_v23 = vadd.f32 %v1609_v22, %v1608_v19  ;;  %v1673_v24 = vpop.f32.mrb[1].mxu1  ;;  %v1611_v25 = vpop.f32.mrb[2].mxu0 }
  0xf9   :  { %v1674_v26 = vadd.f32 %v1673_v24, %v1672_v21  ;;  %v1675_v27 = vpop.f32.mrb[2].mxu1  ;;  %v1612_v28 = vpop.f32.mrb[3].mxu0 }
  0xfa   :  { %v1042_v29 = vadd.f32 %v1610_v23, %v226_v17  ;;  %v1613_v30 = vadd.f32 %v1612_v28, %v1611_v25  ;;  %v1676_v31 = vpop.f32.mrb[3].mxu1  ;;  %v266_v24 = vpop.permute.xlu0 %265 }
  0xfb   :  { %v1677_v32 = vadd.f32 %v1676_v31, %v1675_v27  ;;  %v271_v27 = vpop.permute.xlu1 %270 }
  0xfc   :  { %v2368_v33 = vadd.f32 %v1674_v26, %v1042_v29  ;;  %v1045_v34 = vadd.f32 %v1613_v30, %v231_v20 }
  0xfe   :  { %v2370_v35 = vadd.f32 %v1677_v32, %v1045_v34  ;;  %v1614_v36 = vpop.f32.mrb[4].mxu0 }
  0xff   :  { %v1678_v38 = vpop.f32.mrb[4].mxu1  ;;  %v1615_v39 = vpop.f32.mrb[5].mxu0 }
 0x100   :  { %v1616_v40 = vadd.f32 %v1615_v39, %v1614_v36  ;;  %v1679_v41 = vpop.f32.mrb[5].mxu1  ;;  %v1617_v42 = vpop.f32.mrb[6].mxu0 }
 0x101   :  { %v1680_v43 = vadd.f32 %v1679_v41, %v1678_v38  ;;  %v1681_v44 = vpop.f32.mrb[6].mxu1  ;;  %v1618_v45 = vpop.f32.mrb[7].mxu0 }
 0x102   :  { %v1050_v46 = vadd.f32 %v1616_v40, %v236_v18  ;;  %v1619_v47 = vadd.f32 %v1618_v45, %v1617_v42  ;;  %v1682_v48 = vpop.f32.mrb[7].mxu1 }
 0x103   :  { %v1683_v49 = vadd.f32 %v1682_v48, %v1681_v44  ;;  %v276_v44 = vpop.permute.xlu0 %275 }
 0x104   :  { %v2372_v50 = vadd.f32 %v1680_v43, %v1050_v46  ;;  %v1053_v51 = vadd.f32 %v1619_v47, %v241_v37  ;;  %v281_v47 = vpop.permute.xlu1 %280 }
 0x106   :  { %v2374_v53 = vadd.f32 %v1683_v49, %v1053_v51  ;;  %v1620_v54 = vpop.f32.mrb[8].mxu0 }
 0x107   :  { %v1684_v56 = vpop.f32.mrb[8].mxu1  ;;  %v1621_v57 = vpop.f32.mrb[9].mxu0 }
 0x108   :  { %v1622_v58 = vadd.f32 %v1621_v57, %v1620_v54  ;;  %v1685_v59 = vpop.f32.mrb[9].mxu1  ;;  %v1623_v60 = vpop.f32.mrb[10].mxu0 }
 0x109   :  { %v1686_v61 = vadd.f32 %v1685_v59, %v1684_v56  ;;  %v1687_v62 = vpop.f32.mrb[10].mxu1  ;;  %v1624_v63 = vpop.f32.mrb[11].mxu0 }
 0x10a   :  { %v1058_v0 = vadd.f32 %v1622_v58, %v246_v52  ;;  %v1625_v1 = vadd.f32 %v1624_v63, %v1623_v60  ;;  %v1688_v2 = vpop.f32.mrb[11].mxu1 }
 0x10b   :  { %v1689_v3 = vadd.f32 %v1688_v2, %v1687_v62 }
 0x10c   :  { %v2376_v4 = vadd.f32 %v1686_v61, %v1058_v0  ;;  %v1061_v5 = vadd.f32 %v1625_v1, %v251_v55  ;;  %v286_v0 = vpop.permute.xlu0 %285 }
 0x10e   :  { %v2378_v7 = vadd.f32 %v1689_v3, %v1061_v5  ;;  %v1626_v8 = vpop.f32.mrb[12].mxu0  ;;  %v291_v3 = vpop.permute.xlu1 %290 }
 0x10f   :  { %v1690_v10 = vpop.f32.mrb[12].mxu1  ;;  %v1627_v11 = vpop.f32.mrb[13].mxu0 }
 0x110   :  { %v1628_v12 = vadd.f32 %v1627_v11, %v1626_v8  ;;  %v1691_v13 = vpop.f32.mrb[13].mxu1  ;;  %v1629_v14 = vpop.f32.mrb[14].mxu0 }
 0x111   :  { %v1692_v15 = vadd.f32 %v1691_v13, %v1690_v10  ;;  %v1693_v16 = vpop.f32.mrb[14].mxu1  ;;  %v1630_v17 = vpop.f32.mrb[15].mxu0 }
 0x112   :  { %v1066_v18 = vadd.f32 %v1628_v12, %v256_v6  ;;  %v1631_v19 = vadd.f32 %v1630_v17, %v1629_v14  ;;  %v1694_v20 = vpop.f32.mrb[15].mxu1 }
 0x113   :  { %v1695_v21 = vadd.f32 %v1694_v20, %v1693_v16  ;;  %v296_v20 = vpop.permute.xlu0 %295 }
 0x114   :  { %v2380_v22 = vadd.f32 %v1692_v15, %v1066_v18  ;;  %v1069_v23 = vadd.f32 %v1631_v19, %v261_v9 }
 0x116   :  { %v2382_v25 = vadd.f32 %v1695_v21, %v1069_v23  ;;  %v1632_v26 = vpop.f32.mrb[16].mxu0 }
 0x117   :  { %v1696_v28 = vpop.f32.mrb[16].mxu1  ;;  %v1633_v29 = vpop.f32.mrb[17].mxu0 }
 0x118   :  { %v1634_v30 = vadd.f32 %v1633_v29, %v1632_v26  ;;  %v1697_v31 = vpop.f32.mrb[17].mxu1  ;;  %v1635_v32 = vpop.f32.mrb[18].mxu0 }
 0x119   :  { %v1698_v34 = vadd.f32 %v1697_v31, %v1696_v28  ;;  %v1699_v36 = vpop.f32.mrb[18].mxu1  ;;  %v1636_v37 = vpop.f32.mrb[19].mxu0 }
 0x11a   :  { %v1074_v38 = vadd.f32 %v1634_v30, %v266_v24  ;;  %v1637_v39 = vadd.f32 %v1636_v37, %v1635_v32  ;;  %v1700_v40 = vpop.f32.mrb[19].mxu1  ;;  %v301_v24 = vpop.permute.xlu1 %300 }
 0x11b   :  { %v1701_v41 = vadd.f32 %v1700_v40, %v1699_v36 }
 0x11c   :  { %v2384_v42 = vadd.f32 %v1698_v34, %v1074_v38  ;;  %v1077_v43 = vadd.f32 %v1637_v39, %v271_v27 }
 0x11e   :  { %v2386_v45 = vadd.f32 %v1701_v41, %v1077_v43  ;;  %v1638_v46 = vpop.f32.mrb[20].mxu0 }
 0x11f   :  { %v1702_v48 = vpop.f32.mrb[20].mxu1  ;;  %v1639_v49 = vpop.f32.mrb[21].mxu0 }
 0x120   :  { %v1640_v51 = vadd.f32 %v1639_v49, %v1638_v46  ;;  %v1703_v52 = vpop.f32.mrb[21].mxu1  ;;  %v1641_v54 = vpop.f32.mrb[22].mxu0 }
 0x121   :  { %v1704_v55 = vadd.f32 %v1703_v52, %v1702_v48  ;;  %v1705_v56 = vpop.f32.mrb[22].mxu1  ;;  %v1642_v57 = vpop.f32.mrb[23].mxu0 }
 0x122   :  { %v1082_v58 = vadd.f32 %v1640_v51, %v276_v44  ;;  %v1643_v59 = vadd.f32 %v1642_v57, %v1641_v54  ;;  %v1706_v60 = vpop.f32.mrb[23].mxu1 }
 0x123   :  { %v1707_v61 = vadd.f32 %v1706_v60, %v1705_v56 }
 0x124   :  { %v2388_v62 = vadd.f32 %v1704_v55, %v1082_v58  ;;  %v1085_v63 = vadd.f32 %v1643_v59, %v281_v47 }
 0x126   :  { %v2390_v1 = vadd.f32 %v1707_v61, %v1085_v63  ;;  %v1644_v2 = vpop.f32.mrb[24].mxu0 }
 0x127   :  { %v1708_v5 = vpop.f32.mrb[24].mxu1  ;;  %v1645_v6 = vpop.f32.mrb[25].mxu0 }
 0x128   :  { %v1646_v8 = vadd.f32 %v1645_v6, %v1644_v2  ;;  %v1709_v9 = vpop.f32.mrb[25].mxu1  ;;  %v1647_v10 = vpop.f32.mrb[26].mxu0 }
 0x129   :  { %v1710_v11 = vadd.f32 %v1709_v9, %v1708_v5  ;;  %v1711_v12 = vpop.f32.mrb[26].mxu1  ;;  %v1648_v13 = vpop.f32.mrb[27].mxu0 }
 0x12a   :  { %v1090_v14 = vadd.f32 %v1646_v8, %v286_v0  ;;  %v1649_v15 = vadd.f32 %v1648_v13, %v1647_v10  ;;  %v1712_v16 = vpop.f32.mrb[27].mxu1 }
 0x12b   :  { %v1713_v17 = vadd.f32 %v1712_v16, %v1711_v12 }
 0x12c   :  { %v2392_v18 = vadd.f32 %v1710_v11, %v1090_v14  ;;  %v1093_v19 = vadd.f32 %v1649_v15, %v291_v3 }
 0x12e   :  { %v2394_v21 = vadd.f32 %v1713_v17, %v1093_v19  ;;  %v1650_v23 = vpop.f32.mrb[28].mxu0 }
 0x12f   :  { %v1714_v26 = vpop.f32.mrb[28].mxu1  ;;  %v1651_v27 = vpop.f32.mrb[29].mxu0 }
 0x130   :  { %v1652_v28 = vadd.f32 %v1651_v27, %v1650_v23  ;;  %v1715_v29 = vpop.f32.mrb[29].mxu1  ;;  %v1653_v30 = vpop.f32.mrb[30].mxu0 }
 0x131   :  { %v1716_v31 = vadd.f32 %v1715_v29, %v1714_v26  ;;  %v1717_v32 = vpop.f32.mrb[30].mxu1  ;;  %v1654_v34 = vpop.f32.mrb[31].mxu0 }
 0x132   :  { %v1098_v36 = vadd.f32 %v1652_v28, %v296_v20  ;;  %v1655_v37 = vadd.f32 %v1654_v34, %v1653_v30  ;;  %v1718_v38 = vpop.f32.mrb[31].mxu1 }
 0x133   :  { %v1719_v39 = vadd.f32 %v1718_v38, %v1717_v32 }
 0x134   :  { %v2396_v40 = vadd.f32 %v1716_v31, %v1098_v36  ;;  %v1101_v41 = vadd.f32 %v1655_v37, %v301_v24 }
 0x136   :  { %v2398_v43 = vadd.f32 %v1719_v39, %v1101_v41  ;;  %v1736_v44 = vpop.f32.mrb[32].mxu0 }
 0x137   :  { %v1800_v46 = vpop.f32.mrb[32].mxu1  ;;  %v1737_v47 = vpop.f32.mrb[33].mxu0 }
 0x138   :  { %v1738_v48 = vadd.f32 %v1737_v47, %v1736_v44  ;;  %v1801_v49 = vpop.f32.mrb[33].mxu1  ;;  %v1739_v51 = vpop.f32.mrb[34].mxu0 }
 0x139   :  { %v1802_v52 = vadd.f32 %v1801_v49, %v1800_v46  ;;  %v1803_v54 = vpop.f32.mrb[34].mxu1  ;;  %v1740_v55 = vpop.f32.mrb[35].mxu0 }
 0x13a   :  { %v1236_v56 = vadd.f32 %v1738_v48, %v2368_v33  ;;  %v1741_v57 = vadd.f32 %v1740_v55, %v1739_v51  ;;  %v1804_v58 = vpop.f32.mrb[35].mxu1 }
 0x13b   :  { %v1805_v59 = vadd.f32 %v1804_v58, %v1803_v54 }
 0x13c   :  { %v1333_v60 = vadd.f32 %v1802_v52, %v1236_v56  ;;  %v1239_v61 = vadd.f32 %v1741_v57, %v2370_v35 }
 0x13e   :  { %vm1395_vm0 = vcmp.gt.f32.partialorder %v1333_v60, 0.0  ;;  %v1411_v63 = vmul.f32 0.2, %v1333_v60  ;;  %v1336_v0 = vadd.f32 %v1805_v59, %v1239_v61  ;;  %v1742_v2 = vpop.f32.mrb[36].mxu0 }
 0x13f   :  { %v1806_v3 = vpop.f32.mrb[36].mxu1  ;;  %v1743_v5 = vpop.f32.mrb[37].mxu0 }
 0x140   :  { %v1427_v6 = vsel %vm1395_vm0, %v1333_v60, %v1411_v63  ;;  %vm1396_vm2 = vcmp.gt.f32.partialorder %v1336_v0, 0.0  ;;  %v1412_v8 = vmul.f32 0.2, %v1336_v0  ;;  %v1744_v9 = vadd.f32 %v1743_v5, %v1742_v2  ;;  %v1807_v10 = vpop.f32.mrb[37].mxu1  ;;  %v1745_v11 = vpop.f32.mrb[38].mxu0 }
 0x141   :  { %1444 = vst.msk [vmem:[%s2483_s3] sm:$0xff] %vm1443_vm1, %v1427_v6  ;;  %v1808_v33 = vadd.f32 %v1807_v10, %v1806_v3  ;;  %v1809_v35 = vpop.f32.mrb[38].mxu1  ;;  %v1746_v12 = vpop.f32.mrb[39].mxu0 }
 0x142   :  { %v1428_v13 = vsel %vm1396_vm2, %v1336_v0, %v1412_v8  ;;  %v1244_v14 = vadd.f32 %v1744_v9, %v2372_v50  ;;  %v1747_v15 = vadd.f32 %v1746_v12, %v1745_v11  ;;  %v1810_v16 = vpop.f32.mrb[39].mxu1 }
 0x143   :  { %1445 = vst.msk [vmem:[%s2483_s3 + $0x8] sm:$0xff] %vm1443_vm1, %v1428_v13  ;;  %v1811_v17 = vadd.f32 %v1810_v16, %v1809_v35 }
 0x144   :  { %v1341_v19 = vadd.f32 %v1808_v33, %v1244_v14  ;;  %v1247_v20 = vadd.f32 %v1747_v15, %v2374_v53 }
 0x146   :  { %vm1397_vm3 = vcmp.gt.f32.partialorder %v1341_v19, 0.0  ;;  %v1413_v23 = vmul.f32 0.2, %v1341_v19  ;;  %v1344_v24 = vadd.f32 %v1811_v17, %v1247_v20  ;;  %v1748_v26 = vpop.f32.mrb[40].mxu0 }
 0x147   :  { %v1812_v27 = vpop.f32.mrb[40].mxu1  ;;  %v1749_v28 = vpop.f32.mrb[41].mxu0 }
 0x148   :  { %v1429_v29 = vsel %vm1397_vm3, %v1341_v19, %v1413_v23  ;;  %vm1398_vm4 = vcmp.gt.f32.partialorder %v1344_v24, 0.0  ;;  %v1414_v50 = vmul.f32 0.2, %v1344_v24  ;;  %v1750_v30 = vadd.f32 %v1749_v28, %v1748_v26  ;;  %v1813_v31 = vpop.f32.mrb[41].mxu1  ;;  %v1751_v32 = vpop.f32.mrb[42].mxu0 }
 0x149   :  { %1446 = vst.msk [vmem:[%s2483_s3 + $0x10] sm:$0xff] %vm1443_vm1, %v1429_v29  ;;  %v1814_v34 = vadd.f32 %v1813_v31, %v1812_v27  ;;  %v1815_v36 = vpop.f32.mrb[42].mxu1  ;;  %v1752_v53 = vpop.f32.mrb[43].mxu0 }
 0x14a   :  { %v1430_v37 = vsel %vm1398_vm4, %v1344_v24, %v1414_v50  ;;  %v1252_v38 = vadd.f32 %v1750_v30, %v2376_v4  ;;  %v1753_v39 = vadd.f32 %v1752_v53, %v1751_v32  ;;  %v1816_v41 = vpop.f32.mrb[43].mxu1 }
 0x14b   :  { %1447 = vst.msk [vmem:[%s2483_s3 + $0x18] sm:$0xff] %vm1443_vm1, %v1430_v37  ;;  %v1817_v44 = vadd.f32 %v1816_v41, %v1815_v36 }
 0x14c   :  { %v1349_v46 = vadd.f32 %v1814_v34, %v1252_v38  ;;  %v1255_v47 = vadd.f32 %v1753_v39, %v2378_v7 }
 0x14e   :  { %vm1399_vm5 = vcmp.gt.f32.partialorder %v1349_v46, 0.0  ;;  %v1415_v48 = vmul.f32 0.2, %v1349_v46  ;;  %v1352_v49 = vadd.f32 %v1817_v44, %v1255_v47  ;;  %v1754_v51 = vpop.f32.mrb[44].mxu0 }
 0x14f   :  { %v1818_v52 = vpop.f32.mrb[44].mxu1  ;;  %v1755_v54 = vpop.f32.mrb[45].mxu0 }
 0x150   :  { %v1431_v55 = vsel %vm1399_vm5, %v1349_v46, %v1415_v48  ;;  %vm1400_vm6 = vcmp.gt.f32.partialorder %v1352_v49, 0.0  ;;  %v1416_v4 = vmul.f32 0.2, %v1352_v49  ;;  %v1756_v56 = vadd.f32 %v1755_v54, %v1754_v51  ;;  %v1819_v57 = vpop.f32.mrb[45].mxu1  ;;  %v1757_v58 = vpop.f32.mrb[46].mxu0 }
 0x151   :  { %1448 = vst.msk [vmem:[%s2483_s3 + $0x20] sm:$0xff] %vm1443_vm1, %v1431_v55  ;;  %v1820_v59 = vadd.f32 %v1819_v57, %v1818_v52  ;;  %v1821_v60 = vpop.f32.mrb[46].mxu1  ;;  %v1758_v7 = vpop.f32.mrb[47].mxu0 }
 0x152   :  { %v1432_v61 = vsel %vm1400_vm6, %v1352_v49, %v1416_v4  ;;  %v1260_v63 = vadd.f32 %v1756_v56, %v2380_v22  ;;  %v1759_v0 = vadd.f32 %v1758_v7, %v1757_v58  ;;  %v1822_v2 = vpop.f32.mrb[47].mxu1 }
 0x153   :  { %1449 = vst.msk [vmem:[%s2483_s3 + $0x28] sm:$0xff] %vm1443_vm1, %v1432_v61  ;;  %v1823_v3 = vadd.f32 %v1822_v2, %v1821_v60 }
 0x154   :  { %v1357_v5 = vadd.f32 %v1820_v59, %v1260_v63  ;;  %v1263_v6 = vadd.f32 %v1759_v0, %v2382_v25 }
 0x156   :  { %vm1401_vm7 = vcmp.gt.f32.partialorder %v1357_v5, 0.0  ;;  %v1417_v8 = vmul.f32 0.2, %v1357_v5  ;;  %v1360_v9 = vadd.f32 %v1823_v3, %v1263_v6  ;;  %v1760_v10 = vpop.f32.mrb[48].mxu0 }
 0x157   :  { %v1824_v11 = vpop.f32.mrb[48].mxu1  ;;  %v1761_v33 = vpop.f32.mrb[49].mxu0 }
 0x158   :  { %v1433_v35 = vsel %vm1401_vm7, %v1357_v5, %v1417_v8  ;;  %vm1402_vm8 = vcmp.gt.f32.partialorder %v1360_v9, 0.0  ;;  %v1418_v22 = vmul.f32 0.2, %v1360_v9  ;;  %v1762_v12 = vadd.f32 %v1761_v33, %v1760_v10  ;;  %v1825_v13 = vpop.f32.mrb[49].mxu1  ;;  %v1763_v14 = vpop.f32.mrb[50].mxu0 }
 0x159   :  { %1450 = vst.msk [vmem:[%s2483_s3 + $0x30] sm:$0xff] %vm1443_vm1, %v1433_v35  ;;  %v1826_v15 = vadd.f32 %v1825_v13, %v1824_v11  ;;  %v1827_v16 = vpop.f32.mrb[50].mxu1  ;;  %v1764_v25 = vpop.f32.mrb[51].mxu0 }
 0x15a   :  { %v1434_v17 = vsel %vm1402_vm8, %v1360_v9, %v1418_v22  ;;  %v1268_v19 = vadd.f32 %v1762_v12, %v2384_v42  ;;  %v1765_v20 = vadd.f32 %v1764_v25, %v1763_v14  ;;  %v1828_v23 = vpop.f32.mrb[51].mxu1 }
 0x15b   :  { %1451 = vst.msk [vmem:[%s2483_s3 + $0x38] sm:$0xff] %vm1443_vm1, %v1434_v17  ;;  %v1829_v24 = vadd.f32 %v1828_v23, %v1827_v16 }
 0x15c   :  { %v1365_v26 = vadd.f32 %v1826_v15, %v1268_v19  ;;  %v1271_v27 = vadd.f32 %v1765_v20, %v2386_v45 }
 0x15e   :  { %vm1403_vm9 = vcmp.gt.f32.partialorder %v1365_v26, 0.0  ;;  %v1419_v28 = vmul.f32 0.2, %v1365_v26  ;;  %v1368_v29 = vadd.f32 %v1829_v24, %v1271_v27  ;;  %v1766_v50 = vpop.f32.mrb[52].mxu0 }
 0x15f   :  { %v1830_v30 = vpop.f32.mrb[52].mxu1  ;;  %v1767_v31 = vpop.f32.mrb[53].mxu0 }
 0x160   :  { %v1435_v32 = vsel %vm1403_vm9, %v1365_v26, %v1419_v28  ;;  %vm1404_vm10 = vcmp.gt.f32.partialorder %v1368_v29, 0.0  ;;  %v1420_v42 = vmul.f32 0.2, %v1368_v29  ;;  %v1768_v34 = vadd.f32 %v1767_v31, %v1766_v50  ;;  %v1831_v36 = vpop.f32.mrb[53].mxu1  ;;  %v1769_v53 = vpop.f32.mrb[54].mxu0 }
 0x161   :  { %1452 = vst.msk [vmem:[%s2483_s3 + $0x40] sm:$0xff] %vm1443_vm1, %v1435_v32  ;;  %v1832_v37 = vadd.f32 %v1831_v36, %v1830_v30  ;;  %v1833_v38 = vpop.f32.mrb[54].mxu1  ;;  %v1770_v45 = vpop.f32.mrb[55].mxu0 }
 0x162   :  { %v1436_v39 = vsel %vm1404_vm10, %v1368_v29, %v1420_v42  ;;  %v1276_v41 = vadd.f32 %v1768_v34, %v2388_v62  ;;  %v1771_v44 = vadd.f32 %v1770_v45, %v1769_v53  ;;  %v1834_v46 = vpop.f32.mrb[55].mxu1 }
 0x163   :  { %1453 = vst.msk [vmem:[%s2483_s3 + $0x48] sm:$0xff] %vm1443_vm1, %v1436_v39  ;;  %v1835_v47 = vadd.f32 %v1834_v46, %v1833_v38 }
 0x164   :  { %v1373_v48 = vadd.f32 %v1832_v37, %v1276_v41  ;;  %v1279_v49 = vadd.f32 %v1771_v44, %v2390_v1 }
 0x166   :  { %vm1405_vm11 = vcmp.gt.f32.partialorder %v1373_v48, 0.0  ;;  %v1421_v51 = vmul.f32 0.2, %v1373_v48  ;;  %v1376_v52 = vadd.f32 %v1835_v47, %v1279_v49  ;;  %v1772_v54 = vpop.f32.mrb[56].mxu0 }
 0x167   :  { %v1836_v55 = vpop.f32.mrb[56].mxu1  ;;  %v1773_v4 = vpop.f32.mrb[57].mxu0 }
 0x168   :  { %v1437_v56 = vsel %vm1405_vm11, %v1373_v48, %v1421_v51  ;;  %vm1406_vm12 = vcmp.gt.f32.partialorder %v1376_v52, 0.0  ;;  %v1422_v62 = vmul.f32 0.2, %v1376_v52  ;;  %v1774_v57 = vadd.f32 %v1773_v4, %v1772_v54  ;;  %v1837_v58 = vpop.f32.mrb[57].mxu1  ;;  %v1775_v59 = vpop.f32.mrb[58].mxu0 }
 0x169   :  { %1454 = vst.msk [vmem:[%s2483_s3 + $0x50] sm:$0xff] %vm1443_vm1, %v1437_v56  ;;  %v1838_v60 = vadd.f32 %v1837_v58, %v1836_v55  ;;  %v1839_v7 = vpop.f32.mrb[58].mxu1  ;;  %v1776_v1 = vpop.f32.mrb[59].mxu0 }
 0x16a   :  { %v1438_v61 = vsel %vm1406_vm12, %v1376_v52, %v1422_v62  ;;  %v1284_v63 = vadd.f32 %v1774_v57, %v2392_v18  ;;  %v1777_v0 = vadd.f32 %v1776_v1, %v1775_v59  ;;  %v1840_v2 = vpop.f32.mrb[59].mxu1 }
 0x16b   :  { %1455 = vst.msk [vmem:[%s2483_s3 + $0x58] sm:$0xff] %vm1443_vm1, %v1438_v61  ;;  %v1841_v3 = vadd.f32 %v1840_v2, %v1839_v7 }
 0x16c   :  { %v1381_v5 = vadd.f32 %v1838_v60, %v1284_v63  ;;  %v1287_v6 = vadd.f32 %v1777_v0, %v2394_v21 }
 0x16e   :  { %vm1407_vm13 = vcmp.gt.f32.partialorder %v1381_v5, 0.0  ;;  %v1423_v8 = vmul.f32 0.2, %v1381_v5  ;;  %v1384_v9 = vadd.f32 %v1841_v3, %v1287_v6  ;;  %v1778_v10 = vpop.f32.mrb[60].mxu0 }
 0x16f   :  { %v1842_v11 = vpop.f32.mrb[60].mxu1  ;;  %v1779_v33 = vpop.f32.mrb[61].mxu0 }
 0x170   :  { %v1439_v35 = vsel %vm1407_vm13, %v1381_v5, %v1423_v8  ;;  %vm1408_vm14 = vcmp.gt.f32.partialorder %v1384_v9, 0.0  ;;  %v1424_v18 = vmul.f32 0.2, %v1384_v9  ;;  %v1780_v22 = vadd.f32 %v1779_v33, %v1778_v10  ;;  %v1843_v12 = vpop.f32.mrb[61].mxu1  ;;  %v1781_v13 = vpop.f32.mrb[62].mxu0 }
 0x171   :  { %1456 = vst.msk [vmem:[%s2483_s3 + $0x60] sm:$0xff] %vm1443_vm1, %v1439_v35  ;;  %v1844_v14 = vadd.f32 %v1843_v12, %v1842_v11  ;;  %v1845_v15 = vpop.f32.mrb[62].mxu1  ;;  %v1782_v21 = vpop.f32.mrb[63].mxu0 }
 0x172   :  { %v1440_v16 = vsel %vm1408_vm14, %v1384_v9, %v1424_v18  ;;  %v1292_v25 = vadd.f32 %v1780_v22, %v2396_v40  ;;  %v1783_v17 = vadd.f32 %v1782_v21, %v1781_v13  ;;  %v1846_v19 = vpop.f32.mrb[63].mxu1 }
 0x173   :  { %1457 = vst.msk [vmem:[%s2483_s3 + $0x68] sm:$0xff] %vm1443_vm1, %v1440_v16  ;;  %v1847_v20 = vadd.f32 %v1846_v19, %v1845_v15 }
 0x174   :  { %v1389_v23 = vadd.f32 %v1844_v14, %v1292_v25  ;;  %v1295_v24 = vadd.f32 %v1783_v17, %v2398_v43 }
 0x176   :  { %vm1409_vm15 = vcmp.gt.f32.partialorder %v1389_v23, 0.0  ;;  %v1425_v26 = vmul.f32 0.2, %v1389_v23  ;;  %v1392_v27 = vadd.f32 %v1847_v20, %v1295_v24 }
 0x178   :  { %v1441_v28 = vsel %vm1409_vm15, %v1389_v23, %v1425_v26  ;;  %vm1410_vm0 = vcmp.gt.f32.partialorder %v1392_v27, 0.0  ;;  %v1426_v29 = vmul.f32 0.2, %v1392_v27 }
 0x179   :  { %1458 = vst.msk [vmem:[%s2483_s3 + $0x70] sm:$0xff] %vm1443_vm1, %v1441_v28 }
 0x17a   :  { %v1442_v40 = vsel %vm1410_vm0, %v1392_v27, %v1426_v29 }
 0x17b   :  { %1459 = vst.msk [vmem:[%s2483_s3 + $0x78] sm:$0xff] %vm1443_vm1, %v1442_v40 }

// kernel: d_net128_la_forward.14
= control target key start
LH: loop header
LB: loop body
LE: loop exit
PB: predicated region body
PF: predicated region fallthrough
CT: control target
= control target key end

     0   :  { %v1672_v1 = vmov 0   ;;  %vm1212_vm0 = vcmask 261120   ;;  %s2088_s1 = inlined_call_operand.vmem [shape: bf16[1152,32], index: 1, kind: input, shape index: {}]   ;;  %s2089_s0 = inlined_call_operand.vmem [shape: bf16[64,1152], index: 0, kind: input, shape index: {}]   ;;  %s2090_s2 = inlined_call_operand.vmem [shape: f32[64,1], index: 2, kind: input, shape index: {}]   ;;  %s2091_s3 = inlined_call_operand.vmem [shape: f32[64,32], index: 3, kind: output, shape index: {}]  }
   0x1   :  { %v1548_v0 = vld [vmem:[%s2088_s1 + $0x40] sm:$0xff]   ;;  %1546 = vset.pattern.permute.xlu0 %v1672_v1  ;;  %1547 = vset.pattern.permute.xlu1 %v1672_v1  ;;  %v1552_v5 = vld [vmem:[%s2088_s1 + $0x48] sm:$0xff]   ;;  %v1556_v9 = vld [vmem:[%s2088_s1 + $0x50] sm:$0xff]  }
   0x2   :  { %v1549_v2 = vld [vmem:[%s2088_s1 + $0xc0] sm:$0xff]   ;;  %1333 = vmatprep.subr.bf16.mxu0 %v1548_v0  ;;  %v1553_v6 = vld [vmem:[%s2088_s1 + $0xc8] sm:$0xff]   ;;  %v1557_v10 = vld [vmem:[%s2088_s1 + $0xd0] sm:$0xff]  }
   0x3   :  { %v1550_v3 = vld [vmem:[%s2088_s1] sm:$0xff]   ;;  %1373 = vmatprep.subr.bf16.mxu1 %v1549_v2  ;;  %v1554_v7 = vld [vmem:[%s2088_s1 + $0x8] sm:$0xff]   ;;  %v1558_v11 = vld [vmem:[%s2088_s1 + $0x10] sm:$0xff]  }
   0x4   :  { %v1551_v4 = vld [vmem:[%s2088_s1 + $0x80] sm:$0xff]   ;;  %1334 = vmatpush3.bf16.msra.mxu0 %v1550_v3  ;;  %v1555_v8 = vld [vmem:[%s2088_s1 + $0x88] sm:$0xff]   ;;  %v1559_v12 = vld [vmem:[%s2088_s1 + $0x90] sm:$0xff]  }
   0x5   :  { %1374 = vmatpush3.bf16.msra.mxu1 %v1551_v4  ;;  %1335 = vmatprep.subr.bf16.mxu0 %v1552_v5  ;;  %v1560_v13 = vld [vmem:[%s2088_s1 + $0x58] sm:$0xff]   ;;  %v1564_v17 = vld [vmem:[%s2088_s1 + $0x60] sm:$0xff]   ;;  %v1568_v21 = vld [vmem:[%s2088_s1 + $0x68] sm:$0xff]  }
   0x6   :  { %1375 = vmatprep.subr.bf16.mxu1 %v1553_v6  ;;  %v1561_v14 = vld [vmem:[%s2088_s1 + $0xd8] sm:$0xff]   ;;  %v1565_v18 = vld [vmem:[%s2088_s1 + $0xe0] sm:$0xff]   ;;  %v1569_v22 = vld [vmem:[%s2088_s1 + $0xe8] sm:$0xff]  }
   0x7   :  { %v1562_v15 = vld [vmem:[%s2088_s1 + $0x18] sm:$0xff]   ;;  %v1566_v19 = vld [vmem:[%s2088_s1 + $0x20] sm:$0xff]   ;;  %v1570_v23 = vld [vmem:[%s2088_s1 + $0x28] sm:$0xff]  }
   0x8   :  { %1336 = vmatpush3.bf16.msra.mxu0 %v1554_v7  ;;  %v1563_v16 = vld [vmem:[%s2088_s1 + $0x98] sm:$0xff]   ;;  %v1567_v20 = vld [vmem:[%s2088_s1 + $0xa0] sm:$0xff]   ;;  %v1571_v24 = vld [vmem:[%s2088_s1 + $0xa8] sm:$0xff]  }
   0x9   :  { %1376 = vmatpush3.bf16.msra.mxu1 %v1555_v8  ;;  %1337 = vmatprep.subr.bf16.mxu0 %v1556_v9  ;;  %v1572_v25 = vld [vmem:[%s2088_s1 + $0x70] sm:$0xff]   ;;  %v1576_v29 = vld [vmem:[%s2088_s1 + $0x78] sm:$0xff]   ;;  %v1580_v33 = vld [vmem:[%s2089_s0] ss:$36 sps:$4 sm:$0xff]  }
   0xa   :  { %1377 = vmatprep.subr.bf16.mxu1 %v1557_v10  ;;  %v1573_v26 = vld [vmem:[%s2088_s1 + $0xf0] sm:$0xff]   ;;  %v1577_v30 = vld [vmem:[%s2088_s1 + $0xf8] sm:$0xff]   ;;  %v1582_v34 = vld [vmem:[%s2089_s0 + $0x4] ss:$36 sps:$4 sm:$0xff]  }
   0xb   :  { %v1574_v27 = vld [vmem:[%s2088_s1 + $0x30] sm:$0xff]   ;;  %v1578_v31 = vld [vmem:[%s2088_s1 + $0x38] sm:$0xff]   ;;  %v1583_v35 = vld [vmem:[%s2089_s0 + $0x8] ss:$36 sps:$4 sm:$0xff]   ;;  %895 = vmatprep.mubr.bf16.mxu0 %v1582_v34 }
   0xc   :  { %1338 = vmatpush3.bf16.msra.mxu0 %v1558_v11  ;;  %v1575_v28 = vld [vmem:[%s2088_s1 + $0xb0] sm:$0xff]   ;;  %v1579_v32 = vld [vmem:[%s2088_s1 + $0xb8] sm:$0xff]   ;;  %v1586_v37 = vld [vmem:[%s2088_s1 + $0x140] sm:$0xff]  }
   0xd   :  { %1378 = vmatpush3.bf16.msra.mxu1 %v1559_v12  ;;  %1339 = vmatprep.subr.bf16.mxu0 %v1560_v13  ;;  %v1585_v36 = vld [vmem:[%s2089_s0 + $0xc] ss:$36 sps:$4 sm:$0xff]   ;;  %v1587_v38 = vld [vmem:[%s2088_s1 + $0x1c0] sm:$0xff]   ;;  %v1596_v46 = vld [vmem:[%s2089_s0 + $0x54] ss:$36 sps:$4 sm:$0xff]  }
   0xe   :  { %1379 = vmatprep.subr.bf16.mxu1 %v1561_v14  ;;  %960 = vmatprep.mubr.bf16.mxu1 %v1585_v36  ;;  %v1588_v39 = vld [vmem:[%s2088_s1 + $0x100] sm:$0xff]   ;;  %v1590_v41 = vld [vmem:[%s2088_s1 + $0x148] sm:$0xff]   ;;  %v1599_v48 = vld [vmem:[%s2089_s0 + $0x50] ss:$36 sps:$4 sm:$0xff]  }
   0xf   :  { %v1589_v40 = vld [vmem:[%s2088_s1 + $0x180] sm:$0xff]   ;;  %v1591_v42 = vld [vmem:[%s2088_s1 + $0x1c8] sm:$0xff]   ;;  %v1600_v49 = vld [vmem:[%s2088_s1 + $0x150] sm:$0xff]  }
  0x10   :  { %1340 = vmatpush3.bf16.msra.mxu0 %v1562_v15  ;;  %v1592_v43 = vld [vmem:[%s2088_s1 + $0x108] sm:$0xff]   ;;  %v1601_v50 = vld [vmem:[%s2088_s1 + $0x1d0] sm:$0xff]   ;;  %v1604_v53 = vld [vmem:[%s2088_s1 + $0x158] sm:$0xff]  }
  0x11   :  { %1380 = vmatpush3.bf16.msra.mxu1 %v1563_v16  ;;  %1341 = vmatprep.subr.bf16.mxu0 %v1564_v17  ;;  %v1593_v44 = vld [vmem:[%s2088_s1 + $0x188] sm:$0xff]   ;;  %v1602_v51 = vld [vmem:[%s2088_s1 + $0x110] sm:$0xff]   ;;  %v1605_v54 = vld [vmem:[%s2088_s1 + $0x1d8] sm:$0xff]  }
  0x12   :  { %1381 = vmatprep.subr.bf16.mxu1 %v1565_v18  ;;  %v1594_v45 = vld [vmem:[%s2089_s0 + $0x4c] ss:$36 sps:$4 sm:$0xff]   ;;  %v1606_v55 = vld [vmem:[%s2088_s1 + $0x118] sm:$0xff]   ;;  %v1614_v61 = vld [vmem:[%s2088_s1 + $0x160] sm:$0xff]  }
  0x13   :  { %v1598_v47 = vld [vmem:[%s2089_s0 + $0x48] ss:$36 sps:$4 sm:$0xff]   ;;  %v1603_v52 = vld [vmem:[%s2088_s1 + $0x190] sm:$0xff]   ;;  %v1607_v56 = vld [vmem:[%s2088_s1 + $0x198] sm:$0xff]  }
  0x14   :  { %1342 = vmatpush3.bf16.msra.mxu0 %v1566_v19  ;;  %v1608_v57 = vld [vmem:[%s2089_s0 + $0x94] ss:$36 sps:$4 sm:$0xff]   ;;  %v1610_v58 = vld [vmem:[%s2089_s0 + $0x9c] ss:$36 sps:$4 sm:$0xff]   ;;  %v1618_v1 = vld [vmem:[%s2088_s1 + $0x168] sm:$0xff]  }
  0x15   :  { %1382 = vmatpush3.bf16.msra.mxu1 %v1567_v20  ;;  %1343 = vmatprep.subr.bf16.mxu0 %v1568_v21  ;;  %v1612_v59 = vld [vmem:[%s2089_s0 + $0x90] ss:$36 sps:$4 sm:$0xff]   ;;  %v1613_v60 = vld [vmem:[%s2089_s0 + $0x98] ss:$36 sps:$4 sm:$0xff]   ;;  %v1615_v62 = vld [vmem:[%s2088_s1 + $0x1e0] sm:$0xff]  }
  0x16   :  { %1383 = vmatprep.subr.bf16.mxu1 %v1569_v22  ;;  %v1616_v63 = vld [vmem:[%s2088_s1 + $0x120] sm:$0xff]   ;;  %v1619_v2 = vld [vmem:[%s2088_s1 + $0x1e8] sm:$0xff]   ;;  %v1626_v7 = vld [vmem:[%s2089_s0 + $0xd8] ss:$36 sps:$4 sm:$0xff]  }
  0x17   :  { %v1617_v0 = vld [vmem:[%s2088_s1 + $0x1a0] sm:$0xff]   ;;  %v1620_v3 = vld [vmem:[%s2088_s1 + $0x128] sm:$0xff]   ;;  %v1628_v9 = vld [vmem:[%s2088_s1 + $0x170] sm:$0xff]  }
  0x18   :  { %1344 = vmatpush3.bf16.msra.mxu0 %v1570_v23  ;;  %v1621_v4 = vld [vmem:[%s2088_s1 + $0x1a8] sm:$0xff]   ;;  %v1622_v5 = vld [vmem:[%s2089_s0 + $0xdc] ss:$36 sps:$4 sm:$0xff]   ;;  %v1629_v10 = vld [vmem:[%s2088_s1 + $0x1f0] sm:$0xff]  }
  0x19   :  { %1384 = vmatpush3.bf16.msra.mxu1 %v1571_v24  ;;  %1345 = vmatprep.subr.bf16.mxu0 %v1572_v25  ;;  %v1624_v6 = vld [vmem:[%s2089_s0 + $0xe4] ss:$36 sps:$4 sm:$0xff]   ;;  %v1630_v11 = vld [vmem:[%s2088_s1 + $0x130] sm:$0xff]   ;;  %v1632_v13 = vld [vmem:[%s2088_s1 + $0x178] sm:$0xff]  }
  0x1a   :  { %1385 = vmatprep.subr.bf16.mxu1 %v1573_v26  ;;  %v1627_v8 = vld [vmem:[%s2089_s0 + $0xe0] ss:$36 sps:$4 sm:$0xff]   ;;  %v1631_v12 = vld [vmem:[%s2088_s1 + $0x1b0] sm:$0xff]   ;;  %v1633_v14 = vld [vmem:[%s2088_s1 + $0x1f8] sm:$0xff]  }
  0x1b   :  { %v1634_v15 = vld [vmem:[%s2088_s1 + $0x138] sm:$0xff]   ;;  %v1636_v17 = vld [vmem:[%s2089_s0 + $0x10] ss:$36 sps:$4 sm:$0xff]   ;;  %v1642_v21 = vld [vmem:[%s2088_s1 + $0x200] sm:$0xff]  }
  0x1c   :  { %1346 = vmatpush3.bf16.msra.mxu0 %v1574_v27  ;;  %v1635_v16 = vld [vmem:[%s2088_s1 + $0x1b8] sm:$0xff]   ;;  %v1643_v22 = vld [vmem:[%s2088_s1 + $0x208] sm:$0xff]   ;;  %v1649_v26 = vld [vmem:[%s2089_s0 + $0x60] ss:$36 sps:$4 sm:$0xff]  }
  0x1d   :  { %1386 = vmatpush3.bf16.msra.mxu1 %v1575_v28  ;;  %1347 = vmatprep.subr.bf16.mxu0 %v1576_v29  ;;  %v1638_v18 = vld [vmem:[%s2089_s0 + $0x14] ss:$36 sps:$4 sm:$0xff]   ;;  %v1641_v20 = vld [vmem:[%s2089_s0 + $0x1c] ss:$36 sps:$4 sm:$0xff]   ;;  %v1646_v24 = vld [vmem:[%s2089_s0 + $0x64] ss:$36 sps:$4 sm:$0xff]  }
  0x1e   :  { %1387 = vmatprep.subr.bf16.mxu1 %v1577_v30  ;;  %v1639_v19 = vld [vmem:[%s2089_s0 + $0x18] ss:$36 sps:$4 sm:$0xff]   ;;  %v1650_v27 = vld [vmem:[%s2088_s1 + $0x210] sm:$0xff]   ;;  %v1652_v28 = vld [vmem:[%s2089_s0 + $0xa4] ss:$36 sps:$4 sm:$0xff]  }
  0x1f   :  { %v1644_v23 = vld [vmem:[%s2089_s0 + $0x5c] ss:$36 sps:$4 sm:$0xff]   ;;  %v1654_v29 = vld [vmem:[%s2089_s0 + $0xac] ss:$36 sps:$4 sm:$0xff]  }
  0x20   :  { %1348 = vmatpush3.bf16.msra.mxu0 %v1578_v31  ;;  %v1648_v25 = vld [vmem:[%s2089_s0 + $0x58] ss:$36 sps:$4 sm:$0xff]   ;;  %v1656_v31 = vld [vmem:[%s2089_s0 + $0xa0] ss:$36 sps:$4 sm:$0xff]   ;;  %v1660_v34 = vld [vmem:[%s2089_s0 + $0xec] ss:$36 sps:$4 sm:$0xff]  }
  0x21   :  { %1388 = vmatpush3.bf16.msra.mxu1 %v1579_v32  ;;  %1413 = vmatprep.subr.bf16.mxu0 %v1586_v37  ;;  %v1651_v30 = vld [vmem:[%s2088_s1 + $0x218] sm:$0xff]   ;;  %v1657_v32 = vld [vmem:[%s2089_s0 + $0xa8] ss:$36 sps:$4 sm:$0xff]   ;;  %v199_v37 = vld [vmem:[%s2090_s2] sm:$0xff] }
  0x22   :  { %1453 = vmatprep.subr.bf16.mxu1 %v1587_v38  ;;  %v1659_v36 = vld [vmem:[%s2088_s1 + $0x228] sm:$0xff]   ;;  %209 = vperm.xlu0 %1546, %v199_v37  }
  0x23   :  { %896 = vmatmul.mubr.bf16.vlgmr.msra.gmra.mrb[0].mxu0 %v1580_v33  ;;  %v1658_v33 = vld [vmem:[%s2088_s1 + $0x220] sm:$0xff]   ;;  %v1664_v38 = vld [vmem:[%s2089_s0 + $0xe8] ss:$36 sps:$4 sm:$0xff]  }
  0x24   :  { %961 = vmatmul.mubr.bf16.vlgmr.msra.gmra.mrb[0].mxu1 %v1583_v35  ;;  %1414 = vmatpush3.bf16.msra.mxu0 %v1588_v39  ;;  %v1662_v35 = vld [vmem:[%s2089_s0 + $0xf4] ss:$36 sps:$4 sm:$0xff]  }
  0x25   :  { %1454 = vmatpush3.bf16.msra.mxu1 %v1589_v40  ;;  %1415 = vmatprep.subr.bf16.mxu0 %v1590_v41  ;;  %v201_v39 = vld [vmem:[%s2090_s2 + $0x10] sm:$0xff] }
  0x26   :  { %1455 = vmatprep.subr.bf16.mxu1 %v1591_v42  ;;  %903 = vmatprep.mubr.bf16.mxu0 %v1594_v45  ;;  %v1666_v40 = vld [vmem:[%s2088_s1 + $0x230] sm:$0xff]   ;;  %v1668_v42 = vld [vmem:[%s2089_s0 + $0x20] ss:$36 sps:$4 sm:$0xff]   ;;  %v200_v45 = vld [vmem:[%s2090_s2 + $0x8] sm:$0xff] }
  0x27   :  { %968 = vmatprep.mubr.bf16.mxu1 %v1596_v46  ;;  %v1665_v41 = vld [vmem:[%s2089_s0 + $0xf0] ss:$36 sps:$4 sm:$0xff]   ;;  %219 = vperm.xlu1 %1547, %v201_v39   ;;  %v202_v46 = vld [vmem:[%s2090_s2 + $0x18] sm:$0xff] }
  0x28   :  { %1416 = vmatpush3.bf16.msra.mxu0 %v1592_v43  ;;  %v1669_v43 = vld [vmem:[%s2089_s0 + $0xb0] ss:$36 sps:$4 sm:$0xff]   ;;  %214 = vperm.xlu0 %1546, %v200_v45  }
  0x29   :  { %1456 = vmatpush3.bf16.msra.mxu1 %v1593_v44  ;;  %1417 = vmatprep.subr.bf16.mxu0 %v1600_v49  ;;  %v1667_v44 = vld [vmem:[%s2088_s1 + $0x238] sm:$0xff]  }
  0x2a   :  { %1457 = vmatprep.subr.bf16.mxu1 %v1601_v50  ;;  %v1671_v49 = vld [vmem:[%s2089_s0 + $0xf8] ss:$36 sps:$4 sm:$0xff]   ;;  %v204_v50 = vld [vmem:[%s2090_s2 + $0x28] sm:$0xff] }
  0x2b   :  { %904 = vmatmul.mubr.bf16.gmra.mrb[4].mxu0 %v1598_v47  ;;  %v1670_v47 = vld [vmem:[%s2089_s0 + $0x68] ss:$36 sps:$4 sm:$0xff]   ;;  %224 = vperm.xlu1 %1547, %v202_v46  }
  0x2c   :  { %969 = vmatmul.mubr.bf16.gmra.mrb[4].mxu1 %v1599_v48  ;;  %1418 = vmatpush3.bf16.msra.mxu0 %v1602_v51  ;;  %v203_v48 = vld [vmem:[%s2090_s2 + $0x20] sm:$0xff]  ;;  %v205_v51 = vld [vmem:[%s2090_s2 + $0x30] sm:$0xff] }
  0x2d   :  { %1458 = vmatpush3.bf16.msra.mxu1 %v1603_v52  ;;  %1419 = vmatprep.subr.bf16.mxu0 %v1604_v53  ;;  %v206_v52 = vld [vmem:[%s2090_s2 + $0x38] sm:$0xff] }
  0x2e   :  { %1459 = vmatprep.subr.bf16.mxu1 %v1605_v54  ;;  %911 = vmatprep.mubr.bf16.mxu0 %v1608_v57 }
  0x2f   :  { %976 = vmatprep.mubr.bf16.mxu1 %v1610_v58  ;;  %229 = vperm.xlu0 %1546, %v203_v48  }
  0x30   :  { %1420 = vmatpush3.bf16.msra.mxu0 %v1606_v55  ;;  %234 = vperm.xlu1 %1547, %v204_v50  }
  0x31   :  { %1460 = vmatpush3.bf16.msra.mxu1 %v1607_v56  ;;  %1421 = vmatprep.subr.bf16.mxu0 %v1614_v61 }
  0x32   :  { %1461 = vmatprep.subr.bf16.mxu1 %v1615_v62 }
  0x33   :  { %912 = vmatmul.mubr.bf16.gmra.mrb[8].mxu0 %v1612_v59  ;;  %239 = vperm.xlu0 %1546, %v205_v51  }
  0x34   :  { %977 = vmatmul.mubr.bf16.gmra.mrb[8].mxu1 %v1613_v60  ;;  %1422 = vmatpush3.bf16.msra.mxu0 %v1616_v63 }
  0x35   :  { %1462 = vmatpush3.bf16.msra.mxu1 %v1617_v0  ;;  %1423 = vmatprep.subr.bf16.mxu0 %v1618_v1 }
  0x36   :  { %1463 = vmatprep.subr.bf16.mxu1 %v1619_v2  ;;  %919 = vmatprep.mubr.bf16.mxu0 %v1622_v5 }
  0x37   :  { %984 = vmatprep.mubr.bf16.mxu1 %v1624_v6  ;;  %244 = vperm.xlu1 %1547, %v206_v52  }
  0x38   :  { %1424 = vmatpush3.bf16.msra.mxu0 %v1620_v3 }
  0x39   :  { %1464 = vmatpush3.bf16.msra.mxu1 %v1621_v4  ;;  %1425 = vmatprep.subr.bf16.mxu0 %v1628_v9 }
  0x3a   :  { %1465 = vmatprep.subr.bf16.mxu1 %v1629_v10 }
  0x3b   :  { %920 = vmatmul.mubr.bf16.gmra.mrb[12].mxu0 %v1626_v7 }
  0x3c   :  { %985 = vmatmul.mubr.bf16.gmra.mrb[12].mxu1 %v1627_v8  ;;  %1426 = vmatpush3.bf16.msra.mxu0 %v1630_v11 }
  0x3d   :  { %1466 = vmatpush3.bf16.msra.mxu1 %v1631_v12  ;;  %1427 = vmatprep.subr.bf16.mxu0 %v1632_v13 }
  0x3e   :  { %1467 = vmatprep.subr.bf16.mxu1 %v1633_v14  ;;  %1025 = vmatprep.mubr.bf16.mxu0 %v1638_v18 }
  0x3f   :  { %1090 = vmatprep.mubr.bf16.mxu1 %v1641_v20 }
  0x40   :  { %1428 = vmatpush3.bf16.msra.mxu0 %v1634_v15 }
  0x41   :  { %1468 = vmatpush3.bf16.msra.mxu1 %v1635_v16  ;;  %1505 = vmatprep.subr.bf16.mxu0 %v1642_v21 }
  0x42   :  { %1529 = vmatprep.subr.bf16.mxu1 %v1642_v21 }
  0x43   :  { %1026 = vmatmul.mubr.bf16.vlgmr.msra.gmra.mrb[16].mxu0 %v1636_v17 }
  0x44   :  { %1091 = vmatmul.mubr.bf16.vlgmr.msra.gmra.mrb[16].mxu1 %v1639_v19  ;;  %1506 = vmatpush3.bf16.msra.mxu0 %v1642_v21 }
  0x45   :  { %1537 = vmatpush3.bf16.msra.mxu1 %v1642_v21  ;;  %1507 = vmatprep.subr.bf16.mxu0 %v1643_v22 }
  0x46   :  { %1530 = vmatprep.subr.bf16.mxu1 %v1643_v22  ;;  %1033 = vmatprep.mubr.bf16.mxu0 %v1644_v23 }
  0x47   :  { %1098 = vmatprep.mubr.bf16.mxu1 %v1646_v24 }
  0x48   :  { %1508 = vmatpush3.bf16.msra.mxu0 %v1643_v22 }
  0x49   :  { %1538 = vmatpush3.bf16.msra.mxu1 %v1643_v22  ;;  %1509 = vmatprep.subr.bf16.mxu0 %v1650_v27 }
  0x4a   :  { %1531 = vmatprep.subr.bf16.mxu1 %v1650_v27 }
  0x4b   :  { %1034 = vmatmul.mubr.bf16.gmra.mrb[20].mxu0 %v1648_v25 }
  0x4c   :  { %1099 = vmatmul.mubr.bf16.gmra.mrb[20].mxu1 %v1649_v26  ;;  %1041 = vmatprep.mubr.bf16.mxu0 %v1652_v28 }
  0x4d   :  { %1510 = vmatpush3.bf16.msra.mxu0 %v1650_v27  ;;  %1106 = vmatprep.mubr.bf16.mxu1 %v1654_v29 }
  0x4e   :  { %1539 = vmatpush3.bf16.msra.mxu1 %v1650_v27  ;;  %1511 = vmatprep.subr.bf16.mxu0 %v1651_v30 }
  0x4f   :  { %1532 = vmatprep.subr.bf16.mxu1 %v1651_v30 }
  0x51   :  { %1512 = vmatpush3.bf16.msra.mxu0 %v1651_v30 }
  0x52   :  { %1540 = vmatpush3.bf16.msra.mxu1 %v1651_v30  ;;  %1513 = vmatprep.subr.bf16.mxu0 %v1658_v33 }
  0x53   :  { %1042 = vmatmul.mubr.bf16.gmra.mrb[24].mxu0 %v1656_v31  ;;  %1533 = vmatprep.subr.bf16.mxu1 %v1658_v33 }
  0x54   :  { %1107 = vmatmul.mubr.bf16.gmra.mrb[24].mxu1 %v1657_v32  ;;  %1049 = vmatprep.mubr.bf16.mxu0 %v1660_v34 }
  0x55   :  { %1514 = vmatpush3.bf16.msra.mxu0 %v1658_v33  ;;  %1114 = vmatprep.mubr.bf16.mxu1 %v1662_v35 }
  0x56   :  { %1541 = vmatpush3.bf16.msra.mxu1 %v1658_v33  ;;  %1515 = vmatprep.subr.bf16.mxu0 %v1659_v36 }
  0x57   :  { %1534 = vmatprep.subr.bf16.mxu1 %v1659_v36 }
  0x59   :  { %1516 = vmatpush3.bf16.msra.mxu0 %v1659_v36 }
  0x5a   :  { %1542 = vmatpush3.bf16.msra.mxu1 %v1659_v36  ;;  %1517 = vmatprep.subr.bf16.mxu0 %v1666_v40 }
  0x5b   :  { %1050 = vmatmul.mubr.bf16.gmra.mrb[28].mxu0 %v1664_v38  ;;  %1535 = vmatprep.subr.bf16.mxu1 %v1666_v40 }
  0x5c   :  { %1115 = vmatmul.mubr.bf16.gmra.mrb[28].mxu1 %v1665_v41  ;;  %1521 = vmatprep.mubr.bf16.mxu0 %v1668_v42 }
  0x5d   :  { %1518 = vmatpush3.bf16.msra.mxu0 %v1666_v40  ;;  %1525 = vmatprep.mubr.bf16.mxu1 %v1669_v43 }
  0x5e   :  { %1543 = vmatpush3.bf16.msra.mxu1 %v1666_v40  ;;  %1519 = vmatprep.subr.bf16.mxu0 %v1667_v44 }
  0x5f   :  { %1536 = vmatprep.subr.bf16.mxu1 %v1667_v44 }
  0x61   :  { %1520 = vmatpush3.bf16.msra.mxu0 %v1667_v44 }
  0x62   :  { %1544 = vmatpush3.bf16.msra.mxu1 %v1667_v44 }
  0x64   :  { %1522 = vmatmul.mubr.bf16.vlgmr.msra.gmra.mrb[32].mxu0 %v1670_v47 }
  0x65   :  { %1526 = vmatmul.mubr.bf16.vlgmr.msra.gmra.mrb[32].mxu1 %v1671_v49 }
  0xa1   :  { %v210_v53 = vpop.permute.xlu0 %209 }
  0xa6   :  { %v220_v3 = vpop.permute.xlu1 %219 }
  0xa7   :  { %v215_v55 = vpop.permute.xlu0 %214 }
  0xaa   :  { %v225_v9 = vpop.permute.xlu1 %224 }
  0xae   :  { %v230_v25 = vpop.permute.xlu0 %229 }
  0xaf   :  { %v235_v27 = vpop.permute.xlu1 %234 }
  0xb2   :  { %v240_v43 = vpop.permute.xlu0 %239 }
  0xb6   :  { %v245_v44 = vpop.permute.xlu1 %244 }
  0xf6   :  { %v1349_v54 = vpop.f32.mrb[0].mxu0 }
  0xf7   :  { %v1389_v56 = vpop.f32.mrb[0].mxu1  ;;  %v1350_v57 = vpop.f32.mrb[1].mxu0 }
  0xf8   :  { %v1351_v58 = vadd.f32 %v1350_v57, %v1349_v54  ;;  %v1390_v59 = vpop.f32.mrb[1].mxu1  ;;  %v1352_v60 = vpop.f32.mrb[2].mxu0 }
  0xf9   :  { %v1391_v61 = vadd.f32 %v1390_v59, %v1389_v56  ;;  %v1392_v62 = vpop.f32.mrb[2].mxu1  ;;  %v1353_v63 = vpop.f32.mrb[3].mxu0 }
  0xfa   :  { %v898_v0 = vadd.f32 %v1351_v58, %v210_v53  ;;  %v1354_v1 = vadd.f32 %v1353_v63, %v1352_v60  ;;  %v1393_v2 = vpop.f32.mrb[3].mxu1 }
  0xfb   :  { %v1394_v4 = vadd.f32 %v1393_v2, %v1392_v62 }
  0xfc   :  { %v2041_v5 = vadd.f32 %v1391_v61, %v898_v0  ;;  %v901_v6 = vadd.f32 %v1354_v1, %v215_v55 }
  0xfe   :  { %v2043_v7 = vadd.f32 %v1394_v4, %v901_v6  ;;  %v1355_v8 = vpop.f32.mrb[4].mxu0 }
  0xff   :  { %v1395_v10 = vpop.f32.mrb[4].mxu1  ;;  %v1356_v11 = vpop.f32.mrb[5].mxu0 }
 0x100   :  { %v1357_v12 = vadd.f32 %v1356_v11, %v1355_v8  ;;  %v1396_v13 = vpop.f32.mrb[5].mxu1  ;;  %v1358_v14 = vpop.f32.mrb[6].mxu0 }
 0x101   :  { %v1397_v15 = vadd.f32 %v1396_v13, %v1395_v10  ;;  %v1398_v16 = vpop.f32.mrb[6].mxu1  ;;  %v1359_v17 = vpop.f32.mrb[7].mxu0 }
 0x102   :  { %v906_v18 = vadd.f32 %v1357_v12, %v220_v3  ;;  %v1360_v19 = vadd.f32 %v1359_v17, %v1358_v14  ;;  %v1399_v20 = vpop.f32.mrb[7].mxu1 }
 0x103   :  { %v1400_v21 = vadd.f32 %v1399_v20, %v1398_v16 }
 0x104   :  { %v971_v22 = vadd.f32 %v1397_v15, %v906_v18  ;;  %v909_v23 = vadd.f32 %v1360_v19, %v225_v9 }
 0x106   :  { %v2045_v24 = vadd.f32 %v1400_v21, %v909_v23  ;;  %v1361_v26 = vpop.f32.mrb[8].mxu0 }
 0x107   :  { %v1401_v28 = vpop.f32.mrb[8].mxu1  ;;  %v1362_v29 = vpop.f32.mrb[9].mxu0 }
 0x108   :  { %v1363_v30 = vadd.f32 %v1362_v29, %v1361_v26  ;;  %v1402_v31 = vpop.f32.mrb[9].mxu1  ;;  %v1364_v32 = vpop.f32.mrb[10].mxu0 }
 0x109   :  { %v1403_v33 = vadd.f32 %v1402_v31, %v1401_v28  ;;  %v1404_v34 = vpop.f32.mrb[10].mxu1  ;;  %v1365_v35 = vpop.f32.mrb[11].mxu0 }
 0x10a   :  { %v914_v36 = vadd.f32 %v1363_v30, %v230_v25  ;;  %v1366_v37 = vadd.f32 %v1365_v35, %v1364_v32  ;;  %v1405_v38 = vpop.f32.mrb[11].mxu1 }
 0x10b   :  { %v1406_v39 = vadd.f32 %v1405_v38, %v1404_v34 }
 0x10c   :  { %v979_v40 = vadd.f32 %v1403_v33, %v914_v36  ;;  %v917_v41 = vadd.f32 %v1366_v37, %v235_v27 }
 0x10e   :  { %v2047_v42 = vadd.f32 %v1406_v39, %v917_v41  ;;  %v1367_v45 = vpop.f32.mrb[12].mxu0 }
 0x10f   :  { %v1407_v46 = vpop.f32.mrb[12].mxu1  ;;  %v1368_v47 = vpop.f32.mrb[13].mxu0 }
 0x110   :  { %v1408_v48 = vpop.f32.mrb[13].mxu1  ;;  %v1369_v49 = vadd.f32 %v1368_v47, %v1367_v45  ;;  %v1370_v51 = vpop.f32.mrb[14].mxu0 }
 0x111   :  { %v1409_v50 = vadd.f32 %v1408_v48, %v1407_v46  ;;  %v1410_v52 = vpop.f32.mrb[14].mxu1  ;;  %v1371_v53 = vpop.f32.mrb[15].mxu0 }
 0x112   :  { %v1411_v54 = vpop.f32.mrb[15].mxu1  ;;  %v922_v55 = vadd.f32 %v1369_v49, %v240_v43  ;;  %v1372_v56 = vadd.f32 %v1371_v53, %v1370_v51 }
 0x113   :  { %v1412_v57 = vadd.f32 %v1411_v54, %v1410_v52 }
 0x114   :  { %v987_v58 = vadd.f32 %v1409_v50, %v922_v55  ;;  %v925_v59 = vadd.f32 %v1372_v56, %v245_v44 }
 0x116   :  { %v990_v60 = vadd.f32 %v1412_v57, %v925_v59  ;;  %v1429_v61 = vpop.f32.mrb[16].mxu0 }
 0x117   :  { %v1430_v62 = vpop.f32.mrb[17].mxu0  ;;  %v1469_v63 = vpop.f32.mrb[16].mxu1 }
 0x118   :  { %v1431_v0 = vadd.f32 %v1430_v62, %v1429_v61  ;;  %v1432_v1 = vpop.f32.mrb[18].mxu0  ;;  %v1470_v2 = vpop.f32.mrb[17].mxu1 }
 0x119   :  { %v1433_v3 = vpop.f32.mrb[19].mxu0  ;;  %v1471_v6 = vadd.f32 %v1470_v2, %v1469_v63  ;;  %v1472_v8 = vpop.f32.mrb[18].mxu1 }
 0x11a   :  { %v1028_v4 = vadd.f32 %v1431_v0, %v2041_v5  ;;  %v1434_v9 = vadd.f32 %v1433_v3, %v1432_v1  ;;  %v1473_v10 = vpop.f32.mrb[19].mxu1 }
 0x11b   :  { %v1474_v12 = vadd.f32 %v1473_v10, %v1472_v8 }
 0x11c   :  { %v1031_v11 = vadd.f32 %v1434_v9, %v2043_v7  ;;  %v1093_v13 = vadd.f32 %v1471_v6, %v1028_v4 }
 0x11e   :  { %v1435_v14 = vpop.f32.mrb[20].mxu0  ;;  %v2051_v15 = vadd.f32 %v1474_v12, %v1031_v11 }
 0x11f   :  { %v1436_v16 = vpop.f32.mrb[21].mxu0  ;;  %v1475_v17 = vpop.f32.mrb[20].mxu1 }
 0x120   :  { %v1437_v18 = vadd.f32 %v1436_v16, %v1435_v14  ;;  %v1438_v19 = vpop.f32.mrb[22].mxu0  ;;  %v1476_v20 = vpop.f32.mrb[21].mxu1 }
 0x121   :  { %v1439_v21 = vpop.f32.mrb[23].mxu0  ;;  %v1477_v25 = vadd.f32 %v1476_v20, %v1475_v17  ;;  %v1478_v5 = vpop.f32.mrb[22].mxu1 }
 0x122   :  { %v1036_v23 = vadd.f32 %v1437_v18, %v971_v22  ;;  %v1440_v26 = vadd.f32 %v1439_v21, %v1438_v19  ;;  %v1479_v27 = vpop.f32.mrb[23].mxu1 }
 0x123   :  { %v1480_v29 = vadd.f32 %v1479_v27, %v1478_v5 }
 0x124   :  { %v1039_v28 = vadd.f32 %v1440_v26, %v2045_v24  ;;  %v1101_v7 = vadd.f32 %v1477_v25, %v1036_v23 }
 0x126   :  { %v1441_v30 = vpop.f32.mrb[24].mxu0  ;;  %v1104_v31 = vadd.f32 %v1480_v29, %v1039_v28 }
 0x127   :  { %v1442_v32 = vpop.f32.mrb[25].mxu0  ;;  %v1481_v33 = vpop.f32.mrb[24].mxu1 }
 0x128   :  { %v1443_v34 = vadd.f32 %v1442_v32, %v1441_v30  ;;  %v1444_v35 = vpop.f32.mrb[26].mxu0  ;;  %v1482_v36 = vpop.f32.mrb[25].mxu1 }
 0x129   :  { %v1445_v37 = vpop.f32.mrb[27].mxu0  ;;  %v1483_v39 = vadd.f32 %v1482_v36, %v1481_v33  ;;  %v1484_v41 = vpop.f32.mrb[26].mxu1 }
 0x12a   :  { %v1044_v38 = vadd.f32 %v1443_v34, %v979_v40  ;;  %v1446_v22 = vadd.f32 %v1445_v37, %v1444_v35  ;;  %v1485_v43 = vpop.f32.mrb[27].mxu1 }
 0x12b   :  { %v1486_v45 = vadd.f32 %v1485_v43, %v1484_v41 }
 0x12c   :  { %v1047_v44 = vadd.f32 %v1446_v22, %v2047_v42  ;;  %v1109_v46 = vadd.f32 %v1483_v39, %v1044_v38 }
 0x12e   :  { %v1447_v24 = vpop.f32.mrb[28].mxu0  ;;  %v1112_v47 = vadd.f32 %v1486_v45, %v1047_v44 }
 0x12f   :  { %v1448_v48 = vpop.f32.mrb[29].mxu0  ;;  %v1487_v49 = vpop.f32.mrb[28].mxu1 }
 0x130   :  { %v1449_v50 = vadd.f32 %v1448_v48, %v1447_v24  ;;  %v1450_v51 = vpop.f32.mrb[30].mxu0  ;;  %v1488_v52 = vpop.f32.mrb[29].mxu1 }
 0x131   :  { %v1451_v53 = vpop.f32.mrb[31].mxu0  ;;  %v1489_v55 = vadd.f32 %v1488_v52, %v1487_v49  ;;  %v1490_v56 = vpop.f32.mrb[30].mxu1 }
 0x132   :  { %v1052_v54 = vadd.f32 %v1449_v50, %v987_v58  ;;  %v1452_v40 = vadd.f32 %v1451_v53, %v1450_v51  ;;  %v1491_v57 = vpop.f32.mrb[31].mxu1 }
 0x133   :  { %v1492_v61 = vadd.f32 %v1491_v57, %v1490_v56 }
 0x134   :  { %v1055_v59 = vadd.f32 %v1452_v40, %v990_v60  ;;  %v1117_v62 = vadd.f32 %v1489_v55, %v1052_v54 }
 0x136   :  { %v1120_v63 = vadd.f32 %v1492_v61, %v1055_v59 }
 0x137   :  { %v1523_v42 = vpop.f32.mrb[32].mxu0 }
 0x138   :  { %v1166_v0 = vadd.f32 %v1523_v42, %v1101_v7  ;;  %v1527_v1 = vpop.f32.mrb[32].mxu1  ;;  %v1157_v2 = vpop.f32.mrb[33].mxu0 }
 0x139   :  { %v1182_v3 = vadd.f32 %v1527_v1, %v1117_v62  ;;  %v1158_v4 = vadd.f32 %v1157_v2, %v1093_v13  ;;  %v1173_v6 = vpop.f32.mrb[33].mxu1  ;;  %v1524_v8 = vpop.f32.mrb[34].mxu0 }
 0x13a   :  { %vm1190_vm1 = vcmp.gt.f32.partialorder %v1166_v0, 0.0  ;;  %v1198_v9 = vmul.f32 0.2, %v1166_v0  ;;  %v1174_v58 = vadd.f32 %v1173_v6, %v1109_v46  ;;  %v1169_v10 = vadd.f32 %v1524_v8, %v1104_v31  ;;  %v1528_v11 = vpop.f32.mrb[34].mxu1  ;;  %v1160_v12 = vpop.f32.mrb[35].mxu0 }
 0x13b   :  { %vm1194_vm2 = vcmp.gt.f32.partialorder %v1182_v3, 0.0  ;;  %v1202_v60 = vmul.f32 0.2, %v1182_v3  ;;  %vm1188_vm3 = vcmp.gt.f32.partialorder %v1158_v4, 0.0  ;;  %v1196_v14 = vmul.f32 0.2, %v1158_v4 }
 0x13c   :  { %v1206_v16 = vsel %vm1190_vm1, %v1166_v0, %v1198_v9  ;;  %vm1192_vm4 = vcmp.gt.f32.partialorder %v1174_v58, 0.0  ;;  %v1200_v17 = vmul.f32 0.2, %v1174_v58  ;;  %vm1191_vm5 = vcmp.gt.f32.partialorder %v1169_v10, 0.0  ;;  %v1176_v18 = vpop.f32.mrb[35].mxu1 }
 0x13d   :  { %1215 = vst.msk [vmem:[%s2091_s3 + $0x10] sm:$0xff] %vm1212_vm0, %v1206_v16  ;;  %v1210_v13 = vsel %vm1194_vm2, %v1182_v3, %v1202_v60  ;;  %v1204_v19 = vsel %vm1188_vm3, %v1158_v4, %v1196_v14  ;;  %v1199_v20 = vmul.f32 0.2, %v1169_v10  ;;  %v1185_v21 = vadd.f32 %v1528_v11, %v1120_v63 }
 0x13e   :  { %1219 = vst.msk [vmem:[%s2091_s3 + $0x30] sm:$0xff] %vm1212_vm0, %v1210_v13  ;;  %1213 = vst.msk [vmem:[%s2091_s3] sm:$0xff] %vm1212_vm0, %v1204_v19  ;;  %v1208_v23 = vsel %vm1192_vm4, %v1174_v58, %v1200_v17  ;;  %v1161_v25 = vadd.f32 %v1160_v12, %v2051_v15  ;;  %v1177_v5 = vadd.f32 %v1176_v18, %v1112_v47 }
 0x13f   :  { %1217 = vst.msk [vmem:[%s2091_s3 + $0x20] sm:$0xff] %vm1212_vm0, %v1208_v23  ;;  %v1207_v26 = vsel %vm1191_vm5, %v1169_v10, %v1199_v20  ;;  %vm1195_vm6 = vcmp.gt.f32.partialorder %v1185_v21, 0.0  ;;  %v1203_v27 = vmul.f32 0.2, %v1185_v21 }
 0x140   :  { %1216 = vst.msk [vmem:[%s2091_s3 + $0x18] sm:$0xff] %vm1212_vm0, %v1207_v26  ;;  %vm1189_vm7 = vcmp.gt.f32.partialorder %v1161_v25, 0.0  ;;  %v1197_v28 = vmul.f32 0.2, %v1161_v25  ;;  %vm1193_vm8 = vcmp.gt.f32.partialorder %v1177_v5, 0.0 }
 0x141   :  { %v1201_v29 = vmul.f32 0.2, %v1177_v5  ;;  %v1211_v7 = vsel %vm1195_vm6, %v1185_v21, %v1203_v27 }
 0x142   :  { %1220 = vst.msk [vmem:[%s2091_s3 + $0x38] sm:$0xff] %vm1212_vm0, %v1211_v7  ;;  %v1205_v15 = vsel %vm1189_vm7, %v1161_v25, %v1197_v28 }
 0x143   :  { %v1209_v30 = vsel %vm1193_vm8, %v1177_v5, %v1201_v29  ;;  %1214 = vst.msk [vmem:[%s2091_s3 + $0x8] sm:$0xff] %vm1212_vm0, %v1205_v15 }
 0x144   :  { %1218 = vst.msk [vmem:[%s2091_s3 + $0x28] sm:$0xff] %vm1212_vm0, %v1209_v30 }

// kernel: d_net128_la_forward.17
= control target key start
LH: loop header
LB: loop body
LE: loop exit
PB: predicated region body
PF: predicated region fallthrough
CT: control target
= control target key end

     0   :  { %v965_v1 = vmov 0   ;;  %vm725_vm0 = vcmask 15360   ;;  %s1196_s1 = inlined_call_operand.vmem [shape: bf16[1024,2], index: 1, kind: input, shape index: {}]   ;;  %s1197_s0 = inlined_call_operand.vmem [shape: bf16[8,1024], index: 0, kind: input, shape index: {}]   ;;  %s1198_s2 = inlined_call_operand.vmem [shape: f32[8,1], index: 2, kind: input, shape index: {}]   ;;  %s1199_s3 = inlined_call_operand.vmem [shape: f32[8,2], index: 3, kind: output, shape index: {}]  }
   0x1   :  { %v893_v0 = vld [vmem:[%s1196_s1 + $0x40] sm:$0xff]   ;;  %892 = vset.pattern.permute.xlu0 %v965_v1  ;;  %v897_v5 = vld [vmem:[%s1196_s1 + $0x48] sm:$0xff]   ;;  %v901_v9 = vld [vmem:[%s1196_s1 + $0x50] sm:$0xff]  }
   0x2   :  { %v894_v2 = vld [vmem:[%s1196_s1 + $0xc0] sm:$0xff]   ;;  %803 = vmatprep.subr.bf16.mxu0 %v893_v0  ;;  %v898_v6 = vld [vmem:[%s1196_s1 + $0xc8] sm:$0xff]   ;;  %v902_v10 = vld [vmem:[%s1196_s1 + $0xd0] sm:$0xff]  }
   0x3   :  { %v895_v3 = vld [vmem:[%s1196_s1] sm:$0xff]   ;;  %825 = vmatprep.subr.bf16.mxu1 %v894_v2  ;;  %v899_v7 = vld [vmem:[%s1196_s1 + $0x8] sm:$0xff]   ;;  %v903_v11 = vld [vmem:[%s1196_s1 + $0x10] sm:$0xff]  }
   0x4   :  { %v896_v4 = vld [vmem:[%s1196_s1 + $0x80] sm:$0xff]   ;;  %804 = vmatpush3.bf16.msra.mxu0 %v895_v3  ;;  %v900_v8 = vld [vmem:[%s1196_s1 + $0x88] sm:$0xff]   ;;  %v904_v12 = vld [vmem:[%s1196_s1 + $0x90] sm:$0xff]  }
   0x5   :  { %826 = vmatpush3.bf16.msra.mxu1 %v896_v4  ;;  %805 = vmatprep.subr.bf16.mxu0 %v897_v5  ;;  %v905_v13 = vld [vmem:[%s1196_s1 + $0x58] sm:$0xff]   ;;  %v909_v17 = vld [vmem:[%s1196_s1 + $0x60] sm:$0xff]   ;;  %v913_v21 = vld [vmem:[%s1196_s1 + $0x68] sm:$0xff]  }
   0x6   :  { %827 = vmatprep.subr.bf16.mxu1 %v898_v6  ;;  %v906_v14 = vld [vmem:[%s1196_s1 + $0xd8] sm:$0xff]   ;;  %v910_v18 = vld [vmem:[%s1196_s1 + $0xe0] sm:$0xff]   ;;  %v914_v22 = vld [vmem:[%s1196_s1 + $0xe8] sm:$0xff]  }
   0x7   :  { %v907_v15 = vld [vmem:[%s1196_s1 + $0x18] sm:$0xff]   ;;  %v911_v19 = vld [vmem:[%s1196_s1 + $0x20] sm:$0xff]   ;;  %v915_v23 = vld [vmem:[%s1196_s1 + $0x28] sm:$0xff]  }
   0x8   :  { %806 = vmatpush3.bf16.msra.mxu0 %v899_v7  ;;  %v908_v16 = vld [vmem:[%s1196_s1 + $0x98] sm:$0xff]   ;;  %v912_v20 = vld [vmem:[%s1196_s1 + $0xa0] sm:$0xff]   ;;  %v916_v24 = vld [vmem:[%s1196_s1 + $0xa8] sm:$0xff]  }
   0x9   :  { %828 = vmatpush3.bf16.msra.mxu1 %v900_v8  ;;  %807 = vmatprep.subr.bf16.mxu0 %v901_v9  ;;  %v917_v25 = vld [vmem:[%s1196_s1 + $0x70] sm:$0xff]   ;;  %v921_v29 = vld [vmem:[%s1196_s1 + $0x78] sm:$0xff]   ;;  %v15_v33 = vld [vmem:[%s1197_s0] sm:$0xff] }
   0xa   :  { %829 = vmatprep.subr.bf16.mxu1 %v902_v10  ;;  %v918_v26 = vld [vmem:[%s1196_s1 + $0xf0] sm:$0xff]   ;;  %v922_v30 = vld [vmem:[%s1196_s1 + $0xf8] sm:$0xff]   ;;  %v16_v34 = vld [vmem:[%s1197_s0 + $0x8] sm:$0xff]  ;;  %v731_v35 = vcombine.low %v15_v33, %v15_v33  ;;  %v732_v36 = vcombine.high %v15_v33, %v15_v33 }
   0xb   :  { %v919_v27 = vld [vmem:[%s1196_s1 + $0x30] sm:$0xff]   ;;  %v923_v31 = vld [vmem:[%s1196_s1 + $0x38] sm:$0xff]   ;;  %v733_v37 = vcombine.low %v16_v34, %v16_v34  ;;  %v734_v38 = vcombine.high %v16_v34, %v16_v34  ;;  %v929_v39 = vld [vmem:[%s1196_s1 + $0x140] sm:$0xff]  }
   0xc   :  { %808 = vmatpush3.bf16.msra.mxu0 %v903_v11  ;;  %v920_v28 = vld [vmem:[%s1196_s1 + $0xb0] sm:$0xff]   ;;  %v924_v32 = vld [vmem:[%s1196_s1 + $0xb8] sm:$0xff]   ;;  %v930_v40 = vld [vmem:[%s1196_s1 + $0x1c0] sm:$0xff]   ;;  %597 = vmatprep.mubr.bf16.mxu0 %v732_v36 }
   0xd   :  { %830 = vmatpush3.bf16.msra.mxu1 %v904_v12  ;;  %809 = vmatprep.subr.bf16.mxu0 %v905_v13  ;;  %v931_v41 = vld [vmem:[%s1196_s1 + $0x100] sm:$0xff]   ;;  %v933_v43 = vld [vmem:[%s1196_s1 + $0x148] sm:$0xff]   ;;  %v937_v47 = vld [vmem:[%s1196_s1 + $0x150] sm:$0xff]  }
   0xe   :  { %831 = vmatprep.subr.bf16.mxu1 %v906_v14  ;;  %637 = vmatprep.mubr.bf16.mxu1 %v734_v38  ;;  %v932_v42 = vld [vmem:[%s1196_s1 + $0x180] sm:$0xff]   ;;  %v934_v44 = vld [vmem:[%s1196_s1 + $0x1c8] sm:$0xff]   ;;  %v938_v48 = vld [vmem:[%s1196_s1 + $0x1d0] sm:$0xff]  }
   0xf   :  { %v935_v45 = vld [vmem:[%s1196_s1 + $0x108] sm:$0xff]   ;;  %v939_v49 = vld [vmem:[%s1196_s1 + $0x110] sm:$0xff]   ;;  %v941_v51 = vld [vmem:[%s1196_s1 + $0x158] sm:$0xff]  }
  0x10   :  { %810 = vmatpush3.bf16.msra.mxu0 %v907_v15  ;;  %v936_v46 = vld [vmem:[%s1196_s1 + $0x188] sm:$0xff]   ;;  %v940_v50 = vld [vmem:[%s1196_s1 + $0x190] sm:$0xff]   ;;  %v942_v52 = vld [vmem:[%s1196_s1 + $0x1d8] sm:$0xff]  }
  0x11   :  { %832 = vmatpush3.bf16.msra.mxu1 %v908_v16  ;;  %811 = vmatprep.subr.bf16.mxu0 %v909_v17  ;;  %v943_v53 = vld [vmem:[%s1196_s1 + $0x118] sm:$0xff]   ;;  %v945_v55 = vld [vmem:[%s1196_s1 + $0x160] sm:$0xff]   ;;  %v949_v59 = vld [vmem:[%s1196_s1 + $0x168] sm:$0xff]  }
  0x12   :  { %833 = vmatprep.subr.bf16.mxu1 %v910_v18  ;;  %v944_v54 = vld [vmem:[%s1196_s1 + $0x198] sm:$0xff]   ;;  %v946_v56 = vld [vmem:[%s1196_s1 + $0x1e0] sm:$0xff]   ;;  %v950_v60 = vld [vmem:[%s1196_s1 + $0x1e8] sm:$0xff]  }
  0x13   :  { %v947_v57 = vld [vmem:[%s1196_s1 + $0x120] sm:$0xff]   ;;  %v951_v61 = vld [vmem:[%s1196_s1 + $0x128] sm:$0xff]   ;;  %v953_v63 = vld [vmem:[%s1196_s1 + $0x170] sm:$0xff]  }
  0x14   :  { %812 = vmatpush3.bf16.msra.mxu0 %v911_v19  ;;  %v948_v58 = vld [vmem:[%s1196_s1 + $0x1a0] sm:$0xff]   ;;  %v952_v62 = vld [vmem:[%s1196_s1 + $0x1a8] sm:$0xff]   ;;  %v954_v0 = vld [vmem:[%s1196_s1 + $0x1f0] sm:$0xff]  }
  0x15   :  { %834 = vmatpush3.bf16.msra.mxu1 %v912_v20  ;;  %813 = vmatprep.subr.bf16.mxu0 %v913_v21  ;;  %v955_v1 = vld [vmem:[%s1196_s1 + $0x130] sm:$0xff]   ;;  %v957_v3 = vld [vmem:[%s1196_s1 + $0x178] sm:$0xff]   ;;  %v147_v11 = vld [vmem:[%s1198_s2] sm:$0xff] }
  0x16   :  { %835 = vmatprep.subr.bf16.mxu1 %v914_v22  ;;  %v956_v2 = vld [vmem:[%s1196_s1 + $0x1b0] sm:$0xff]   ;;  %v958_v4 = vld [vmem:[%s1196_s1 + $0x1f8] sm:$0xff]   ;;  %150 = vperm.xlu0 %892, %v147_v11  }
  0x17   :  { %v959_v5 = vld [vmem:[%s1196_s1 + $0x138] sm:$0xff]   ;;  %v17_v7 = vld [vmem:[%s1197_s0 + $0x10] sm:$0xff] }
  0x18   :  { %814 = vmatpush3.bf16.msra.mxu0 %v915_v23  ;;  %v960_v6 = vld [vmem:[%s1196_s1 + $0x1b8] sm:$0xff]   ;;  %v735_v8 = vcombine.low %v17_v7, %v17_v7  ;;  %v736_v9 = vcombine.high %v17_v7, %v17_v7 }
  0x19   :  { %836 = vmatpush3.bf16.msra.mxu1 %v916_v24  ;;  %815 = vmatprep.subr.bf16.mxu0 %v917_v25  ;;  %v18_v10 = vld [vmem:[%s1197_s0 + $0x18] sm:$0xff] }
  0x1a   :  { %837 = vmatprep.subr.bf16.mxu1 %v918_v26  ;;  %v737_v12 = vcombine.low %v18_v10, %v18_v10  ;;  %v738_v13 = vcombine.high %v18_v10, %v18_v10 }
  0x1c   :  { %816 = vmatpush3.bf16.msra.mxu0 %v919_v27 }
  0x1d   :  { %838 = vmatpush3.bf16.msra.mxu1 %v920_v28  ;;  %817 = vmatprep.subr.bf16.mxu0 %v921_v29 }
  0x1e   :  { %839 = vmatprep.subr.bf16.mxu1 %v922_v30 }
  0x20   :  { %818 = vmatpush3.bf16.msra.mxu0 %v923_v31 }
  0x21   :  { %840 = vmatpush3.bf16.msra.mxu1 %v924_v32  ;;  %847 = vmatprep.subr.bf16.mxu0 %v929_v39 }
  0x22   :  { %869 = vmatprep.subr.bf16.mxu1 %v930_v40 }
  0x23   :  { %598 = vmatmul.mubr.bf16.vlgmr.msra.gmra.mrb[0].mxu0 %v731_v35 }
  0x24   :  { %638 = vmatmul.mubr.bf16.vlgmr.msra.gmra.mrb[0].mxu1 %v733_v37  ;;  %848 = vmatpush3.bf16.msra.mxu0 %v931_v41 }
  0x25   :  { %870 = vmatpush3.bf16.msra.mxu1 %v932_v42  ;;  %849 = vmatprep.subr.bf16.mxu0 %v933_v43 }
  0x26   :  { %871 = vmatprep.subr.bf16.mxu1 %v934_v44  ;;  %677 = vmatprep.mubr.bf16.mxu0 %v736_v9 }
  0x27   :  { %717 = vmatprep.mubr.bf16.mxu1 %v738_v13 }
  0x28   :  { %850 = vmatpush3.bf16.msra.mxu0 %v935_v45 }
  0x29   :  { %872 = vmatpush3.bf16.msra.mxu1 %v936_v46  ;;  %851 = vmatprep.subr.bf16.mxu0 %v937_v47 }
  0x2a   :  { %873 = vmatprep.subr.bf16.mxu1 %v938_v48 }
  0x2c   :  { %852 = vmatpush3.bf16.msra.mxu0 %v939_v49 }
  0x2d   :  { %874 = vmatpush3.bf16.msra.mxu1 %v940_v50  ;;  %853 = vmatprep.subr.bf16.mxu0 %v941_v51 }
  0x2e   :  { %875 = vmatprep.subr.bf16.mxu1 %v942_v52 }
  0x30   :  { %854 = vmatpush3.bf16.msra.mxu0 %v943_v53 }
  0x31   :  { %876 = vmatpush3.bf16.msra.mxu1 %v944_v54  ;;  %855 = vmatprep.subr.bf16.mxu0 %v945_v55 }
  0x32   :  { %877 = vmatprep.subr.bf16.mxu1 %v946_v56 }
  0x34   :  { %856 = vmatpush3.bf16.msra.mxu0 %v947_v57 }
  0x35   :  { %878 = vmatpush3.bf16.msra.mxu1 %v948_v58  ;;  %857 = vmatprep.subr.bf16.mxu0 %v949_v59 }
  0x36   :  { %879 = vmatprep.subr.bf16.mxu1 %v950_v60 }
  0x38   :  { %858 = vmatpush3.bf16.msra.mxu0 %v951_v61 }
  0x39   :  { %880 = vmatpush3.bf16.msra.mxu1 %v952_v62  ;;  %859 = vmatprep.subr.bf16.mxu0 %v953_v63 }
  0x3a   :  { %881 = vmatprep.subr.bf16.mxu1 %v954_v0 }
  0x3c   :  { %860 = vmatpush3.bf16.msra.mxu0 %v955_v1 }
  0x3d   :  { %882 = vmatpush3.bf16.msra.mxu1 %v956_v2  ;;  %861 = vmatprep.subr.bf16.mxu0 %v957_v3 }
  0x3e   :  { %883 = vmatprep.subr.bf16.mxu1 %v958_v4 }
  0x40   :  { %862 = vmatpush3.bf16.msra.mxu0 %v959_v5 }
  0x41   :  { %884 = vmatpush3.bf16.msra.mxu1 %v960_v6 }
  0x43   :  { %678 = vmatmul.mubr.bf16.vlgmr.msra.gmra.mrb[4].mxu0 %v735_v8 }
  0x44   :  { %718 = vmatmul.mubr.bf16.vlgmr.msra.gmra.mrb[4].mxu1 %v737_v12 }
  0x95   :  { %v151_v14 = vpop.permute.xlu0 %150 }
  0xf6   :  { %v819_v15 = vpop.f32.mrb[0].mxu0 }
  0xf7   :  { %v841_v16 = vpop.f32.mrb[0].mxu1  ;;  %v820_v17 = vpop.f32.mrb[1].mxu0 }
  0xf8   :  { %v842_v18 = vpop.f32.mrb[1].mxu1  ;;  %v821_v19 = vadd.f32 %v820_v17, %v819_v15  ;;  %v822_v21 = vpop.f32.mrb[2].mxu0 }
  0xf9   :  { %v843_v20 = vadd.f32 %v842_v18, %v841_v16  ;;  %v844_v22 = vpop.f32.mrb[2].mxu1  ;;  %v823_v23 = vpop.f32.mrb[3].mxu0 }
  0xfa   :  { %v845_v24 = vpop.f32.mrb[3].mxu1  ;;  %v600_v25 = vadd.f32 %v821_v19, %v151_v14 }
  0xfc   :  { %v640_v26 = vadd.f32 %v843_v20, %v600_v25 }
 0x116   :  { %v863_v27 = vpop.f32.mrb[4].mxu0 }
 0x117   :  { %v885_v28 = vpop.f32.mrb[4].mxu1  ;;  %v864_v29 = vpop.f32.mrb[5].mxu0 }
 0x118   :  { %v886_v30 = vpop.f32.mrb[5].mxu1  ;;  %v865_v31 = vadd.f32 %v864_v29, %v863_v27  ;;  %v866_v33 = vpop.f32.mrb[6].mxu0 }
 0x119   :  { %v887_v32 = vadd.f32 %v886_v30, %v885_v28  ;;  %v888_v34 = vpop.f32.mrb[6].mxu1  ;;  %v867_v35 = vpop.f32.mrb[7].mxu0 }
 0x11a   :  { %v889_v36 = vpop.f32.mrb[7].mxu1  ;;  %v680_v37 = vadd.f32 %v865_v31, %v640_v26 }
 0x11c   :  { %v720_v38 = vadd.f32 %v887_v32, %v680_v37 }
 0x11e   :  { %726 = vst.msk [vmem:[%s1199_s3] sm:$0xff] %vm725_vm0, %v720_v38 }

// kernel: d_net128_la_forward.15
= control target key start
LH: loop header
LB: loop body
LE: loop exit
PB: predicated region body
PF: predicated region fallthrough
CT: control target
= control target key end

     0   :  { %v1310_v1 = vmov 0   ;;  %vm667_vm0 = vcmask 785408   ;;  %vm964_vm2 = vcmask 261120   ;;  %s1661_s1 = inlined_call_operand.vmem [shape: bf16[864,32], index: 1, kind: input, shape index: {}]   ;;  %s1662_s0 = inlined_call_operand.vmem [shape: bf16[64,864], index: 0, kind: input, shape index: {}]   ;;  %s1663_s2 = inlined_call_operand.vmem [shape: f32[64,1], index: 2, kind: input, shape index: {}]   ;;  %s1664_s3 = inlined_call_operand.vmem [shape: f32[64,32], index: 3, kind: output, shape index: {}]  }
   0x1   :  { %v1216_v0 = vld [vmem:[%s1661_s1 + $0x40] sm:$0xff]   ;;  %1214 = vset.pattern.permute.xlu0 %v1310_v1  ;;  %1215 = vset.pattern.permute.xlu1 %v1310_v1  ;;  %v1220_v5 = vld [vmem:[%s1661_s1 + $0x48] sm:$0xff]   ;;  %v1224_v9 = vld [vmem:[%s1661_s1 + $0x50] sm:$0xff]  }
   0x2   :  { %v1217_v2 = vld [vmem:[%s1661_s1] sm:$0xff]   ;;  %1063 = vmatprep.subr.bf16.mxu0 %v1216_v0  ;;  %v1221_v6 = vld [vmem:[%s1661_s1 + $0x8] sm:$0xff]   ;;  %v1225_v10 = vld [vmem:[%s1661_s1 + $0x10] sm:$0xff]  }
   0x3   :  { %v1218_v3 = vld [vmem:[%s1661_s1 + $0xc0] sm:$0xff]   ;;  %1064 = vmatpush3.bf16.msra.mxu0 %v1217_v2  ;;  %v1222_v7 = vld [vmem:[%s1661_s1 + $0xc8] sm:$0xff]   ;;  %v1226_v11 = vld [vmem:[%s1661_s1 + $0xd0] sm:$0xff]  }
   0x4   :  { %v1219_v4 = vld [vmem:[%s1661_s1 + $0x80] sm:$0xff]   ;;  %1103 = vmatprep.subr.bf16.mxu1 %v1218_v3  ;;  %1065 = vmatprep.subr.bf16.mxu0 %v1220_v5  ;;  %v1223_v8 = vld [vmem:[%s1661_s1 + $0x88] sm:$0xff]   ;;  %v1227_v12 = vld [vmem:[%s1661_s1 + $0x90] sm:$0xff]  }
   0x5   :  { %1104 = vmatpush3.bf16.msra.mxu1 %v1219_v4  ;;  %v1228_v13 = vld [vmem:[%s1661_s1 + $0x58] sm:$0xff]   ;;  %v1232_v17 = vld [vmem:[%s1661_s1 + $0x60] sm:$0xff]   ;;  %v1236_v21 = vld [vmem:[%s1661_s1 + $0x68] sm:$0xff]  }
   0x6   :  { %1105 = vmatprep.subr.bf16.mxu1 %v1222_v7  ;;  %v1229_v14 = vld [vmem:[%s1661_s1 + $0x18] sm:$0xff]   ;;  %v1233_v18 = vld [vmem:[%s1661_s1 + $0x20] sm:$0xff]   ;;  %v1237_v22 = vld [vmem:[%s1661_s1 + $0x28] sm:$0xff]  }
   0x7   :  { %1066 = vmatpush3.bf16.msra.mxu0 %v1221_v6  ;;  %v1230_v15 = vld [vmem:[%s1661_s1 + $0xd8] sm:$0xff]   ;;  %v1234_v19 = vld [vmem:[%s1661_s1 + $0xe0] sm:$0xff]   ;;  %v1238_v23 = vld [vmem:[%s1661_s1 + $0xe8] sm:$0xff]  }
   0x8   :  { %1067 = vmatprep.subr.bf16.mxu0 %v1224_v9  ;;  %v1231_v16 = vld [vmem:[%s1661_s1 + $0x98] sm:$0xff]   ;;  %v1235_v20 = vld [vmem:[%s1661_s1 + $0xa0] sm:$0xff]   ;;  %v1239_v24 = vld [vmem:[%s1661_s1 + $0xa8] sm:$0xff]  }
   0x9   :  { %1106 = vmatpush3.bf16.msra.mxu1 %v1223_v8  ;;  %v1240_v25 = vld [vmem:[%s1661_s1 + $0x70] sm:$0xff]   ;;  %v1244_v29 = vld [vmem:[%s1661_s1 + $0x78] sm:$0xff]   ;;  %v1249_v33 = vld [vmem:[%s1662_s0 + $0x4] ss:$28 sps:$4 sm:$0xff]  }
   0xa   :  { %1107 = vmatprep.subr.bf16.mxu1 %v1226_v11  ;;  %v1241_v26 = vld [vmem:[%s1661_s1 + $0x30] sm:$0xff]   ;;  %v1245_v30 = vld [vmem:[%s1661_s1 + $0x38] sm:$0xff]   ;;  %712 = vmatprep.mubr.bf16.mxu0 %v1249_v33  ;;  %v1251_v35 = vld [vmem:[%s1661_s1 + $0x140] sm:$0xff]  }
   0xb   :  { %1068 = vmatpush3.bf16.msra.mxu0 %v1225_v10  ;;  %v1242_v27 = vld [vmem:[%s1661_s1 + $0xf0] sm:$0xff]   ;;  %v1246_v31 = vld [vmem:[%s1661_s1 + $0xf8] sm:$0xff]   ;;  %v1252_v36 = vld [vmem:[%s1662_s0 + $0x8] ss:$28 sps:$4 sm:$0xff]  }
   0xc   :  { %1069 = vmatprep.subr.bf16.mxu0 %v1228_v13  ;;  %v1243_v28 = vld [vmem:[%s1661_s1 + $0xb0] sm:$0xff]   ;;  %v1247_v32 = vld [vmem:[%s1662_s0] ss:$28 sps:$4 sm:$0xff]   ;;  %v1254_v37 = vld [vmem:[%s1662_s0 + $0xc] ss:$28 sps:$4 sm:$0xff]  }
   0xd   :  { %1108 = vmatpush3.bf16.msra.mxu1 %v1227_v12  ;;  %v1250_v34 = vld [vmem:[%s1661_s1 + $0xb8] sm:$0xff]   ;;  %v1255_v38 = vld [vmem:[%s1661_s1 + $0x100] sm:$0xff]   ;;  %777 = vmatprep.mubr.bf16.mxu1 %v1254_v37  ;;  %v1256_v39 = vld [vmem:[%s1661_s1 + $0x148] sm:$0xff]  }
   0xe   :  { %1109 = vmatprep.subr.bf16.mxu1 %v1230_v15  ;;  %v1257_v40 = vld [vmem:[%s1661_s1 + $0x108] sm:$0xff]   ;;  %v1258_v41 = vld [vmem:[%s1662_s0 + $0x3c] ss:$28 sps:$4 sm:$0xff]   ;;  %v1261_v43 = vld [vmem:[%s1661_s1 + $0x150] sm:$0xff]  }
   0xf   :  { %1070 = vmatpush3.bf16.msra.mxu0 %v1229_v14  ;;  %v1260_v42 = vld [vmem:[%s1662_s0 + $0x38] ss:$28 sps:$4 sm:$0xff]   ;;  %v1262_v44 = vld [vmem:[%s1662_s0 + $0x44] ss:$28 sps:$4 sm:$0xff]   ;;  %v1271_v51 = vld [vmem:[%s1662_s0 + $0x70] ss:$28 sps:$4 sm:$0xff]  }
  0x10   :  { %1071 = vmatprep.subr.bf16.mxu0 %v1232_v17  ;;  %v1264_v45 = vld [vmem:[%s1661_s1 + $0x110] sm:$0xff]   ;;  %v1265_v46 = vld [vmem:[%s1662_s0 + $0x40] ss:$28 sps:$4 sm:$0xff]   ;;  %v1273_v53 = vld [vmem:[%s1661_s1 + $0x188] sm:$0xff]  }
  0x11   :  { %1110 = vmatpush3.bf16.msra.mxu1 %v1231_v16  ;;  %v1266_v47 = vld [vmem:[%s1661_s1 + $0x158] sm:$0xff]   ;;  %v1267_v48 = vld [vmem:[%s1661_s1 + $0x180] sm:$0xff]   ;;  %v1269_v50 = vld [vmem:[%s1662_s0 + $0x74] ss:$28 sps:$4 sm:$0xff]  }
  0x12   :  { %1111 = vmatprep.subr.bf16.mxu1 %v1234_v19  ;;  %v1268_v49 = vld [vmem:[%s1661_s1 + $0x118] sm:$0xff]   ;;  %v1272_v52 = vld [vmem:[%s1661_s1 + $0x160] sm:$0xff]   ;;  %v1278_v57 = vld [vmem:[%s1661_s1 + $0x168] sm:$0xff]  }
  0x13   :  { %1072 = vmatpush3.bf16.msra.mxu0 %v1233_v18  ;;  %v1274_v54 = vld [vmem:[%s1662_s0 + $0x7c] ss:$28 sps:$4 sm:$0xff]   ;;  %v1276_v55 = vld [vmem:[%s1661_s1 + $0x120] sm:$0xff]   ;;  %v1279_v58 = vld [vmem:[%s1661_s1 + $0x190] sm:$0xff]  }
  0x14   :  { %1073 = vmatprep.subr.bf16.mxu0 %v1236_v21  ;;  %v1277_v56 = vld [vmem:[%s1662_s0 + $0x78] ss:$28 sps:$4 sm:$0xff]   ;;  %v1280_v59 = vld [vmem:[%s1661_s1 + $0x128] sm:$0xff]   ;;  %v1291_v4 = vld [vmem:[%s1661_s1 + $0x1a0] sm:$0xff]  }
  0x15   :  { %1112 = vmatpush3.bf16.msra.mxu1 %v1235_v20  ;;  %v1281_v60 = vld [vmem:[%s1662_s0 + $0xac] ss:$28 sps:$4 sm:$0xff]   ;;  %v1284_v62 = vld [vmem:[%s1661_s1 + $0x170] sm:$0xff]   ;;  %v1285_v63 = vld [vmem:[%s1661_s1 + $0x198] sm:$0xff]  }
  0x16   :  { %1113 = vmatprep.subr.bf16.mxu1 %v1238_v23  ;;  %v1283_v61 = vld [vmem:[%s1662_s0 + $0xa8] ss:$28 sps:$4 sm:$0xff]   ;;  %v1286_v0 = vld [vmem:[%s1662_s0 + $0xb4] ss:$28 sps:$4 sm:$0xff]   ;;  %v1290_v3 = vld [vmem:[%s1661_s1 + $0x178] sm:$0xff]  }
  0x17   :  { %1074 = vmatpush3.bf16.msra.mxu0 %v1237_v22  ;;  %v1288_v1 = vld [vmem:[%s1661_s1 + $0x130] sm:$0xff]   ;;  %v1292_v5 = vld [vmem:[%s1661_s1 + $0x138] sm:$0xff]   ;;  %v1296_v8 = vld [vmem:[%s1661_s1 + $0x1a8] sm:$0xff]  }
  0x18   :  { %1075 = vmatprep.subr.bf16.mxu0 %v1240_v25  ;;  %v1289_v2 = vld [vmem:[%s1662_s0 + $0xb0] ss:$28 sps:$4 sm:$0xff]   ;;  %v1297_v9 = vld [vmem:[%s1662_s0 + $0x18] ss:$28 sps:$4 sm:$0xff]   ;;  %v1305_v12 = vld [vmem:[%s1662_s0 + $0x88] ss:$28 sps:$4 sm:$0xff]  }
  0x19   :  { %1114 = vmatpush3.bf16.msra.mxu1 %v1239_v24  ;;  %v1293_v6 = vld [vmem:[%s1662_s0 + $0x10] ss:$28 sps:$4 sm:$0xff]   ;;  %v1301_v13 = vld [vmem:[%s1662_s0 + $0x48] ss:$28 sps:$4 sm:$0xff]   ;;  %v1306_v17 = vld [vmem:[%s1662_s0 + $0xc0] ss:$28 sps:$4 sm:$0xff]  }
  0x1a   :  { %1115 = vmatprep.subr.bf16.mxu1 %v1242_v27  ;;  %v1295_v7 = vld [vmem:[%s1662_s0 + $0x14] ss:$28 sps:$4 sm:$0xff]   ;;  %v1299_v11 = vld [vmem:[%s1662_s0 + $0x4c] ss:$28 sps:$4 sm:$0xff]   ;;  %v1302_v14 = vld [vmem:[%s1662_s0 + $0x84] ss:$28 sps:$4 sm:$0xff]  }
  0x1b   :  { %1076 = vmatpush3.bf16.msra.mxu0 %v1241_v26  ;;  %v1298_v10 = vld [vmem:[%s1662_s0 + $0x50] ss:$28 sps:$4 sm:$0xff]   ;;  %v155_v15 = vld [vmem:[%s1663_s2] sm:$0xff]  ;;  %v158_v19 = vld [vmem:[%s1663_s2 + $0x18] sm:$0xff] }
  0x1c   :  { %1077 = vmatprep.subr.bf16.mxu0 %v1244_v29  ;;  %v157_v16 = vld [vmem:[%s1663_s2 + $0x10] sm:$0xff]  ;;  %165 = vperm.xlu0 %1214, %v155_v15   ;;  %v156_v18 = vld [vmem:[%s1663_s2 + $0x8] sm:$0xff]  ;;  %v159_v20 = vld [vmem:[%s1663_s2 + $0x20] sm:$0xff] }
  0x1d   :  { %1116 = vmatpush3.bf16.msra.mxu1 %v1243_v28  ;;  %175 = vperm.xlu1 %1215, %v157_v16   ;;  %v160_v21 = vld [vmem:[%s1663_s2 + $0x28] sm:$0xff]  ;;  %v1304_v22 = vld [vmem:[%s1662_s0 + $0x80] ss:$28 sps:$4 sm:$0xff]   ;;  %v161_v24 = vld [vmem:[%s1663_s2 + $0x30] sm:$0xff] }
  0x1e   :  { %1117 = vmatprep.subr.bf16.mxu1 %v1246_v31  ;;  %v1307_v23 = vld [vmem:[%s1662_s0 + $0xbc] ss:$28 sps:$4 sm:$0xff]  }
  0x1f   :  { %1078 = vmatpush3.bf16.msra.mxu0 %v1245_v30  ;;  %v162_v25 = vld [vmem:[%s1663_s2 + $0x38] sm:$0xff] }
  0x20   :  { %1143 = vmatprep.subr.bf16.mxu0 %v1251_v35  ;;  %170 = vperm.xlu0 %1214, %v156_v18   ;;  %v1309_v26 = vld [vmem:[%s1662_s0 + $0xb8] ss:$28 sps:$4 sm:$0xff]  }
  0x21   :  { %1118 = vmatpush3.bf16.msra.mxu1 %v1250_v34  ;;  %180 = vperm.xlu1 %1215, %v158_v19  }
  0x22   :  { %713 = vmatmul.mubr.bf16.vlgmr.msra.gmra.mrb[0].mxu0 %v1247_v32  ;;  %1193 = vmatprep.subr.bf16.mxu1 %v1267_v48 }
  0x23   :  { %1144 = vmatpush3.bf16.msra.mxu0 %v1255_v38  ;;  %720 = vmatprep.mubr.bf16.mxu0 %v1258_v41 }
  0x24   :  { %778 = vmatmul.mubr.bf16.vlgmr.msra.gmra.mrb[0].mxu1 %v1252_v36  ;;  %1145 = vmatprep.subr.bf16.mxu0 %v1256_v39 }
  0x25   :  { %785 = vmatprep.mubr.bf16.mxu1 %v1262_v44  ;;  %1194 = vmatpush3.bf16.msra.mxu1 %v1267_v48 }
  0x26   :  { %1195 = vmatprep.subr.bf16.mxu1 %v1273_v53  ;;  %185 = vperm.xlu0 %1214, %v159_v20  }
  0x27   :  { %1146 = vmatpush3.bf16.msra.mxu0 %v1257_v40  ;;  %190 = vperm.xlu1 %1215, %v160_v21  }
  0x28   :  { %1147 = vmatprep.subr.bf16.mxu0 %v1261_v43 }
  0x29   :  { %1196 = vmatpush3.bf16.msra.mxu1 %v1273_v53 }
  0x2a   :  { %721 = vmatmul.mubr.bf16.gmra.mrb[4].mxu0 %v1260_v42  ;;  %1197 = vmatprep.subr.bf16.mxu1 %v1279_v58 }
  0x2b   :  { %1148 = vmatpush3.bf16.msra.mxu0 %v1264_v45  ;;  %728 = vmatprep.mubr.bf16.mxu0 %v1269_v50 }
  0x2c   :  { %786 = vmatmul.mubr.bf16.gmra.mrb[4].mxu1 %v1265_v46  ;;  %1149 = vmatprep.subr.bf16.mxu0 %v1266_v47 }
  0x2d   :  { %793 = vmatprep.mubr.bf16.mxu1 %v1274_v54  ;;  %1198 = vmatpush3.bf16.msra.mxu1 %v1279_v58 }
  0x2e   :  { %1199 = vmatprep.subr.bf16.mxu1 %v1285_v63  ;;  %195 = vperm.xlu0 %1214, %v161_v24  }
  0x2f   :  { %1150 = vmatpush3.bf16.msra.mxu0 %v1268_v49  ;;  %200 = vperm.xlu1 %1215, %v162_v25  }
  0x30   :  { %1151 = vmatprep.subr.bf16.mxu0 %v1272_v52 }
  0x31   :  { %1200 = vmatpush3.bf16.msra.mxu1 %v1285_v63 }
  0x32   :  { %729 = vmatmul.mubr.bf16.gmra.mrb[8].mxu0 %v1271_v51  ;;  %1201 = vmatprep.subr.bf16.mxu1 %v1291_v4 }
  0x33   :  { %1152 = vmatpush3.bf16.msra.mxu0 %v1276_v55  ;;  %736 = vmatprep.mubr.bf16.mxu0 %v1281_v60 }
  0x34   :  { %794 = vmatmul.mubr.bf16.gmra.mrb[8].mxu1 %v1277_v56  ;;  %1153 = vmatprep.subr.bf16.mxu0 %v1278_v57 }
  0x35   :  { %801 = vmatprep.mubr.bf16.mxu1 %v1286_v0  ;;  %1202 = vmatpush3.bf16.msra.mxu1 %v1291_v4 }
  0x36   :  { %1203 = vmatprep.subr.bf16.mxu1 %v1296_v8 }
  0x37   :  { %1154 = vmatpush3.bf16.msra.mxu0 %v1280_v59 }
  0x38   :  { %1155 = vmatprep.subr.bf16.mxu0 %v1284_v62 }
  0x39   :  { %1204 = vmatpush3.bf16.msra.mxu1 %v1296_v8 }
  0x3a   :  { %737 = vmatmul.mubr.bf16.gmra.mrb[12].mxu0 %v1283_v61 }
  0x3b   :  { %1156 = vmatpush3.bf16.msra.mxu0 %v1288_v1  ;;  %842 = vmatprep.mubr.bf16.mxu0 %v1295_v7 }
  0x3c   :  { %802 = vmatmul.mubr.bf16.gmra.mrb[12].mxu1 %v1289_v2  ;;  %1157 = vmatprep.subr.bf16.mxu0 %v1290_v3 }
  0x3d   :  { %1205 = vmatprep.mubr.msk.bf16.mxu1 %vm667_vm0, %v1297_v9 }
  0x3f   :  { %1158 = vmatpush3.bf16.msra.mxu0 %v1292_v5 }
  0x42   :  { %843 = vmatmul.mubr.bf16.vlgmr.msra.gmra.mrb[16].mxu0 %v1293_v6 }
  0x43   :  { %850 = vmatprep.mubr.bf16.mxu0 %v1299_v11 }
  0x44   :  { %1206 = vmatmul.mubr.msk.bf16.vlgmr.msra.gmra.mrb[16].mxu1 %vm667_vm0, %v1298_v10 }
  0x45   :  { %1209 = vmatprep.mubr.msk.bf16.mxu1 %vm667_vm0, %v1305_v12 }
  0x4a   :  { %851 = vmatmul.mubr.bf16.gmra.mrb[20].mxu0 %v1301_v13 }
  0x4b   :  { %858 = vmatprep.mubr.bf16.mxu0 %v1302_v14 }
  0x4c   :  { %1210 = vmatmul.mubr.msk.bf16.gmra.mrb[20].mxu1 %vm667_vm0, %v1306_v17 }
  0x52   :  { %859 = vmatmul.mubr.bf16.gmra.mrb[24].mxu0 %v1304_v22 }
  0x53   :  { %866 = vmatprep.mubr.bf16.mxu0 %v1307_v23 }
  0x5a   :  { %867 = vmatmul.mubr.bf16.gmra.mrb[28].mxu0 %v1309_v26 }
  0x9b   :  { %v166_v27 = vpop.permute.xlu0 %165 }
  0x9c   :  { %v176_v38 = vpop.permute.xlu1 %175 }
  0x9f   :  { %v171_v32 = vpop.permute.xlu0 %170 }
  0xa0   :  { %v181_v50 = vpop.permute.xlu1 %180 }
  0xa5   :  { %v186_v1 = vpop.permute.xlu0 %185 }
  0xa6   :  { %v191_v4 = vpop.permute.xlu1 %190 }
  0xad   :  { %v196_v19 = vpop.permute.xlu0 %195 }
  0xae   :  { %v201_v22 = vpop.permute.xlu1 %200 }
  0xf5   :  { %v1079_v28 = vpop.f32.mrb[0].mxu0 }
  0xf6   :  { %v1080_v29 = vpop.f32.mrb[1].mxu0 }
  0xf7   :  { %v1081_v30 = vadd.f32 %v1080_v29, %v1079_v28  ;;  %v1082_v31 = vpop.f32.mrb[2].mxu0  ;;  %v1119_v33 = vpop.f32.mrb[0].mxu1 }
  0xf8   :  { %v1083_v34 = vpop.f32.mrb[3].mxu0  ;;  %v1120_v37 = vpop.f32.mrb[1].mxu1 }
  0xf9   :  { %v715_v35 = vadd.f32 %v1081_v30, %v166_v27  ;;  %v1084_v36 = vadd.f32 %v1083_v34, %v1082_v31  ;;  %v1121_v39 = vadd.f32 %v1120_v37, %v1119_v33  ;;  %v1122_v40 = vpop.f32.mrb[2].mxu1 }
  0xfa   :  { %v1123_v42 = vpop.f32.mrb[3].mxu1 }
  0xfb   :  { %v718_v41 = vadd.f32 %v1084_v36, %v171_v32  ;;  %v1605_v43 = vadd.f32 %v1121_v39, %v715_v35  ;;  %v1124_v44 = vadd.f32 %v1123_v42, %v1122_v40 }
  0xfd   :  { %v1085_v45 = vpop.f32.mrb[4].mxu0  ;;  %v1607_v46 = vadd.f32 %v1124_v44, %v718_v41 }
  0xfe   :  { %v1086_v47 = vpop.f32.mrb[5].mxu0 }
  0xff   :  { %v1087_v48 = vadd.f32 %v1086_v47, %v1085_v45  ;;  %v1088_v49 = vpop.f32.mrb[6].mxu0  ;;  %v1125_v51 = vpop.f32.mrb[4].mxu1 }
 0x100   :  { %v1089_v52 = vpop.f32.mrb[7].mxu0  ;;  %v1126_v55 = vpop.f32.mrb[5].mxu1 }
 0x101   :  { %v723_v53 = vadd.f32 %v1087_v48, %v176_v38  ;;  %v1090_v54 = vadd.f32 %v1089_v52, %v1088_v49  ;;  %v1127_v56 = vadd.f32 %v1126_v55, %v1125_v51  ;;  %v1128_v57 = vpop.f32.mrb[6].mxu1 }
 0x102   :  { %v1129_v59 = vpop.f32.mrb[7].mxu1 }
 0x103   :  { %v726_v58 = vadd.f32 %v1090_v54, %v181_v50  ;;  %v1609_v60 = vadd.f32 %v1127_v56, %v723_v53  ;;  %v1130_v61 = vadd.f32 %v1129_v59, %v1128_v57 }
 0x105   :  { %v1091_v62 = vpop.f32.mrb[8].mxu0  ;;  %v1611_v63 = vadd.f32 %v1130_v61, %v726_v58 }
 0x106   :  { %v1092_v0 = vpop.f32.mrb[9].mxu0 }
 0x107   :  { %v1093_v2 = vadd.f32 %v1092_v0, %v1091_v62  ;;  %v1094_v3 = vpop.f32.mrb[10].mxu0  ;;  %v1131_v5 = vpop.f32.mrb[8].mxu1 }
 0x108   :  { %v1095_v6 = vpop.f32.mrb[11].mxu0  ;;  %v1132_v9 = vpop.f32.mrb[9].mxu1 }
 0x109   :  { %v731_v7 = vadd.f32 %v1093_v2, %v186_v1  ;;  %v1096_v8 = vadd.f32 %v1095_v6, %v1094_v3  ;;  %v1133_v10 = vadd.f32 %v1132_v9, %v1131_v5  ;;  %v1134_v11 = vpop.f32.mrb[10].mxu1 }
 0x10a   :  { %v1135_v13 = vpop.f32.mrb[11].mxu1 }
 0x10b   :  { %v734_v12 = vadd.f32 %v1096_v8, %v191_v4  ;;  %v1613_v14 = vadd.f32 %v1133_v10, %v731_v7  ;;  %v1136_v15 = vadd.f32 %v1135_v13, %v1134_v11 }
 0x10d   :  { %v1097_v16 = vpop.f32.mrb[12].mxu0  ;;  %v1615_v17 = vadd.f32 %v1136_v15, %v734_v12 }
 0x10e   :  { %v1098_v18 = vpop.f32.mrb[13].mxu0 }
 0x10f   :  { %v1099_v20 = vadd.f32 %v1098_v18, %v1097_v16  ;;  %v1100_v21 = vpop.f32.mrb[14].mxu0  ;;  %v1137_v23 = vpop.f32.mrb[12].mxu1 }
 0x110   :  { %v1101_v24 = vpop.f32.mrb[15].mxu0  ;;  %v1138_v27 = vpop.f32.mrb[13].mxu1 }
 0x111   :  { %v739_v25 = vadd.f32 %v1099_v20, %v196_v19  ;;  %v1102_v26 = vadd.f32 %v1101_v24, %v1100_v21  ;;  %v1139_v28 = vadd.f32 %v1138_v27, %v1137_v23  ;;  %v1140_v29 = vpop.f32.mrb[14].mxu1 }
 0x112   :  { %v1141_v31 = vpop.f32.mrb[15].mxu1 }
 0x113   :  { %v742_v30 = vadd.f32 %v1102_v26, %v201_v22  ;;  %v1617_v32 = vadd.f32 %v1139_v28, %v739_v25  ;;  %v1142_v33 = vadd.f32 %v1141_v31, %v1140_v29 }
 0x115   :  { %v1619_v34 = vadd.f32 %v1142_v33, %v742_v30  ;;  %v1159_v35 = vpop.f32.mrb[16].mxu0 }
 0x116   :  { %v1160_v36 = vpop.f32.mrb[17].mxu0 }
 0x117   :  { %v1161_v37 = vadd.f32 %v1160_v36, %v1159_v35  ;;  %v1162_v38 = vpop.f32.mrb[18].mxu0  ;;  %v1207_v40 = vpop.f32.mrb[16].mxu1 }
 0x118   :  { %v1163_v39 = vpop.f32.mrb[19].mxu0  ;;  %v909_v44 = vpop.f32.mrb[17].mxu1 }
 0x119   :  { %v1164_v41 = vadd.f32 %v1163_v39, %v1162_v38  ;;  %v845_v42 = vadd.f32 %v1161_v37, %v1605_v43  ;;  %v1208_v45 = vpop.f32.mrb[18].mxu1 }
 0x11a   :  { %v912_v49 = vpop.f32.mrb[19].mxu1 }
 0x11b   :  { %v910_v47 = vadd.f32 %v909_v44, %v845_v42  ;;  %v848_v48 = vadd.f32 %v1164_v41, %v1607_v46 }
 0x11d   :  { %vm940_vm1 = vcmp.gt.f32.partialorder %v910_v47, 0.0  ;;  %v948_v50 = vmul.f32 0.2, %v910_v47  ;;  %v913_v51 = vadd.f32 %v912_v49, %v848_v48  ;;  %v1165_v52 = vpop.f32.mrb[20].mxu0 }
 0x11e   :  { %v1166_v53 = vpop.f32.mrb[21].mxu0 }
 0x11f   :  { %v956_v54 = vsel %vm940_vm1, %v910_v47, %v948_v50  ;;  %vm941_vm3 = vcmp.gt.f32.partialorder %v913_v51, 0.0  ;;  %v949_v55 = vmul.f32 0.2, %v913_v51  ;;  %v1167_v56 = vadd.f32 %v1166_v53, %v1165_v52  ;;  %v1168_v57 = vpop.f32.mrb[22].mxu0  ;;  %v1211_v58 = vpop.f32.mrb[20].mxu1 }
 0x120   :  { %965 = vst.msk [vmem:[%s1664_s3] sm:$0xff] %vm964_vm2, %v956_v54  ;;  %v1169_v43 = vpop.f32.mrb[23].mxu0  ;;  %v925_v62 = vpop.f32.mrb[21].mxu1 }
 0x121   :  { %v957_v46 = vsel %vm941_vm3, %v913_v51, %v949_v55  ;;  %v853_v59 = vadd.f32 %v1167_v56, %v1609_v60  ;;  %v1170_v61 = vadd.f32 %v1169_v43, %v1168_v57  ;;  %v1212_v0 = vpop.f32.mrb[22].mxu1 }
 0x122   :  { %966 = vst.msk [vmem:[%s1664_s3 + $0x8] sm:$0xff] %vm964_vm2, %v957_v46  ;;  %v928_v3 = vpop.f32.mrb[23].mxu1 }
 0x123   :  { %v918_v1 = vadd.f32 %v1207_v40, %v853_v59  ;;  %v856_v2 = vadd.f32 %v1170_v61, %v1611_v63 }
 0x125   :  { %vm942_vm4 = vcmp.gt.f32.partialorder %v918_v1, 0.0  ;;  %v950_v4 = vmul.f32 0.2, %v918_v1  ;;  %v921_v5 = vadd.f32 %v1208_v45, %v856_v2  ;;  %v1171_v6 = vpop.f32.mrb[24].mxu0 }
 0x126   :  { %v1172_v7 = vpop.f32.mrb[25].mxu0 }
 0x127   :  { %v958_v8 = vsel %vm942_vm4, %v918_v1, %v950_v4  ;;  %vm943_vm5 = vcmp.gt.f32.partialorder %v921_v5, 0.0  ;;  %v951_v60 = vmul.f32 0.2, %v921_v5  ;;  %v1173_v9 = vadd.f32 %v1172_v7, %v1171_v6  ;;  %v1174_v10 = vpop.f32.mrb[26].mxu0 }
 0x128   :  { %967 = vst.msk [vmem:[%s1664_s3 + $0x10] sm:$0xff] %vm964_vm2, %v958_v8  ;;  %v1175_v11 = vpop.f32.mrb[27].mxu0 }
 0x129   :  { %v959_v12 = vsel %vm943_vm5, %v921_v5, %v951_v60  ;;  %v1176_v13 = vadd.f32 %v1175_v11, %v1174_v10  ;;  %v861_v63 = vadd.f32 %v1173_v9, %v1613_v14 }
 0x12a   :  { %968 = vst.msk [vmem:[%s1664_s3 + $0x18] sm:$0xff] %vm964_vm2, %v959_v12 }
 0x12b   :  { %v926_v15 = vadd.f32 %v925_v62, %v861_v63  ;;  %v864_v16 = vadd.f32 %v1176_v13, %v1615_v17 }
 0x12d   :  { %vm944_vm6 = vcmp.gt.f32.partialorder %v926_v15, 0.0  ;;  %v952_v18 = vmul.f32 0.2, %v926_v15  ;;  %v929_v19 = vadd.f32 %v928_v3, %v864_v16  ;;  %v1177_v20 = vpop.f32.mrb[28].mxu0 }
 0x12e   :  { %v1178_v21 = vpop.f32.mrb[29].mxu0 }
 0x12f   :  { %v960_v22 = vsel %vm944_vm6, %v926_v15, %v952_v18  ;;  %vm945_vm7 = vcmp.gt.f32.partialorder %v929_v19, 0.0  ;;  %v953_v23 = vmul.f32 0.2, %v929_v19  ;;  %v1179_v24 = vadd.f32 %v1178_v21, %v1177_v20  ;;  %v1180_v25 = vpop.f32.mrb[30].mxu0 }
 0x130   :  { %969 = vst.msk [vmem:[%s1664_s3 + $0x20] sm:$0xff] %vm964_vm2, %v960_v22  ;;  %v1181_v14 = vpop.f32.mrb[31].mxu0 }
 0x131   :  { %v961_v26 = vsel %vm945_vm7, %v929_v19, %v953_v23  ;;  %v869_v27 = vadd.f32 %v1179_v24, %v1617_v32  ;;  %v1182_v17 = vadd.f32 %v1181_v14, %v1180_v25 }
 0x132   :  { %970 = vst.msk [vmem:[%s1664_s3 + $0x28] sm:$0xff] %vm964_vm2, %v961_v26 }
 0x133   :  { %v934_v28 = vadd.f32 %v1211_v58, %v869_v27  ;;  %v872_v29 = vadd.f32 %v1182_v17, %v1619_v34 }
 0x135   :  { %vm946_vm8 = vcmp.gt.f32.partialorder %v934_v28, 0.0  ;;  %v954_v30 = vmul.f32 0.2, %v934_v28  ;;  %v937_v31 = vadd.f32 %v1212_v0, %v872_v29 }
 0x137   :  { %v962_v33 = vsel %vm946_vm8, %v934_v28, %v954_v30  ;;  %vm947_vm9 = vcmp.gt.f32.partialorder %v937_v31, 0.0  ;;  %v955_v35 = vmul.f32 0.2, %v937_v31 }
 0x138   :  { %971 = vst.msk [vmem:[%s1664_s3 + $0x30] sm:$0xff] %vm964_vm2, %v962_v33 }
 0x139   :  { %v963_v32 = vsel %vm947_vm9, %v937_v31, %v955_v35 }
 0x13a   :  { %972 = vst.msk [vmem:[%s1664_s3 + $0x38] sm:$0xff] %vm964_vm2, %v963_v32 }

</bundles_post_ra>
